<compile_context>
chip_gen: v6e
topology: v6e:2x2x1
jax: 0.10.0
libtpu: 0.0.40
codegen_flags: <defaults>
</compile_context>

<pallas_src>
import math
from functools import partial

import jax
import jax.numpy as jnp
from jax.experimental import pallas as pl
from jax.experimental.pallas import tpu as pltpu

NEG_BIG = -1e30          # large finite negative (matches masked_fill(-1e9) softmax)
LN_EPS = 1e-5            # torch.nn.LayerNorm default eps
VMEM_LIMIT = 32 * 1024 * 1024   # explicit scoped-VMEM cap (safe on v5e/v6e/v7x)


def _cparams(dims):
    return pltpu.CompilerParams(dimension_semantics=dims,
                                vmem_limit_bytes=VMEM_LIMIT)


# ----------------------------------------------------------------------------
# tiling helper
# ----------------------------------------------------------------------------
def _pick_tile(dim, target, quantum):
    """Largest tile <= target that is a multiple of `quantum` and divides `dim`.

    Falls back to the full dimension (always legal for a BlockSpec). Targets
    are sized so the double-buffered footprint stays well under v7x's 64 MiB
    VMEM; at the demo shapes every dim is tiny so the full dim is used.
    """
    if dim <= target:
        return dim
    t = (target // quantum) * quantum
    while t >= quantum:
        if dim % t == 0:
            return t
        t -= quantum
    return dim


# ----------------------------------------------------------------------------
# kernel: plain linear  (o = x @ W + b), K-tiled accumulator matmul
#   x, W are bf16 (no in-kernel casts); f32 accumulation; bias in epilogue.
# ----------------------------------------------------------------------------
def linear_kernel(x_ref, w_ref, b_ref, o_ref, acc_ref):
    k = pl.program_id(2)

    @pl.when(k == 0)
    def _():
        acc_ref[...] = jnp.zeros_like(acc_ref)

    acc_ref[...] += jnp.dot(x_ref[...], w_ref[...],
                            preferred_element_type=jnp.float32)

    @pl.when(k == pl.num_programs(2) - 1)
    def _():
        o_ref[...] = (acc_ref[...] + b_ref[...]).astype(o_ref.dtype)


def linear(x, w_t, b, out_dtype=jnp.bfloat16):
    """x: [M, K] bf16, w_t: [K, N] bf16 (pre-transposed), b: [1, N] f32."""
    M, K = x.shape
    Kw, N = w_t.shape
    assert K == Kw
    tm = _pick_tile(M, 512, 8)
    tn = _pick_tile(N, 512, 128)
    tk = _pick_tile(K, 512, 128)
    grid = (M // tm, N // tn, K // tk)
    return pl.pallas_call(
        linear_kernel,
        out_shape=jax.ShapeDtypeStruct((M, N), out_dtype),
        grid_spec=pltpu.PrefetchScalarGridSpec(
            num_scalar_prefetch=0,
            grid=grid,
            in_specs=[
                pl.BlockSpec((tm, tk), lambda i, j, k: (i, k)),
                pl.BlockSpec((tk, tn), lambda i, j, k: (k, j)),
                pl.BlockSpec((1, tn), lambda i, j, k: (0, j)),
            ],
            out_specs=pl.BlockSpec((tm, tn), lambda i, j, k: (i, j)),
            scratch_shapes=[pltpu.VMEM((tm, tn), jnp.float32)],
        ),
        compiler_params=_cparams(("parallel", "parallel", "arbitrary")),
    )(x, w_t, b)


# ----------------------------------------------------------------------------
# kernel: linear + residual add + LayerNorm fused into the k==last epilogue
#   o = LayerNorm(res + x @ W + b)        (N is NOT tiled so LN sees full rows)
# ----------------------------------------------------------------------------
def linear_ln_kernel(x_ref, w_ref, b_ref, res_ref, g_ref, be_ref, o_ref,
                     acc_ref, *, eps):
    k = pl.program_id(1)

    @pl.when(k == 0)
    def _():
        acc_ref[...] = jnp.zeros_like(acc_ref)

    acc_ref[...] += jnp.dot(x_ref[...], w_ref[...],
                            preferred_element_type=jnp.float32)

    @pl.when(k == pl.num_programs(1) - 1)
    def _():
        s = acc_ref[...] + b_ref[...] + res_ref[...].astype(jnp.float32)
        mean = jnp.mean(s, axis=-1, keepdims=True)
        c = s - mean
        var = jnp.mean(c * c, axis=-1, keepdims=True)   # biased var (PyTorch LN)
        inv = jax.lax.rsqrt(var + eps)                   # EUP slot
        o_ref[...] = (c * inv * g_ref[...] + be_ref[...]).astype(o_ref.dtype)


def linear_add_ln(x, w_t, b, res, gamma, beta, eps=LN_EPS):
    """LayerNorm(res + x @ W + b).  x: [M,K] bf16, res: [M,N] bf16."""
    M, K = x.shape
    Kw, N = w_t.shape
    assert K == Kw and res.shape == (M, N)
    tm = _pick_tile(M, 512, 8)
    tk = _pick_tile(K, 512, 128)
    grid = (M // tm, K // tk)
    return pl.pallas_call(
        partial(linear_ln_kernel, eps=eps),
        out_shape=jax.ShapeDtypeStruct((M, N), jnp.bfloat16),
        grid_spec=pltpu.PrefetchScalarGridSpec(
            num_scalar_prefetch=0,
            grid=grid,
            in_specs=[
                pl.BlockSpec((tm, tk), lambda i, k: (i, k)),
                pl.BlockSpec((tk, N), lambda i, k: (k, 0)),
                pl.BlockSpec((1, N), lambda i, k: (0, 0)),
                pl.BlockSpec((tm, N), lambda i, k: (i, 0)),
                pl.BlockSpec((1, N), lambda i, k: (0, 0)),
                pl.BlockSpec((1, N), lambda i, k: (0, 0)),
            ],
            out_specs=pl.BlockSpec((tm, N), lambda i, k: (i, 0)),
            scratch_shapes=[pltpu.VMEM((tm, N), jnp.float32)],
        ),
        compiler_params=_cparams(("parallel", "arbitrary")),
    )(x, w_t, b, res, gamma, beta)


# ----------------------------------------------------------------------------
# kernel: fused FFN + residual + LayerNorm
#   o = LayerNorm(x + fc2(relu(fc1(x))))
#   d_ff is streamed in K chunks -> the [tm, d_ff] intermediate never lives in
#   VMEM; x itself is the residual (same block across k).
# ----------------------------------------------------------------------------
def ffn_ln_kernel(x_ref, w1_ref, b1_ref, w2_ref, b2_ref, g_ref, be_ref,
                  o_ref, acc_ref, *, eps):
    k = pl.program_id(1)

    @pl.when(k == 0)
    def _():
        acc_ref[...] = jnp.zeros_like(acc_ref)

    h = jnp.dot(x_ref[...], w1_ref[...], preferred_element_type=jnp.float32)
    h = jnp.maximum(h + b1_ref[...], 0.0)            # ReLU per d_ff chunk (exact)
    acc_ref[...] += jnp.dot(h.astype(jnp.bfloat16), w2_ref[...],
                            preferred_element_type=jnp.float32)

    @pl.when(k == pl.num_programs(1) - 1)
    def _():
        s = acc_ref[...] + b2_ref[...] + x_ref[...].astype(jnp.float32)
        mean = jnp.mean(s, axis=-1, keepdims=True)
        c = s - mean
        var = jnp.mean(c * c, axis=-1, keepdims=True)
        inv = jax.lax.rsqrt(var + eps)
        o_ref[...] = (c * inv * g_ref[...] + be_ref[...]).astype(o_ref.dtype)


def ffn_ln(x, w1_t, b1, w2_t, b2, gamma, beta, eps=LN_EPS):
    M, D = x.shape
    d_ff = w1_t.shape[1]
    tm = _pick_tile(M, 512, 8)
    tkf = _pick_tile(d_ff, 512, 128)
    grid = (M // tm, d_ff // tkf)
    return pl.pallas_call(
        partial(ffn_ln_kernel, eps=eps),
        out_shape=jax.ShapeDtypeStruct((M, D), jnp.bfloat16),
        grid_spec=pltpu.PrefetchScalarGridSpec(
            num_scalar_prefetch=0,
            grid=grid,
            in_specs=[
                pl.BlockSpec((tm, D), lambda i, k: (i, 0)),
                pl.BlockSpec((D, tkf), lambda i, k: (0, k)),
                pl.BlockSpec((1, tkf), lambda i, k: (0, k)),
                pl.BlockSpec((tkf, D), lambda i, k: (k, 0)),
                pl.BlockSpec((1, D), lambda i, k: (0, 0)),
                pl.BlockSpec((1, D), lambda i, k: (0, 0)),
                pl.BlockSpec((1, D), lambda i, k: (0, 0)),
            ],
            out_specs=pl.BlockSpec((tm, D), lambda i, k: (i, 0)),
            scratch_shapes=[pltpu.VMEM((tm, D), jnp.float32)],
        ),
        compiler_params=_cparams(("parallel", "arbitrary")),
    )(x, w1_t, b1, w2_t, b2, gamma, beta)


# ----------------------------------------------------------------------------
# kernel: flash-style attention, all heads packed per grid step
#   grid (B, q_tiles, kv_tiles); q/k/v blocks are [tq,H,dh] taken directly from
#   the packed projection output (no HBM transposes); mask built in-kernel.
# ----------------------------------------------------------------------------
def attn_kernel(q_ref, k_ref, v_ref, qm_ref, km_ref, o_ref,
                m_sc, l_sc, acc_sc, *, causal, tq, tkv):
    qi = pl.program_id(1)
    ki = pl.program_id(2)

    @pl.when(ki == 0)
    def _():
        m_sc[...] = jnp.full_like(m_sc, NEG_BIG)
        l_sc[...] = jnp.zeros_like(l_sc)
        acc_sc[...] = jnp.zeros_like(acc_sc)

    def body():
        # head-major views (VMEM/XLU relayout only; no HBM transposes)
        qh = jnp.swapaxes(q_ref[...], 0, 1)          # [H, tq, dh]  bf16
        kh = jnp.swapaxes(k_ref[...], 0, 1)          # [H, tkv, dh] bf16
        vh = jnp.swapaxes(v_ref[...], 0, 1)          # [H, tkv, dh] bf16

        s = jnp.einsum("hqd,hkd->hqk", qh, kh,
                       preferred_element_type=jnp.float32)   # [H, tq, tkv]

        # mask: query padding x key padding x (optional) causal, single -1e30.
        # fully-masked rows -> uniform softmax (matches masked_fill(-1e9)).
        keep = (qm_ref[...] > 0.0) & (km_ref[...] > 0.0)      # [tq, tkv]
        if causal:
            rows = qi * tq + jax.lax.broadcasted_iota(jnp.int32, (tq, tkv), 0)
            cols = ki * tkv + jax.lax.broadcasted_iota(jnp.int32, (tq, tkv), 1)
            keep = keep & (rows >= cols)
        s = s + jnp.where(keep, 0.0, NEG_BIG)[None, :, :]

        m_prev = m_sc[...]
        m_new = jnp.maximum(m_prev, jnp.max(s, axis=-1, keepdims=True))
        alpha = jnp.exp(m_prev - m_new)                       # EUP
        p = jnp.exp(s - m_new)
        l_sc[...] = alpha * l_sc[...] + jnp.sum(p, axis=-1, keepdims=True)
        acc_sc[...] = alpha * acc_sc[...] + jnp.einsum(
            "hqk,hkd->hqd", p.astype(jnp.bfloat16), vh,
            preferred_element_type=jnp.float32)
        m_sc[...] = m_new

    if causal:
        # skip kv tiles that lie entirely above the causal diagonal
        # (their contribution is rescaled to zero anyway).
        @pl.when(ki * tkv < (qi + 1) * tq)
        def _():
            body()
    else:
        body()

    @pl.when(ki == pl.num_programs(2) - 1)
    def _():
        out = acc_sc[...] * pl.reciprocal(l_sc[...], approx=True)  # [H, tq, dh]
        o_ref[...] = jnp.swapaxes(out, 0, 1).astype(o_ref.dtype)   # [tq, H, dh]


def flash_attention(q_pack, k_pack, v_pack, qmask, kmask, *, sel, causal):
    """q_pack: [B,Sq,Pq,H,dh], k_pack/v_pack: [B,Sk,Pk,H,dh] bf16 packed
    projections; sel = (q_idx, k_idx, v_idx) selects the slab along axis 2.
    qmask: [B,Sq,1], kmask: [B,1,Sk] f32 {0,1} padding masks.
    Returns ctx [B, Sq, H, dh] bf16."""
    B, Sq, _, H, dh = q_pack.shape
    Sk = k_pack.shape[1]
    q_idx, k_idx, v_idx = sel
    tq = _pick_tile(Sq, 256, 8)
    tkv = _pick_tile(Sk, 256, 128)
    grid = (B, Sq // tq, Sk // tkv)
    return pl.pallas_call(
        partial(attn_kernel, causal=causal, tq=tq, tkv=tkv),
        out_shape=jax.ShapeDtypeStruct((B, Sq, H, dh), jnp.bfloat16),
        grid_spec=pltpu.PrefetchScalarGridSpec(
            num_scalar_prefetch=0,
            grid=grid,
            in_specs=[
                pl.BlockSpec((None, tq, None, H, dh),
                             lambda b, qi, ki: (b, qi, q_idx, 0, 0)),
                pl.BlockSpec((None, tkv, None, H, dh),
                             lambda b, qi, ki: (b, ki, k_idx, 0, 0)),
                pl.BlockSpec((None, tkv, None, H, dh),
                             lambda b, qi, ki: (b, ki, v_idx, 0, 0)),
                pl.BlockSpec((None, tq, 1), lambda b, qi, ki: (b, qi, 0)),
                pl.BlockSpec((None, 1, tkv), lambda b, qi, ki: (b, 0, ki)),
            ],
            out_specs=pl.BlockSpec((None, tq, H, dh),
                                   lambda b, qi, ki: (b, qi, 0, 0)),
            scratch_shapes=[pltpu.VMEM((H, tq, 1), jnp.float32),
                            pltpu.VMEM((H, tq, 1), jnp.float32),
                            pltpu.VMEM((H, tq, dh), jnp.float32)],
        ),
        compiler_params=_cparams(("parallel", "parallel", "arbitrary")),
    )(q_pack, k_pack, v_pack, qmask, kmask)


# ----------------------------------------------------------------------------
# model glue (plain JAX): MHA wrappers, layers, masks, embeddings
# ----------------------------------------------------------------------------
def mha_self(p, x, qmask, kmask, *, causal, num_heads):
    B, S, D = x.shape
    dh = D // num_heads
    qkv = linear(x.reshape(B * S, D), p["qkv"]["w"], p["qkv"]["b"])   # [B*S,3D]
    qkv = qkv.reshape(B, S, 3, num_heads, dh)                          # free reshape
    ctx = flash_attention(qkv, qkv, qkv, qmask, kmask, sel=(0, 1, 2),
                          causal=causal)
    return ctx.reshape(B * S, D)                                       # free reshape


def mha_cross(p, x_q, enc_kv, qmask, kmask, *, num_heads):
    B, Sq, D = x_q.shape
    Sk = enc_kv.shape[1]
    dh = D // num_heads
    q = linear(x_q.reshape(B * Sq, D), p["q"]["w"], p["q"]["b"])
    q = q.reshape(B, Sq, 1, num_heads, dh)
    kv = linear(enc_kv.reshape(B * Sk, D), p["kv"]["w"], p["kv"]["b"])
    kv = kv.reshape(B, Sk, 2, num_heads, dh)
    ctx = flash_attention(q, kv, kv, qmask, kmask, sel=(0, 0, 1), causal=False)
    return ctx.reshape(B * Sq, D)


def encoder_layer(p, x, qmask, kmask, num_heads):
    B, S, D = x.shape
    x2 = x.reshape(B * S, D)
    ctx = mha_self(p["self_attn"], x, qmask, kmask, causal=False,
                   num_heads=num_heads)
    h = linear_add_ln(ctx, p["self_attn"]["o"]["w"], p["self_attn"]["o"]["b"],
                      x2, p["ln1"]["g"], p["ln1"]["b"])
    h2 = ffn_ln(h, p["ffn"]["fc1"]["w"], p["ffn"]["fc1"]["b"],
                p["ffn"]["fc2"]["w"], p["ffn"]["fc2"]["b"],
                p["ln2"]["g"], p["ln2"]["b"])
    return h2.reshape(B, S, D)


def decoder_layer(p, x, enc_out, tgt_qmask, ones_k_tgt, ones_q_tgt,
                  src_kmask, num_heads):
    B, S, D = x.shape
    x2 = x.reshape(B * S, D)
    # masked self-attention (tgt padding masks queries, as in the reference)
    ctx = mha_self(p["self_attn"], x, tgt_qmask, ones_k_tgt, causal=True,
                   num_heads=num_heads)
    h = linear_add_ln(ctx, p["self_attn"]["o"]["w"], p["self_attn"]["o"]["b"],
                      x2, p["ln1"]["g"], p["ln1"]["b"])
    # cross-attention (src padding masks keys)
    ctx2 = mha_cross(p["cross_attn"], h.reshape(B, S, D), enc_out,
                     ones_q_tgt, src_kmask, num_heads=num_heads)
    h2 = linear_add_ln(ctx2, p["cross_attn"]["o"]["w"], p["cross_attn"]["o"]["b"],
                       h, p["ln2"]["g"], p["ln2"]["b"])
    h3 = ffn_ln(h2, p["ffn"]["fc1"]["w"], p["ffn"]["fc1"]["b"],
                p["ffn"]["fc2"]["w"], p["ffn"]["fc2"]["b"],
                p["ln3"]["g"], p["ln3"]["b"])
    return h3.reshape(B, S, D)


def positional_encoding_table(max_len, d_model):
    position = jnp.arange(max_len, dtype=jnp.float32)[:, None]
    div_term = jnp.exp(jnp.arange(0, d_model, 2, dtype=jnp.float32)
                       * -(math.log(10000.0) / d_model))
    ang = position * div_term
    pe = jnp.zeros((max_len, d_model), dtype=jnp.float32)
    pe = pe.at[:, 0::2].set(jnp.sin(ang))
    pe = pe.at[:, 1::2].set(jnp.cos(ang))
    return pe[None]                                   # [1, max_len, d_model]


def transformer_forward(params, src, tgt, *, num_heads):
    B, Ss = src.shape
    St = tgt.shape[1]
    D = params["enc_emb"].shape[1]

    # tiny {0,1} padding vectors; the additive bias is generated inside attn_kernel
    src_kmask = (src != 0).astype(jnp.float32).reshape(B, 1, Ss)
    tgt_qmask = (tgt != 0).astype(jnp.float32).reshape(B, St, 1)
    ones_q_src = jnp.ones((B, Ss, 1), jnp.float32)
    ones_q_tgt = jnp.ones((B, St, 1), jnp.float32)
    ones_k_tgt = jnp.ones((B, 1, St), jnp.float32)

    # embeddings + positional encoding (dropout = identity in eval mode)
    pe = params["pos_enc"]
    enc = (params["enc_emb"][src] + pe[:, :Ss]).astype(jnp.bfloat16)
    dec = (params["dec_emb"][tgt] + pe[:, :St]).astype(jnp.bfloat16)

    for lp in params["enc_layers"]:
        enc = encoder_layer(lp, enc, ones_q_src, src_kmask, num_heads)
    for lp in params["dec_layers"]:
        dec = decoder_layer(lp, dec, enc, tgt_qmask, ones_k_tgt, ones_q_tgt,
                            src_kmask, num_heads)

    logits = linear(dec.reshape(B * St, D), params["out"]["w"],
                    params["out"]["b"], out_dtype=jnp.float32)
    return logits.reshape(B, St, -1)


# ----------------------------------------------------------------------------
# parameter init: weights pre-transposed to [in, out], cast to bf16;
# Q/K/V fused to [D,3D] (K/V fused to [D,2D] for cross-attn); 1/sqrt(dh)
# folded into the Q projection.
# ----------------------------------------------------------------------------
def init_params(key, *, src_vocab, tgt_vocab, d_model, num_heads, num_layers,
                d_ff, max_len):
    dh = d_model // num_heads
    q_scale = 1.0 / math.sqrt(dh)

    def lin_wb(k, din, dout):
        kw, kb = jax.random.split(k)
        w = jax.random.normal(kw, (din, dout), jnp.float32) / math.sqrt(din)
        b = jax.random.normal(kb, (1, dout), jnp.float32) * 0.02
        return w, b

    def lin(k, din, dout):
        w, b = lin_wb(k, din, dout)
        return {"w": w.astype(jnp.bfloat16), "b": b}

    def self_attn_p(k):
        kq, kk, kv, ko = jax.random.split(k, 4)
        wq, bq = lin_wb(kq, d_model, d_model)
        wk, bk = lin_wb(kk, d_model, d_model)
        wv, bv = lin_wb(kv, d_model, d_model)
        return {
            "qkv": {"w": jnp.concatenate([wq * q_scale, wk, wv], axis=1
                                         ).astype(jnp.bfloat16),
                    "b": jnp.concatenate([bq * q_scale, bk, bv], axis=1)},
            "o": lin(ko, d_model, d_model),
        }

    def cross_attn_p(k):
        kq, kk, kv, ko = jax.random.split(k, 4)
        wq, bq = lin_wb(kq, d_model, d_model)
        wk, bk = lin_wb(kk, d_model, d_model)
        wv, bv = lin_wb(kv, d_model, d_model)
        return {
            "q": {"w": (wq * q_scale).astype(jnp.bfloat16), "b": bq * q_scale},
            "kv": {"w": jnp.concatenate([wk, wv], axis=1).astype(jnp.bfloat16),
                   "b": jnp.concatenate([bk, bv], axis=1)},
            "o": lin(ko, d_model, d_model),
        }

    def ln():
        return {"g": jnp.ones((1, d_model), jnp.float32),
                "b": jnp.zeros((1, d_model), jnp.float32)}

    def enc_layer_p(k):
        k1, k2, k3 = jax.random.split(k, 3)
        return {"self_attn": self_attn_p(k1),
                "ffn": {"fc1": lin(k2, d_model, d_ff),
                        "fc2": lin(k3, d_ff, d_model)},
                "ln1": ln(), "ln2": ln()}

    def dec_layer_p(k):
        k1, k2, k3, k4 = jax.random.split(k, 4)
        return {"self_attn": self_attn_p(k1), "cross_attn": cross_attn_p(k2),
                "ffn": {"fc1": lin(k3, d_model, d_ff),
                        "fc2": lin(k4, d_ff, d_model)},
                "ln1": ln(), "ln2": ln(), "ln3": ln()}

    k_emb_e, k_emb_d, k_out, k_enc, k_dec = jax.random.split(key, 5)
    return {
        "enc_emb": jax.random.normal(k_emb_e, (src_vocab, d_model), jnp.float32) * 0.1,
        "dec_emb": jax.random.normal(k_emb_d, (tgt_vocab, d_model), jnp.float32) * 0.1,
        "pos_enc": positional_encoding_table(max_len, d_model),
        "enc_layers": [enc_layer_p(k) for k in jax.random.split(k_enc, num_layers)],
        "dec_layers": [dec_layer_p(k) for k in jax.random.split(k_dec, num_layers)],
        "out": lin(k_out, d_model, tgt_vocab),
    }


# ----------------------------------------------------------------------------
if __name__ == "__main__":
    src_vocab, tgt_vocab = 37, 41
    d_model, num_heads, num_layers, d_ff, max_len = 32, 4, 2, 64, 16
    B, S = 2, 8

    root = jax.random.PRNGKey(0)
    k_params, k_src, k_tgt = jax.random.split(root, 3)
    params = init_params(k_params, src_vocab=src_vocab, tgt_vocab=tgt_vocab,
                         d_model=d_model, num_heads=num_heads,
                         num_layers=num_layers, d_ff=d_ff, max_len=max_len)

    src = jax.random.randint(k_src, (B, S), 1, src_vocab, dtype=jnp.int32)
    tgt = jax.random.randint(k_tgt, (B, S), 1, tgt_vocab, dtype=jnp.int32)
    # add a few padding tokens so the mask path is exercised
    src = src.at[:, -2:].set(0)
    tgt = tgt.at[:, -1:].set(0)

    fwd = jax.jit(partial(transformer_forward, num_heads=num_heads))
    logits = fwd(params, src, tgt)
    jax.block_until_ready(logits)

    assert logits.shape == (B, S, tgt_vocab), logits.shape
    assert bool(jnp.all(jnp.isfinite(logits))), "non-finite logits"
    print("KERNEL_OK")
</pallas_src>

<mosaic_0001>
module attributes {stable_mosaic.version = 11 : i64} {
  func.func @linear_kernel(%arg0: i32, %arg1: i32, %arg2: i32, %arg3: memref<16x32xbf16, #tpu.memory_space<vmem>>, %arg4: memref<32x96xbf16, #tpu.memory_space<vmem>>, %arg5: memref<1x96xf32, #tpu.memory_space<vmem>>, %arg6: memref<16x96xbf16, #tpu.memory_space<vmem>>, %arg7: memref<16x96xf32, #tpu.memory_space<vmem>>) attributes {dimension_semantics = [#tpu.dimension_semantics<parallel>, #tpu.dimension_semantics<parallel>, #tpu.dimension_semantics<arbitrary>], iteration_bounds = array<i64: 1, 1, 1>, scalar_prefetch = 0 : i64, scratch_operands = 1 : i64, tpu.core_type = #tpu.core_type<tc>, window_params = [{transform_indices = @transform_0, window_bounds = array<i64: 16, 32>}, {transform_indices = @transform_1, window_bounds = array<i64: 32, 96>}, {transform_indices = @transform_2, window_bounds = array<i64: 1, 96>}, {transform_indices = @transform_3, window_bounds = array<i64: 16, 96>}]} {
    %c0_i32 = arith.constant 0 : i32
    %0 = arith.cmpi eq, %arg2, %c0_i32 : i32
    %1 = arith.extui %0 : i1 to i32
    %c0_i32_0 = arith.constant 0 : i32
    %2 = arith.cmpi ne, %1, %c0_i32_0 : i32
    scf.if %2 {
      %cst_10 = arith.constant 0.000000e+00 : f32
      %12 = vector.broadcast %cst_10 : f32 to vector<16x96xf32>
      %c0_11 = arith.constant 0 : index
      %c0_12 = arith.constant 0 : index
      %13 = vector.load %arg7[%c0_11, %c0_12] : memref<16x96xf32, #tpu.memory_space<vmem>>, vector<16x96xf32>
      tpu.vector_store %arg7[%c0_11, %c0_12], %12 {strides = array<i32>} : memref<16x96xf32, #tpu.memory_space<vmem>>, vector<16x96xf32>,
    } else {
    }
    %c0 = arith.constant 0 : index
    %c0_1 = arith.constant 0 : index
    %3 = vector.load %arg7[%c0, %c0_1] : memref<16x96xf32, #tpu.memory_space<vmem>>, vector<16x96xf32>
    %c0_2 = arith.constant 0 : index
    %c0_3 = arith.constant 0 : index
    %4 = vector.load %arg3[%c0_2, %c0_3] : memref<16x32xbf16, #tpu.memory_space<vmem>>, vector<16x32xbf16>
    %c0_4 = arith.constant 0 : index
    %c0_5 = arith.constant 0 : index
    %5 = vector.load %arg4[%c0_4, %c0_5] : memref<32x96xbf16, #tpu.memory_space<vmem>>, vector<32x96xbf16>
    %cst = arith.constant dense<0.000000e+00> : vector<16x96xf32>
    %6 = tpu.matmul %4, %5, %cst {dimension_numbers = #tpu.dot_dimension_numbers<[1], [0], [0], [1], [0, 0, 1, 1], [], []>} : vector<16x32xbf16>, vector<32x96xbf16>, vector<16x96xf32> -> vector<16x96xf32>
    %7 = arith.addf %3, %6 : vector<16x96xf32>
    %c0_6 = arith.constant 0 : index
    %c0_7 = arith.constant 0 : index
    %8 = vector.load %arg7[%c0_6, %c0_7] : memref<16x96xf32, #tpu.memory_space<vmem>>, vector<16x96xf32>
    tpu.vector_store %arg7[%c0_6, %c0_7], %7 {strides = array<i32>} : memref<16x96xf32, #tpu.memory_space<vmem>>, vector<16x96xf32>,
    %c0_i32_8 = arith.constant 0 : i32
    %9 = arith.cmpi eq, %arg2, %c0_i32_8 : i32
    %10 = arith.extui %9 : i1 to i32
    %c0_i32_9 = arith.constant 0 : i32
    %11 = arith.cmpi ne, %10, %c0_i32_9 : i32
    scf.if %11 {
      %c0_10 = arith.constant 0 : index
      %c0_11 = arith.constant 0 : index
      %12 = vector.load %arg7[%c0_10, %c0_11] : memref<16x96xf32, #tpu.memory_space<vmem>>, vector<16x96xf32>
      %c0_12 = arith.constant 0 : index
      %c0_13 = arith.constant 0 : index
      %13 = vector.load %arg5[%c0_12, %c0_13] : memref<1x96xf32, #tpu.memory_space<vmem>>, vector<1x96xf32>
      %14 = vector.broadcast %13 : vector<1x96xf32> to vector<16x96xf32>
      %15 = arith.addf %12, %14 : vector<16x96xf32>
      %16 = arith.truncf %15 : vector<16x96xf32> to vector<16x96xbf16>
      %c0_14 = arith.constant 0 : index
      %c0_15 = arith.constant 0 : index
      %17 = vector.load %arg6[%c0_14, %c0_15] : memref<16x96xbf16, #tpu.memory_space<vmem>>, vector<16x96xbf16>
      tpu.vector_store %arg6[%c0_14, %c0_15], %16 {strides = array<i32>} : memref<16x96xbf16, #tpu.memory_space<vmem>>, vector<16x96xbf16>,
    } else {
    }
    return
  }
  func.func @transform_0(%arg0: i32, %arg1: i32, %arg2: i32) -> (i32, i32) {
    %c0_i32 = arith.constant 0 : i32
    return %arg0, %arg2 : i32, i32
  }
  func.func @transform_1(%arg0: i32, %arg1: i32, %arg2: i32) -> (i32, i32) {
    %c0_i32 = arith.constant 0 : i32
    return %arg2, %arg1 : i32, i32
  }
  func.func @transform_2(%arg0: i32, %arg1: i32, %arg2: i32) -> (i32, i32) {
    %c0_i32 = arith.constant 0 : i32
    %c0_i32_0 = arith.constant 0 : i32
    return %c0_i32, %arg1 : i32, i32
  }
  func.func @transform_3(%arg0: i32, %arg1: i32, %arg2: i32) -> (i32, i32) {
    %c0_i32 = arith.constant 0 : i32
    return %arg0, %arg1 : i32, i32
  }
}

module attributes {stable_mosaic.version = 11 : i64} {
  func.func @attn_kernel(%arg0: i32, %arg1: i32, %arg2: i32, %arg3: memref<1x8x1x4x8xbf16, #tpu.memory_space<vmem>>, %arg4: memref<1x8x1x4x8xbf16, #tpu.memory_space<vmem>>, %arg5: memref<1x8x1x4x8xbf16, #tpu.memory_space<vmem>>, %arg6: memref<1x8x1xf32, #tpu.memory_space<vmem>>, %arg7: memref<1x1x8xf32, #tpu.memory_space<vmem>>, %arg8: memref<1x8x4x8xbf16, #tpu.memory_space<vmem>>, %arg9: memref<4x8x1xf32, #tpu.memory_space<vmem>>, %arg10: memref<4x8x1xf32, #tpu.memory_space<vmem>>, %arg11: memref<4x8x8xf32, #tpu.memory_space<vmem>>) attributes {dimension_semantics = [#tpu.dimension_semantics<parallel>, #tpu.dimension_semantics<parallel>, #tpu.dimension_semantics<arbitrary>], iteration_bounds = array<i64: 2, 1, 1>, scalar_prefetch = 0 : i64, scratch_operands = 3 : i64, tpu.core_type = #tpu.core_type<tc>, window_params = [{transform_indices = @transform_0, window_bounds = array<i64: 1, 8, 1, 4, 8>}, {transform_indices = @transform_1, window_bounds = array<i64: 1, 8, 1, 4, 8>}, {transform_indices = @transform_2, window_bounds = array<i64: 1, 8, 1, 4, 8>}, {transform_indices = @transform_3, window_bounds = array<i64: 1, 8, 1>}, {transform_indices = @transform_4, window_bounds = array<i64: 1, 1, 8>}, {transform_indices = @transform_5, window_bounds = array<i64: 1, 8, 4, 8>}]} {
    %c0_i32 = arith.constant 0 : i32
    %0 = arith.cmpi eq, %arg2, %c0_i32 : i32
    %1 = arith.extui %0 : i1 to i32
    %c0_i32_0 = arith.constant 0 : i32
    %2 = arith.cmpi ne, %1, %c0_i32_0 : i32
    scf.if %2 {
      %cst = arith.constant -1.000000e+30 : f32
      %12 = vector.broadcast %cst : f32 to vector<4x8x1xf32>
      %c0 = arith.constant 0 : index
      %c0_5 = arith.constant 0 : index
      %c0_6 = arith.constant 0 : index
      %13 = vector.load %arg9[%c0, %c0_5, %c0_6] : memref<4x8x1xf32, #tpu.memory_space<vmem>>, vector<4x8x1xf32>
      tpu.vector_store %arg9[%c0, %c0_5, %c0_6], %12 {strides = array<i32>} : memref<4x8x1xf32, #tpu.memory_space<vmem>>, vector<4x8x1xf32>,
      %cst_7 = arith.constant 0.000000e+00 : f32
      %14 = vector.broadcast %cst_7 : f32 to vector<4x8x1xf32>
      %c0_8 = arith.constant 0 : index
      %c0_9 = arith.constant 0 : index
      %c0_10 = arith.constant 0 : index
      %15 = vector.load %arg10[%c0_8, %c0_9, %c0_10] : memref<4x8x1xf32, #tpu.memory_space<vmem>>, vector<4x8x1xf32>
      tpu.vector_store %arg10[%c0_8, %c0_9, %c0_10], %14 {strides = array<i32>} : memref<4x8x1xf32, #tpu.memory_space<vmem>>, vector<4x8x1xf32>,
      %cst_11 = arith.constant 0.000000e+00 : f32
      %16 = vector.broadcast %cst_11 : f32 to vector<4x8x8xf32>
      %c0_12 = arith.constant 0 : index
      %c0_13 = arith.constant 0 : index
      %c0_14 = arith.constant 0 : index
      %17 = vector.load %arg11[%c0_12, %c0_13, %c0_14] : memref<4x8x8xf32, #tpu.memory_space<vmem>>, vector<4x8x8xf32>
      tpu.vector_store %arg11[%c0_12, %c0_13, %c0_14], %16 {strides = array<i32>} : memref<4x8x8xf32, #tpu.memory_space<vmem>>, vector<4x8x8xf32>,
    } else {
    }
    %c8_i32 = arith.constant 8 : i32
    %3 = arith.muli %arg2, %c8_i32 : i32
    %c1_i32 = arith.constant 1 : i32
    %4 = arith.addi %arg1, %c1_i32 : i32
    %c8_i32_1 = arith.constant 8 : i32
    %5 = arith.muli %4, %c8_i32_1 : i32
    %6 = arith.cmpi slt, %3, %5 : i32
    %7 = arith.extui %6 : i1 to i32
    %c0_i32_2 = arith.constant 0 : i32
    %8 = arith.cmpi ne, %7, %c0_i32_2 : i32
    scf.if %8 {
      %c0 = arith.constant 0 : index
      %c0_5 = arith.constant 0 : index
      %c0_6 = arith.constant 0 : index
      %c0_7 = arith.constant 0 : index
      %c0_8 = arith.constant 0 : index
      %12 = vector.load %arg3[%c0, %c0_5, %c0_6, %c0_7, %c0_8] : memref<1x8x1x4x8xbf16, #tpu.memory_space<vmem>>, vector<1x8x1x4x8xbf16>
      %13 = vector.shape_cast %12 : vector<1x8x1x4x8xbf16> to vector<8x4x8xbf16>
      %14 = tpu.transpose %13, [1, 0, 2] : vector<8x4x8xbf16> -> vector<4x8x8xbf16>
      %c0_9 = arith.constant 0 : index
      %c0_10 = arith.constant 0 : index
      %c0_11 = arith.constant 0 : index
      %c0_12 = arith.constant 0 : index
      %c0_13 = arith.constant 0 : index
      %15 = vector.load %arg4[%c0_9, %c0_10, %c0_11, %c0_12, %c0_13] : memref<1x8x1x4x8xbf16, #tpu.memory_space<vmem>>, vector<1x8x1x4x8xbf16>
      %16 = vector.shape_cast %15 : vector<1x8x1x4x8xbf16> to vector<8x4x8xbf16>
      %17 = tpu.transpose %16, [1, 0, 2] : vector<8x4x8xbf16> -> vector<4x8x8xbf16>
      %c0_14 = arith.constant 0 : index
      %c0_15 = arith.constant 0 : index
      %c0_16 = arith.constant 0 : index
      %c0_17 = arith.constant 0 : index
      %c0_18 = arith.constant 0 : index
      %18 = vector.load %arg5[%c0_14, %c0_15, %c0_16, %c0_17, %c0_18] : memref<1x8x1x4x8xbf16, #tpu.memory_space<vmem>>, vector<1x8x1x4x8xbf16>
      %19 = vector.shape_cast %18 : vector<1x8x1x4x8xbf16> to vector<8x4x8xbf16>
      %20 = tpu.transpose %19, [1, 0, 2] : vector<8x4x8xbf16> -> vector<4x8x8xbf16>
      "tpu.trace_start"() <{level = 10 : i32, message = "hqd,hkd->hqk"}> : () -> ()
      %cst = arith.constant dense<0.000000e+00> : vector<4x8x8xf32>
      %21 = tpu.matmul %14, %17, %cst {dimension_numbers = #tpu.dot_dimension_numbers<[2], [2], [1], [1], [0, 0, 0, 1, 1, 1], [0], [0]>} : vector<4x8x8xbf16>, vector<4x8x8xbf16>, vector<4x8x8xf32> -> vector<4x8x8xf32>
      "tpu.trace_stop"() : () -> ()
      %c0_19 = arith.constant 0 : index
      %c0_20 = arith.constant 0 : index
      %c0_21 = arith.constant 0 : index
      %22 = vector.load %arg6[%c0_19, %c0_20, %c0_21] : memref<1x8x1xf32, #tpu.memory_space<vmem>>, vector<1x8x1xf32>
      %23 = vector.shape_cast %22 : vector<1x8x1xf32> to vector<8x1xf32>
      %cst_22 = arith.constant 0.000000e+00 : f32
      %24 = vector.broadcast %cst_22 : f32 to vector<8x1xf32>
      %25 = arith.cmpf ogt, %23, %24 : vector<8x1xf32>
      %c0_23 = arith.constant 0 : index
      %c0_24 = arith.constant 0 : index
      %c0_25 = arith.constant 0 : index
      %26 = vector.load %arg7[%c0_23, %c0_24, %c0_25] : memref<1x1x8xf32, #tpu.memory_space<vmem>>, vector<1x1x8xf32>
      %27 = vector.shape_cast %26 : vector<1x1x8xf32> to vector<1x8xf32>
      %cst_26 = arith.constant 0.000000e+00 : f32
      %28 = vector.broadcast %cst_26 : f32 to vector<1x8xf32>
      %29 = arith.cmpf ogt, %27, %28 : vector<1x8xf32>
      %30 = vector.broadcast %25 : vector<8x1xi1> to vector<8x8xi1>
      %31 = vector.broadcast %29 : vector<1x8xi1> to vector<8x8xi1>
      %32 = arith.andi %30, %31 : vector<8x8xi1>
      %c8_i32_27 = arith.constant 8 : i32
      %33 = arith.muli %arg1, %c8_i32_27 : i32
      %34 = tpu.iota {dimensions = array<i32: 0>} : vector<8x8xi32>
      %35 = vector.broadcast %33 : i32 to vector<8x8xi32>
      %36 = arith.addi %35, %34 : vector<8x8xi32>
      %c8_i32_28 = arith.constant 8 : i32
      %37 = arith.muli %arg2, %c8_i32_28 : i32
      %38 = tpu.iota {dimensions = array<i32: 1>} : vector<8x8xi32>
      %39 = vector.broadcast %37 : i32 to vector<8x8xi32>
      %40 = arith.addi %39, %38 : vector<8x8xi32>
      %41 = arith.cmpi sge, %36, %40 : vector<8x8xi32>
      %42 = arith.andi %32, %41 : vector<8x8xi1>
      %cst_29 = arith.constant 0.000000e+00 : f32
      %cst_30 = arith.constant -1.000000e+30 : f32
      %43 = vector.broadcast %cst_29 : f32 to vector<8x8xf32>
      %44 = vector.broadcast %cst_30 : f32 to vector<8x8xf32>
      %45 = arith.select %42, %43, %44 : vector<8x8xi1>, vector<8x8xf32>
      %46 = vector.shape_cast %45 : vector<8x8xf32> to vector<1x8x8xf32>
      %47 = vector.broadcast %46 : vector<1x8x8xf32> to vector<4x8x8xf32>
      %48 = arith.addf %21, %47 : vector<4x8x8xf32>
      %c0_31 = arith.constant 0 : index
      %c0_32 = arith.constant 0 : index
      %c0_33 = arith.constant 0 : index
      %49 = vector.load %arg9[%c0_31, %c0_32, %c0_33] : memref<4x8x1xf32, #tpu.memory_space<vmem>>, vector<4x8x1xf32>
      %cst_34 = arith.constant dense<0xFF800000> : vector<4x8xf32>
      %50 = vector.multi_reduction <maximumf>, %48, %cst_34 [2] : vector<4x8x8xf32> to vector<4x8xf32>
      %51 = vector.shape_cast %50 : vector<4x8xf32> to vector<4x8x1xf32>
      %52 = arith.maximumf %49, %51 : vector<4x8x1xf32>
      %53 = arith.subf %49, %52 : vector<4x8x1xf32>
      %54 = math.exp %53 : vector<4x8x1xf32>
      %55 = vector.broadcast %52 : vector<4x8x1xf32> to vector<4x8x8xf32>
      %56 = arith.subf %48, %55 : vector<4x8x8xf32>
      %57 = math.exp %56 : vector<4x8x8xf32>
      %c0_35 = arith.constant 0 : index
      %c0_36 = arith.constant 0 : index
      %c0_37 = arith.constant 0 : index
      %58 = vector.load %arg10[%c0_35, %c0_36, %c0_37] : memref<4x8x1xf32, #tpu.memory_space<vmem>>, vector<4x8x1xf32>
      %59 = arith.mulf %54, %58 : vector<4x8x1xf32>
      %cst_38 = arith.constant dense<0.000000e+00> : vector<4x8xf32>
      %60 = vector.multi_reduction <add>, %57, %cst_38 [2] : vector<4x8x8xf32> to vector<4x8xf32>
      %61 = vector.shape_cast %60 : vector<4x8xf32> to vector<4x8x1xf32>
      %62 = arith.addf %59, %61 : vector<4x8x1xf32>
      %c0_39 = arith.constant 0 : index
      %c0_40 = arith.constant 0 : index
      %c0_41 = arith.constant 0 : index
      %63 = vector.load %arg10[%c0_39, %c0_40, %c0_41] : memref<4x8x1xf32, #tpu.memory_space<vmem>>, vector<4x8x1xf32>
      tpu.vector_store %arg10[%c0_39, %c0_40, %c0_41], %62 {strides = array<i32>} : memref<4x8x1xf32, #tpu.memory_space<vmem>>, vector<4x8x1xf32>,
      %c0_42 = arith.constant 0 : index
      %c0_43 = arith.constant 0 : index
      %c0_44 = arith.constant 0 : index
      %64 = vector.load %arg11[%c0_42, %c0_43, %c0_44] : memref<4x8x8xf32, #tpu.memory_space<vmem>>, vector<4x8x8xf32>
      %65 = vector.broadcast %54 : vector<4x8x1xf32> to vector<4x8x8xf32>
      %66 = arith.mulf %65, %64 : vector<4x8x8xf32>
      %67 = arith.truncf %57 : vector<4x8x8xf32> to vector<4x8x8xbf16>
      "tpu.trace_start"() <{level = 10 : i32, message = "hqk,hkd->hqd"}> : () -> ()
      %cst_45 = arith.constant dense<0.000000e+00> : vector<4x8x8xf32>
      %68 = tpu.matmul %67, %20, %cst_45 {dimension_numbers = #tpu.dot_dimension_numbers<[2], [1], [1], [2], [0, 0, 0, 1, 1, 2], [0], [0]>} : vector<4x8x8xbf16>, vector<4x8x8xbf16>, vector<4x8x8xf32> -> vector<4x8x8xf32>
      "tpu.trace_stop"() : () -> ()
      %69 = arith.addf %66, %68 : vector<4x8x8xf32>
      %c0_46 = arith.constant 0 : index
      %c0_47 = arith.constant 0 : index
      %c0_48 = arith.constant 0 : index
      %70 = vector.load %arg11[%c0_46, %c0_47, %c0_48] : memref<4x8x8xf32, #tpu.memory_space<vmem>>, vector<4x8x8xf32>
      tpu.vector_store %arg11[%c0_46, %c0_47, %c0_48], %69 {strides = array<i32>} : memref<4x8x8xf32, #tpu.memory_space<vmem>>, vector<4x8x8xf32>,
      %c0_49 = arith.constant 0 : index
      %c0_50 = arith.constant 0 : index
      %c0_51 = arith.constant 0 : index
      %71 = vector.load %arg9[%c0_49, %c0_50, %c0_51] : memref<4x8x1xf32, #tpu.memory_space<vmem>>, vector<4x8x1xf32>
      tpu.vector_store %arg9[%c0_49, %c0_50, %c0_51], %52 {strides = array<i32>} : memref<4x8x1xf32, #tpu.memory_space<vmem>>, vector<4x8x1xf32>,
    } else {
    }
    %c0_i32_3 = arith.constant 0 : i32
    %9 = arith.cmpi eq, %arg2, %c0_i32_3 : i32
    %10 = arith.extui %9 : i1 to i32
    %c0_i32_4 = arith.constant 0 : i32
    %11 = arith.cmpi ne, %10, %c0_i32_4 : i32
    scf.if %11 {
      %c0 = arith.constant 0 : index
      %c0_5 = arith.constant 0 : index
      %c0_6 = arith.constant 0 : index
      %12 = vector.load %arg11[%c0, %c0_5, %c0_6] : memref<4x8x8xf32, #tpu.memory_space<vmem>>, vector<4x8x8xf32>
      %c0_7 = arith.constant 0 : index
      %c0_8 = arith.constant 0 : index
      %c0_9 = arith.constant 0 : index
      %13 = vector.load %arg10[%c0_7, %c0_8, %c0_9] : memref<4x8x1xf32, #tpu.memory_space<vmem>>, vector<4x8x1xf32>
      %14 = tpu.reciprocal %13 {approx = true} : vector<4x8x1xf32> -> vector<4x8x1xf32>
      %15 = vector.broadcast %14 : vector<4x8x1xf32> to vector<4x8x8xf32>
      %16 = arith.mulf %12, %15 : vector<4x8x8xf32>
      %17 = tpu.transpose %16, [1, 0, 2] : vector<4x8x8xf32> -> vector<8x4x8xf32>
      %18 = arith.truncf %17 : vector<8x4x8xf32> to vector<8x4x8xbf16>
      %c0_10 = arith.constant 0 : index
      %c0_11 = arith.constant 0 : index
      %c0_12 = arith.constant 0 : index
      %c0_13 = arith.constant 0 : index
      %19 = vector.load %arg8[%c0_10, %c0_11, %c0_12, %c0_13] : memref<1x8x4x8xbf16, #tpu.memory_space<vmem>>, vector<1x8x4x8xbf16>
      %20 = vector.shape_cast %19 : vector<1x8x4x8xbf16> to vector<8x4x8xbf16>
      %21 = vector.shape_cast %18 : vector<8x4x8xbf16> to vector<1x8x4x8xbf16>
      tpu.vector_store %arg8[%c0_10, %c0_11, %c0_12, %c0_13], %21 {strides = array<i32>} : memref<1x8x4x8xbf16, #tpu.memory_space<vmem>>, vector<1x8x4x8xbf16>,
    } else {
    }
    return
  }
  func.func @transform_0(%arg0: i32, %arg1: i32, %arg2: i32) -> (i32, i32, i32, i32, i32) {
    %c0_i32 = arith.constant 0 : i32
    %c0_i32_0 = arith.constant 0 : i32
    %c0_i32_1 = arith.constant 0 : i32
    %c0_i32_2 = arith.constant 0 : i32
    return %arg0, %arg1, %c0_i32, %c0_i32_0, %c0_i32_1 : i32, i32, i32, i32, i32
  }
  func.func @transform_1(%arg0: i32, %arg1: i32, %arg2: i32) -> (i32, i32, i32, i32, i32) {
    %c1_i32 = arith.constant 1 : i32
    %c0_i32 = arith.constant 0 : i32
    %c0_i32_0 = arith.constant 0 : i32
    %c0_i32_1 = arith.constant 0 : i32
    return %arg0, %arg2, %c1_i32, %c0_i32, %c0_i32_0 : i32, i32, i32, i32, i32
  }
  func.func @transform_2(%arg0: i32, %arg1: i32, %arg2: i32) -> (i32, i32, i32, i32, i32) {
    %c2_i32 = arith.constant 2 : i32
    %c0_i32 = arith.constant 0 : i32
    %c0_i32_0 = arith.constant 0 : i32
    %c0_i32_1 = arith.constant 0 : i32
    return %arg0, %arg2, %c2_i32, %c0_i32, %c0_i32_0 : i32, i32, i32, i32, i32
  }
  func.func @transform_3(%arg0: i32, %arg1: i32, %arg2: i32) -> (i32, i32, i32) {
    %c0_i32 = arith.constant 0 : i32
    %c0_i32_0 = arith.constant 0 : i32
    return %arg0, %arg1, %c0_i32 : i32, i32, i32
  }
  func.func @transform_4(%arg0: i32, %arg1: i32, %arg2: i32) -> (i32, i32, i32) {
    %c0_i32 = arith.constant 0 : i32
    %c0_i32_0 = arith.constant 0 : i32
    return %arg0, %c0_i32, %arg2 : i32, i32, i32
  }
  func.func @transform_5(%arg0: i32, %arg1: i32, %arg2: i32) -> (i32, i32, i32, i32) {
    %c0_i32 = arith.constant 0 : i32
    %c0_i32_0 = arith.constant 0 : i32
    %c0_i32_1 = arith.constant 0 : i32
    return %arg0, %arg1, %c0_i32, %c0_i32_0 : i32, i32, i32, i32
  }
}

module attributes {stable_mosaic.version = 11 : i64} {
  func.func @linear_ln_kernel(%arg0: i32, %arg1: i32, %arg2: memref<16x32xbf16, #tpu.memory_space<vmem>>, %arg3: memref<32x32xbf16, #tpu.memory_space<vmem>>, %arg4: memref<1x32xf32, #tpu.memory_space<vmem>>, %arg5: memref<16x32xbf16, #tpu.memory_space<vmem>>, %arg6: memref<1x32xf32, #tpu.memory_space<vmem>>, %arg7: memref<1x32xf32, #tpu.memory_space<vmem>>, %arg8: memref<16x32xbf16, #tpu.memory_space<vmem>>, %arg9: memref<16x32xf32, #tpu.memory_space<vmem>>) attributes {dimension_semantics = [#tpu.dimension_semantics<parallel>, #tpu.dimension_semantics<arbitrary>], iteration_bounds = array<i64: 1, 1>, scalar_prefetch = 0 : i64, scratch_operands = 1 : i64, tpu.core_type = #tpu.core_type<tc>, window_params = [{transform_indices = @transform_0, window_bounds = array<i64: 16, 32>}, {transform_indices = @transform_1, window_bounds = array<i64: 32, 32>}, {pipeline_mode = #tpu.pipeline_mode<synchronous>, transform_indices = @transform_2, window_bounds = array<i64: 1, 32>}, {transform_indices = @transform_3, window_bounds = array<i64: 16, 32>}, {pipeline_mode = #tpu.pipeline_mode<synchronous>, transform_indices = @transform_4, window_bounds = array<i64: 1, 32>}, {pipeline_mode = #tpu.pipeline_mode<synchronous>, transform_indices = @transform_5, window_bounds = array<i64: 1, 32>}, {transform_indices = @transform_6, window_bounds = array<i64: 16, 32>}]} {
    %c0_i32 = arith.constant 0 : i32
    %0 = arith.cmpi eq, %arg1, %c0_i32 : i32
    %1 = arith.extui %0 : i1 to i32
    %c0_i32_0 = arith.constant 0 : i32
    %2 = arith.cmpi ne, %1, %c0_i32_0 : i32
    scf.if %2 {
      %cst_10 = arith.constant 0.000000e+00 : f32
      %12 = vector.broadcast %cst_10 : f32 to vector<16x32xf32>
      %c0_11 = arith.constant 0 : index
      %c0_12 = arith.constant 0 : index
      %13 = vector.load %arg9[%c0_11, %c0_12] : memref<16x32xf32, #tpu.memory_space<vmem>>, vector<16x32xf32>
      tpu.vector_store %arg9[%c0_11, %c0_12], %12 {strides = array<i32>} : memref<16x32xf32, #tpu.memory_space<vmem>>, vector<16x32xf32>,
    } else {
    }
    %c0 = arith.constant 0 : index
    %c0_1 = arith.constant 0 : index
    %3 = vector.load %arg9[%c0, %c0_1] : memref<16x32xf32, #tpu.memory_space<vmem>>, vector<16x32xf32>
    %c0_2 = arith.constant 0 : index
    %c0_3 = arith.constant 0 : index
    %4 = vector.load %arg2[%c0_2, %c0_3] : memref<16x32xbf16, #tpu.memory_space<vmem>>, vector<16x32xbf16>
    %c0_4 = arith.constant 0 : index
    %c0_5 = arith.constant 0 : index
    %5 = vector.load %arg3[%c0_4, %c0_5] : memref<32x32xbf16, #tpu.memory_space<vmem>>, vector<32x32xbf16>
    %cst = arith.constant dense<0.000000e+00> : vector<16x32xf32>
    %6 = tpu.matmul %4, %5, %cst {dimension_numbers = #tpu.dot_dimension_numbers<[1], [0], [0], [1], [0, 0, 1, 1], [], []>} : vector<16x32xbf16>, vector<32x32xbf16>, vector<16x32xf32> -> vector<16x32xf32>
    %7 = arith.addf %3, %6 : vector<16x32xf32>
    %c0_6 = arith.constant 0 : index
    %c0_7 = arith.constant 0 : index
    %8 = vector.load %arg9[%c0_6, %c0_7] : memref<16x32xf32, #tpu.memory_space<vmem>>, vector<16x32xf32>
    tpu.vector_store %arg9[%c0_6, %c0_7], %7 {strides = array<i32>} : memref<16x32xf32, #tpu.memory_space<vmem>>, vector<16x32xf32>,
    %c0_i32_8 = arith.constant 0 : i32
    %9 = arith.cmpi eq, %arg1, %c0_i32_8 : i32
    %10 = arith.extui %9 : i1 to i32
    %c0_i32_9 = arith.constant 0 : i32
    %11 = arith.cmpi ne, %10, %c0_i32_9 : i32
    scf.if %11 {
      %c0_10 = arith.constant 0 : index
      %c0_11 = arith.constant 0 : index
      %12 = vector.load %arg9[%c0_10, %c0_11] : memref<16x32xf32, #tpu.memory_space<vmem>>, vector<16x32xf32>
      %c0_12 = arith.constant 0 : index
      %c0_13 = arith.constant 0 : index
      %13 = vector.load %arg4[%c0_12, %c0_13] : memref<1x32xf32, #tpu.memory_space<vmem>>, vector<1x32xf32>
      %14 = vector.broadcast %13 : vector<1x32xf32> to vector<16x32xf32>
      %15 = arith.addf %12, %14 : vector<16x32xf32>
      %c0_14 = arith.constant 0 : index
      %c0_15 = arith.constant 0 : index
      %16 = vector.load %arg5[%c0_14, %c0_15] : memref<16x32xbf16, #tpu.memory_space<vmem>>, vector<16x32xbf16>
      %17 = arith.extf %16 : vector<16x32xbf16> to vector<16x32xf32>
      %18 = arith.addf %15, %17 : vector<16x32xf32>
      %cst_16 = arith.constant dense<0.000000e+00> : vector<16xf32>
      %19 = vector.multi_reduction <add>, %18, %cst_16 [1] : vector<16x32xf32> to vector<16xf32>
      %20 = vector.shape_cast %19 : vector<16xf32> to vector<16x1xf32>
      %cst_17 = arith.constant 3.200000e+01 : f32
      %21 = vector.broadcast %cst_17 : f32 to vector<16x1xf32>
      %22 = arith.divf %20, %21 : vector<16x1xf32>
      %23 = vector.broadcast %22 : vector<16x1xf32> to vector<16x32xf32>
      %24 = arith.subf %18, %23 : vector<16x32xf32>
      %25 = arith.mulf %24, %24 : vector<16x32xf32>
      %cst_18 = arith.constant dense<0.000000e+00> : vector<16xf32>
      %26 = vector.multi_reduction <add>, %25, %cst_18 [1] : vector<16x32xf32> to vector<16xf32>
      %27 = vector.shape_cast %26 : vector<16xf32> to vector<16x1xf32>
      %cst_19 = arith.constant 3.200000e+01 : f32
      %28 = vector.broadcast %cst_19 : f32 to vector<16x1xf32>
      %29 = arith.divf %27, %28 : vector<16x1xf32>
      %cst_20 = arith.constant 9.99999974E-6 : f32
      %30 = vector.broadcast %cst_20 : f32 to vector<16x1xf32>
      %31 = arith.addf %29, %30 : vector<16x1xf32>
      %32 = math.rsqrt %31 : vector<16x1xf32>
      %33 = vector.broadcast %32 : vector<16x1xf32> to vector<16x32xf32>
      %34 = arith.mulf %24, %33 : vector<16x32xf32>
      %c0_21 = arith.constant 0 : index
      %c0_22 = arith.constant 0 : index
      %35 = vector.load %arg6[%c0_21, %c0_22] : memref<1x32xf32, #tpu.memory_space<vmem>>, vector<1x32xf32>
      %36 = vector.broadcast %35 : vector<1x32xf32> to vector<16x32xf32>
      %37 = arith.mulf %34, %36 : vector<16x32xf32>
      %c0_23 = arith.constant 0 : index
      %c0_24 = arith.constant 0 : index
      %38 = vector.load %arg7[%c0_23, %c0_24] : memref<1x32xf32, #tpu.memory_space<vmem>>, vector<1x32xf32>
      %39 = vector.broadcast %38 : vector<1x32xf32> to vector<16x32xf32>
      %40 = arith.addf %37, %39 : vector<16x32xf32>
      %41 = arith.truncf %40 : vector<16x32xf32> to vector<16x32xbf16>
      %c0_25 = arith.constant 0 : index
      %c0_26 = arith.constant 0 : index
      %42 = vector.load %arg8[%c0_25, %c0_26] : memref<16x32xbf16, #tpu.memory_space<vmem>>, vector<16x32xbf16>
      tpu.vector_store %arg8[%c0_25, %c0_26], %41 {strides = array<i32>} : memref<16x32xbf16, #tpu.memory_space<vmem>>, vector<16x32xbf16>,
    } else {
    }
    return
  }
  func.func @transform_0(%arg0: i32, %arg1: i32) -> (i32, i32) {
    %c0_i32 = arith.constant 0 : i32
    return %arg0, %arg1 : i32, i32
  }
  func.func @transform_1(%arg0: i32, %arg1: i32) -> (i32, i32) {
    %c0_i32 = arith.constant 0 : i32
    %c0_i32_0 = arith.constant 0 : i32
    return %arg1, %c0_i32 : i32, i32
  }
  func.func @transform_2(%arg0: i32, %arg1: i32) -> (i32, i32) {
    %c0_i32 = arith.constant 0 : i32
    %c0_i32_0 = arith.constant 0 : i32
    %c0_i32_1 = arith.constant 0 : i32
    return %c0_i32, %c0_i32_0 : i32, i32
  }
  func.func @transform_3(%arg0: i32, %arg1: i32) -> (i32, i32) {
    %c0_i32 = arith.constant 0 : i32
    %c0_i32_0 = arith.constant 0 : i32
    return %arg0, %c0_i32 : i32, i32
  }
  func.func @transform_4(%arg0: i32, %arg1: i32) -> (i32, i32) {
    %c0_i32 = arith.constant 0 : i32
    %c0_i32_0 = arith.constant 0 : i32
    %c0_i32_1 = arith.constant 0 : i32
    return %c0_i32, %c0_i32_0 : i32, i32
  }
  func.func @transform_5(%arg0: i32, %arg1: i32) -> (i32, i32) {
    %c0_i32 = arith.constant 0 : i32
    %c0_i32_0 = arith.constant 0 : i32
    %c0_i32_1 = arith.constant 0 : i32
    return %c0_i32, %c0_i32_0 : i32, i32
  }
  func.func @transform_6(%arg0: i32, %arg1: i32) -> (i32, i32) {
    %c0_i32 = arith.constant 0 : i32
    %c0_i32_0 = arith.constant 0 : i32
    return %arg0, %c0_i32 : i32, i32
  }
}

module attributes {stable_mosaic.version = 11 : i64} {
  func.func @linear_kernel(%arg0: i32, %arg1: i32, %arg2: i32, %arg3: memref<16x32xbf16, #tpu.memory_space<vmem>>, %arg4: memref<32x32xbf16, #tpu.memory_space<vmem>>, %arg5: memref<1x32xf32, #tpu.memory_space<vmem>>, %arg6: memref<16x32xbf16, #tpu.memory_space<vmem>>, %arg7: memref<16x32xf32, #tpu.memory_space<vmem>>) attributes {dimension_semantics = [#tpu.dimension_semantics<parallel>, #tpu.dimension_semantics<parallel>, #tpu.dimension_semantics<arbitrary>], iteration_bounds = array<i64: 1, 1, 1>, scalar_prefetch = 0 : i64, scratch_operands = 1 : i64, tpu.core_type = #tpu.core_type<tc>, window_params = [{transform_indices = @transform_0, window_bounds = array<i64: 16, 32>}, {transform_indices = @transform_1, window_bounds = array<i64: 32, 32>}, {transform_indices = @transform_2, window_bounds = array<i64: 1, 32>}, {transform_indices = @transform_3, window_bounds = array<i64: 16, 32>}]} {
    %c0_i32 = arith.constant 0 : i32
    %0 = arith.cmpi eq, %arg2, %c0_i32 : i32
    %1 = arith.extui %0 : i1 to i32
    %c0_i32_0 = arith.constant 0 : i32
    %2 = arith.cmpi ne, %1, %c0_i32_0 : i32
    scf.if %2 {
      %cst_10 = arith.constant 0.000000e+00 : f32
      %12 = vector.broadcast %cst_10 : f32 to vector<16x32xf32>
      %c0_11 = arith.constant 0 : index
      %c0_12 = arith.constant 0 : index
      %13 = vector.load %arg7[%c0_11, %c0_12] : memref<16x32xf32, #tpu.memory_space<vmem>>, vector<16x32xf32>
      tpu.vector_store %arg7[%c0_11, %c0_12], %12 {strides = array<i32>} : memref<16x32xf32, #tpu.memory_space<vmem>>, vector<16x32xf32>,
    } else {
    }
    %c0 = arith.constant 0 : index
    %c0_1 = arith.constant 0 : index
    %3 = vector.load %arg7[%c0, %c0_1] : memref<16x32xf32, #tpu.memory_space<vmem>>, vector<16x32xf32>
    %c0_2 = arith.constant 0 : index
    %c0_3 = arith.constant 0 : index
    %4 = vector.load %arg3[%c0_2, %c0_3] : memref<16x32xbf16, #tpu.memory_space<vmem>>, vector<16x32xbf16>
    %c0_4 = arith.constant 0 : index
    %c0_5 = arith.constant 0 : index
    %5 = vector.load %arg4[%c0_4, %c0_5] : memref<32x32xbf16, #tpu.memory_space<vmem>>, vector<32x32xbf16>
    %cst = arith.constant dense<0.000000e+00> : vector<16x32xf32>
    %6 = tpu.matmul %4, %5, %cst {dimension_numbers = #tpu.dot_dimension_numbers<[1], [0], [0], [1], [0, 0, 1, 1], [], []>} : vector<16x32xbf16>, vector<32x32xbf16>, vector<16x32xf32> -> vector<16x32xf32>
    %7 = arith.addf %3, %6 : vector<16x32xf32>
    %c0_6 = arith.constant 0 : index
    %c0_7 = arith.constant 0 : index
    %8 = vector.load %arg7[%c0_6, %c0_7] : memref<16x32xf32, #tpu.memory_space<vmem>>, vector<16x32xf32>
    tpu.vector_store %arg7[%c0_6, %c0_7], %7 {strides = array<i32>} : memref<16x32xf32, #tpu.memory_space<vmem>>, vector<16x32xf32>,
    %c0_i32_8 = arith.constant 0 : i32
    %9 = arith.cmpi eq, %arg2, %c0_i32_8 : i32
    %10 = arith.extui %9 : i1 to i32
    %c0_i32_9 = arith.constant 0 : i32
    %11 = arith.cmpi ne, %10, %c0_i32_9 : i32
    scf.if %11 {
      %c0_10 = arith.constant 0 : index
      %c0_11 = arith.constant 0 : index
      %12 = vector.load %arg7[%c0_10, %c0_11] : memref<16x32xf32, #tpu.memory_space<vmem>>, vector<16x32xf32>
      %c0_12 = arith.constant 0 : index
      %c0_13 = arith.constant 0 : index
      %13 = vector.load %arg5[%c0_12, %c0_13] : memref<1x32xf32, #tpu.memory_space<vmem>>, vector<1x32xf32>
      %14 = vector.broadcast %13 : vector<1x32xf32> to vector<16x32xf32>
      %15 = arith.addf %12, %14 : vector<16x32xf32>
      %16 = arith.truncf %15 : vector<16x32xf32> to vector<16x32xbf16>
      %c0_14 = arith.constant 0 : index
      %c0_15 = arith.constant 0 : index
      %17 = vector.load %arg6[%c0_14, %c0_15] : memref<16x32xbf16, #tpu.memory_space<vmem>>, vector<16x32xbf16>
      tpu.vector_store %arg6[%c0_14, %c0_15], %16 {strides = array<i32>} : memref<16x32xbf16, #tpu.memory_space<vmem>>, vector<16x32xbf16>,
    } else {
    }
    return
  }
  func.func @transform_0(%arg0: i32, %arg1: i32, %arg2: i32) -> (i32, i32) {
    %c0_i32 = arith.constant 0 : i32
    return %arg0, %arg2 : i32, i32
  }
  func.func @transform_1(%arg0: i32, %arg1: i32, %arg2: i32) -> (i32, i32) {
    %c0_i32 = arith.constant 0 : i32
    return %arg2, %arg1 : i32, i32
  }
  func.func @transform_2(%arg0: i32, %arg1: i32, %arg2: i32) -> (i32, i32) {
    %c0_i32 = arith.constant 0 : i32
    %c0_i32_0 = arith.constant 0 : i32
    return %c0_i32, %arg1 : i32, i32
  }
  func.func @transform_3(%arg0: i32, %arg1: i32, %arg2: i32) -> (i32, i32) {
    %c0_i32 = arith.constant 0 : i32
    return %arg0, %arg1 : i32, i32
  }
}

module attributes {stable_mosaic.version = 11 : i64} {
  func.func @ffn_ln_kernel(%arg0: i32, %arg1: i32, %arg2: memref<16x32xbf16, #tpu.memory_space<vmem>>, %arg3: memref<32x64xbf16, #tpu.memory_space<vmem>>, %arg4: memref<1x64xf32, #tpu.memory_space<vmem>>, %arg5: memref<64x32xbf16, #tpu.memory_space<vmem>>, %arg6: memref<1x32xf32, #tpu.memory_space<vmem>>, %arg7: memref<1x32xf32, #tpu.memory_space<vmem>>, %arg8: memref<1x32xf32, #tpu.memory_space<vmem>>, %arg9: memref<16x32xbf16, #tpu.memory_space<vmem>>, %arg10: memref<16x32xf32, #tpu.memory_space<vmem>>) attributes {dimension_semantics = [#tpu.dimension_semantics<parallel>, #tpu.dimension_semantics<arbitrary>], iteration_bounds = array<i64: 1, 1>, scalar_prefetch = 0 : i64, scratch_operands = 1 : i64, tpu.core_type = #tpu.core_type<tc>, window_params = [{transform_indices = @transform_0, window_bounds = array<i64: 16, 32>}, {transform_indices = @transform_1, window_bounds = array<i64: 32, 64>}, {transform_indices = @transform_2, window_bounds = array<i64: 1, 64>}, {transform_indices = @transform_3, window_bounds = array<i64: 64, 32>}, {pipeline_mode = #tpu.pipeline_mode<synchronous>, transform_indices = @transform_4, window_bounds = array<i64: 1, 32>}, {pipeline_mode = #tpu.pipeline_mode<synchronous>, transform_indices = @transform_5, window_bounds = array<i64: 1, 32>}, {pipeline_mode = #tpu.pipeline_mode<synchronous>, transform_indices = @transform_6, window_bounds = array<i64: 1, 32>}, {transform_indices = @transform_7, window_bounds = array<i64: 16, 32>}]} {
    %c0_i32 = arith.constant 0 : i32
    %0 = arith.cmpi eq, %arg1, %c0_i32 : i32
    %1 = arith.extui %0 : i1 to i32
    %c0_i32_0 = arith.constant 0 : i32
    %2 = arith.cmpi ne, %1, %c0_i32_0 : i32
    scf.if %2 {
      %cst_16 = arith.constant 0.000000e+00 : f32
      %20 = vector.broadcast %cst_16 : f32 to vector<16x32xf32>
      %c0_17 = arith.constant 0 : index
      %c0_18 = arith.constant 0 : index
      %21 = vector.load %arg10[%c0_17, %c0_18] : memref<16x32xf32, #tpu.memory_space<vmem>>, vector<16x32xf32>
      tpu.vector_store %arg10[%c0_17, %c0_18], %20 {strides = array<i32>} : memref<16x32xf32, #tpu.memory_space<vmem>>, vector<16x32xf32>,
    } else {
    }
    %c0 = arith.constant 0 : index
    %c0_1 = arith.constant 0 : index
    %3 = vector.load %arg2[%c0, %c0_1] : memref<16x32xbf16, #tpu.memory_space<vmem>>, vector<16x32xbf16>
    %c0_2 = arith.constant 0 : index
    %c0_3 = arith.constant 0 : index
    %4 = vector.load %arg3[%c0_2, %c0_3] : memref<32x64xbf16, #tpu.memory_space<vmem>>, vector<32x64xbf16>
    %cst = arith.constant dense<0.000000e+00> : vector<16x64xf32>
    %5 = tpu.matmul %3, %4, %cst {dimension_numbers = #tpu.dot_dimension_numbers<[1], [0], [0], [1], [0, 0, 1, 1], [], []>} : vector<16x32xbf16>, vector<32x64xbf16>, vector<16x64xf32> -> vector<16x64xf32>
    %c0_4 = arith.constant 0 : index
    %c0_5 = arith.constant 0 : index
    %6 = vector.load %arg4[%c0_4, %c0_5] : memref<1x64xf32, #tpu.memory_space<vmem>>, vector<1x64xf32>
    %7 = vector.broadcast %6 : vector<1x64xf32> to vector<16x64xf32>
    %8 = arith.addf %5, %7 : vector<16x64xf32>
    %cst_6 = arith.constant 0.000000e+00 : f32
    %9 = vector.broadcast %cst_6 : f32 to vector<16x64xf32>
    %10 = arith.maximumf %8, %9 : vector<16x64xf32>
    %c0_7 = arith.constant 0 : index
    %c0_8 = arith.constant 0 : index
    %11 = vector.load %arg10[%c0_7, %c0_8] : memref<16x32xf32, #tpu.memory_space<vmem>>, vector<16x32xf32>
    %12 = arith.truncf %10 : vector<16x64xf32> to vector<16x64xbf16>
    %c0_9 = arith.constant 0 : index
    %c0_10 = arith.constant 0 : index
    %13 = vector.load %arg5[%c0_9, %c0_10] : memref<64x32xbf16, #tpu.memory_space<vmem>>, vector<64x32xbf16>
    %cst_11 = arith.constant dense<0.000000e+00> : vector<16x32xf32>
    %14 = tpu.matmul %12, %13, %cst_11 {dimension_numbers = #tpu.dot_dimension_numbers<[1], [0], [0], [1], [0, 0, 1, 1], [], []>} : vector<16x64xbf16>, vector<64x32xbf16>, vector<16x32xf32> -> vector<16x32xf32>
    %15 = arith.addf %11, %14 : vector<16x32xf32>
    %c0_12 = arith.constant 0 : index
    %c0_13 = arith.constant 0 : index
    %16 = vector.load %arg10[%c0_12, %c0_13] : memref<16x32xf32, #tpu.memory_space<vmem>>, vector<16x32xf32>
    tpu.vector_store %arg10[%c0_12, %c0_13], %15 {strides = array<i32>} : memref<16x32xf32, #tpu.memory_space<vmem>>, vector<16x32xf32>,
    %c0_i32_14 = arith.constant 0 : i32
    %17 = arith.cmpi eq, %arg1, %c0_i32_14 : i32
    %18 = arith.extui %17 : i1 to i32
    %c0_i32_15 = arith.constant 0 : i32
    %19 = arith.cmpi ne, %18, %c0_i32_15 : i32
    scf.if %19 {
      %c0_16 = arith.constant 0 : index
      %c0_17 = arith.constant 0 : index
      %20 = vector.load %arg10[%c0_16, %c0_17] : memref<16x32xf32, #tpu.memory_space<vmem>>, vector<16x32xf32>
      %c0_18 = arith.constant 0 : index
      %c0_19 = arith.constant 0 : index
      %21 = vector.load %arg6[%c0_18, %c0_19] : memref<1x32xf32, #tpu.memory_space<vmem>>, vector<1x32xf32>
      %22 = vector.broadcast %21 : vector<1x32xf32> to vector<16x32xf32>
      %23 = arith.addf %20, %22 : vector<16x32xf32>
      %c0_20 = arith.constant 0 : index
      %c0_21 = arith.constant 0 : index
      %24 = vector.load %arg2[%c0_20, %c0_21] : memref<16x32xbf16, #tpu.memory_space<vmem>>, vector<16x32xbf16>
      %25 = arith.extf %24 : vector<16x32xbf16> to vector<16x32xf32>
      %26 = arith.addf %23, %25 : vector<16x32xf32>
      %cst_22 = arith.constant dense<0.000000e+00> : vector<16xf32>
      %27 = vector.multi_reduction <add>, %26, %cst_22 [1] : vector<16x32xf32> to vector<16xf32>
      %28 = vector.shape_cast %27 : vector<16xf32> to vector<16x1xf32>
      %cst_23 = arith.constant 3.200000e+01 : f32
      %29 = vector.broadcast %cst_23 : f32 to vector<16x1xf32>
      %30 = arith.divf %28, %29 : vector<16x1xf32>
      %31 = vector.broadcast %30 : vector<16x1xf32> to vector<16x32xf32>
      %32 = arith.subf %26, %31 : vector<16x32xf32>
      %33 = arith.mulf %32, %32 : vector<16x32xf32>
      %cst_24 = arith.constant dense<0.000000e+00> : vector<16xf32>
      %34 = vector.multi_reduction <add>, %33, %cst_24 [1] : vector<16x32xf32> to vector<16xf32>
      %35 = vector.shape_cast %34 : vector<16xf32> to vector<16x1xf32>
      %cst_25 = arith.constant 3.200000e+01 : f32
      %36 = vector.broadcast %cst_25 : f32 to vector<16x1xf32>
      %37 = arith.divf %35, %36 : vector<16x1xf32>
      %cst_26 = arith.constant 9.99999974E-6 : f32
      %38 = vector.broadcast %cst_26 : f32 to vector<16x1xf32>
      %39 = arith.addf %37, %38 : vector<16x1xf32>
      %40 = math.rsqrt %39 : vector<16x1xf32>
      %41 = vector.broadcast %40 : vector<16x1xf32> to vector<16x32xf32>
      %42 = arith.mulf %32, %41 : vector<16x32xf32>
      %c0_27 = arith.constant 0 : index
      %c0_28 = arith.constant 0 : index
      %43 = vector.load %arg7[%c0_27, %c0_28] : memref<1x32xf32, #tpu.memory_space<vmem>>, vector<1x32xf32>
      %44 = vector.broadcast %43 : vector<1x32xf32> to vector<16x32xf32>
      %45 = arith.mulf %42, %44 : vector<16x32xf32>
      %c0_29 = arith.constant 0 : index
      %c0_30 = arith.constant 0 : index
      %46 = vector.load %arg8[%c0_29, %c0_30] : memref<1x32xf32, #tpu.memory_space<vmem>>, vector<1x32xf32>
      %47 = vector.broadcast %46 : vector<1x32xf32> to vector<16x32xf32>
      %48 = arith.addf %45, %47 : vector<16x32xf32>
      %49 = arith.truncf %48 : vector<16x32xf32> to vector<16x32xbf16>
      %c0_31 = arith.constant 0 : index
      %c0_32 = arith.constant 0 : index
      %50 = vector.load %arg9[%c0_31, %c0_32] : memref<16x32xbf16, #tpu.memory_space<vmem>>, vector<16x32xbf16>
      tpu.vector_store %arg9[%c0_31, %c0_32], %49 {strides = array<i32>} : memref<16x32xbf16, #tpu.memory_space<vmem>>, vector<16x32xbf16>,
    } else {
    }
    return
  }
  func.func @transform_0(%arg0: i32, %arg1: i32) -> (i32, i32) {
    %c0_i32 = arith.constant 0 : i32
    %c0_i32_0 = arith.constant 0 : i32
    return %arg0, %c0_i32 : i32, i32
  }
  func.func @transform_1(%arg0: i32, %arg1: i32) -> (i32, i32) {
    %c0_i32 = arith.constant 0 : i32
    %c0_i32_0 = arith.constant 0 : i32
    return %c0_i32, %arg1 : i32, i32
  }
  func.func @transform_2(%arg0: i32, %arg1: i32) -> (i32, i32) {
    %c0_i32 = arith.constant 0 : i32
    %c0_i32_0 = arith.constant 0 : i32
    return %c0_i32, %arg1 : i32, i32
  }
  func.func @transform_3(%arg0: i32, %arg1: i32) -> (i32, i32) {
    %c0_i32 = arith.constant 0 : i32
    %c0_i32_0 = arith.constant 0 : i32
    return %arg1, %c0_i32 : i32, i32
  }
  func.func @transform_4(%arg0: i32, %arg1: i32) -> (i32, i32) {
    %c0_i32 = arith.constant 0 : i32
    %c0_i32_0 = arith.constant 0 : i32
    %c0_i32_1 = arith.constant 0 : i32
    return %c0_i32, %c0_i32_0 : i32, i32
  }
  func.func @transform_5(%arg0: i32, %arg1: i32) -> (i32, i32) {
    %c0_i32 = arith.constant 0 : i32
    %c0_i32_0 = arith.constant 0 : i32
    %c0_i32_1 = arith.constant 0 : i32
    return %c0_i32, %c0_i32_0 : i32, i32
  }
  func.func @transform_6(%arg0: i32, %arg1: i32) -> (i32, i32) {
    %c0_i32 = arith.constant 0 : i32
    %c0_i32_0 = arith.constant 0 : i32
    %c0_i32_1 = arith.constant 0 : i32
    return %c0_i32, %c0_i32_0 : i32, i32
  }
  func.func @transform_7(%arg0: i32, %arg1: i32) -> (i32, i32) {
    %c0_i32 = arith.constant 0 : i32
    %c0_i32_0 = arith.constant 0 : i32
    return %arg0, %c0_i32 : i32, i32
  }
}

module attributes {stable_mosaic.version = 11 : i64} {
  func.func @attn_kernel(%arg0: i32, %arg1: i32, %arg2: i32, %arg3: memref<1x8x1x4x8xbf16, #tpu.memory_space<vmem>>, %arg4: memref<1x8x1x4x8xbf16, #tpu.memory_space<vmem>>, %arg5: memref<1x8x1x4x8xbf16, #tpu.memory_space<vmem>>, %arg6: memref<1x8x1xf32, #tpu.memory_space<vmem>>, %arg7: memref<1x1x8xf32, #tpu.memory_space<vmem>>, %arg8: memref<1x8x4x8xbf16, #tpu.memory_space<vmem>>, %arg9: memref<4x8x1xf32, #tpu.memory_space<vmem>>, %arg10: memref<4x8x1xf32, #tpu.memory_space<vmem>>, %arg11: memref<4x8x8xf32, #tpu.memory_space<vmem>>) attributes {dimension_semantics = [#tpu.dimension_semantics<parallel>, #tpu.dimension_semantics<parallel>, #tpu.dimension_semantics<arbitrary>], iteration_bounds = array<i64: 2, 1, 1>, scalar_prefetch = 0 : i64, scratch_operands = 3 : i64, tpu.core_type = #tpu.core_type<tc>, window_params = [{transform_indices = @transform_0, window_bounds = array<i64: 1, 8, 1, 4, 8>}, {transform_indices = @transform_1, window_bounds = array<i64: 1, 8, 1, 4, 8>}, {transform_indices = @transform_2, window_bounds = array<i64: 1, 8, 1, 4, 8>}, {transform_indices = @transform_3, window_bounds = array<i64: 1, 8, 1>}, {transform_indices = @transform_4, window_bounds = array<i64: 1, 1, 8>}, {transform_indices = @transform_5, window_bounds = array<i64: 1, 8, 4, 8>}]} {
    %c0_i32 = arith.constant 0 : i32
    %0 = arith.cmpi eq, %arg2, %c0_i32 : i32
    %1 = arith.extui %0 : i1 to i32
    %c0_i32_0 = arith.constant 0 : i32
    %2 = arith.cmpi ne, %1, %c0_i32_0 : i32
    scf.if %2 {
      %cst_48 = arith.constant -1.000000e+30 : f32
      %56 = vector.broadcast %cst_48 : f32 to vector<4x8x1xf32>
      %c0_49 = arith.constant 0 : index
      %c0_50 = arith.constant 0 : index
      %c0_51 = arith.constant 0 : index
      %57 = vector.load %arg9[%c0_49, %c0_50, %c0_51] : memref<4x8x1xf32, #tpu.memory_space<vmem>>, vector<4x8x1xf32>
      tpu.vector_store %arg9[%c0_49, %c0_50, %c0_51], %56 {strides = array<i32>} : memref<4x8x1xf32, #tpu.memory_space<vmem>>, vector<4x8x1xf32>,
      %cst_52 = arith.constant 0.000000e+00 : f32
      %58 = vector.broadcast %cst_52 : f32 to vector<4x8x1xf32>
      %c0_53 = arith.constant 0 : index
      %c0_54 = arith.constant 0 : index
      %c0_55 = arith.constant 0 : index
      %59 = vector.load %arg10[%c0_53, %c0_54, %c0_55] : memref<4x8x1xf32, #tpu.memory_space<vmem>>, vector<4x8x1xf32>
      tpu.vector_store %arg10[%c0_53, %c0_54, %c0_55], %58 {strides = array<i32>} : memref<4x8x1xf32, #tpu.memory_space<vmem>>, vector<4x8x1xf32>,
      %cst_56 = arith.constant 0.000000e+00 : f32
      %60 = vector.broadcast %cst_56 : f32 to vector<4x8x8xf32>
      %c0_57 = arith.constant 0 : index
      %c0_58 = arith.constant 0 : index
      %c0_59 = arith.constant 0 : index
      %61 = vector.load %arg11[%c0_57, %c0_58, %c0_59] : memref<4x8x8xf32, #tpu.memory_space<vmem>>, vector<4x8x8xf32>
      tpu.vector_store %arg11[%c0_57, %c0_58, %c0_59], %60 {strides = array<i32>} : memref<4x8x8xf32, #tpu.memory_space<vmem>>, vector<4x8x8xf32>,
    } else {
    }
    %c0 = arith.constant 0 : index
    %c0_1 = arith.constant 0 : index
    %c0_2 = arith.constant 0 : index
    %c0_3 = arith.constant 0 : index
    %c0_4 = arith.constant 0 : index
    %3 = vector.load %arg3[%c0, %c0_1, %c0_2, %c0_3, %c0_4] : memref<1x8x1x4x8xbf16, #tpu.memory_space<vmem>>, vector<1x8x1x4x8xbf16>
    %4 = vector.shape_cast %3 : vector<1x8x1x4x8xbf16> to vector<8x4x8xbf16>
    %5 = tpu.transpose %4, [1, 0, 2] : vector<8x4x8xbf16> -> vector<4x8x8xbf16>
    %c0_5 = arith.constant 0 : index
    %c0_6 = arith.constant 0 : index
    %c0_7 = arith.constant 0 : index
    %c0_8 = arith.constant 0 : index
    %c0_9 = arith.constant 0 : index
    %6 = vector.load %arg4[%c0_5, %c0_6, %c0_7, %c0_8, %c0_9] : memref<1x8x1x4x8xbf16, #tpu.memory_space<vmem>>, vector<1x8x1x4x8xbf16>
    %7 = vector.shape_cast %6 : vector<1x8x1x4x8xbf16> to vector<8x4x8xbf16>
    %8 = tpu.transpose %7, [1, 0, 2] : vector<8x4x8xbf16> -> vector<4x8x8xbf16>
    %c0_10 = arith.constant 0 : index
    %c0_11 = arith.constant 0 : index
    %c0_12 = arith.constant 0 : index
    %c0_13 = arith.constant 0 : index
    %c0_14 = arith.constant 0 : index
    %9 = vector.load %arg5[%c0_10, %c0_11, %c0_12, %c0_13, %c0_14] : memref<1x8x1x4x8xbf16, #tpu.memory_space<vmem>>, vector<1x8x1x4x8xbf16>
    %10 = vector.shape_cast %9 : vector<1x8x1x4x8xbf16> to vector<8x4x8xbf16>
    %11 = tpu.transpose %10, [1, 0, 2] : vector<8x4x8xbf16> -> vector<4x8x8xbf16>
    "tpu.trace_start"() <{level = 10 : i32, message = "hqd,hkd->hqk"}> : () -> ()
    %cst = arith.constant dense<0.000000e+00> : vector<4x8x8xf32>
    %12 = tpu.matmul %5, %8, %cst {dimension_numbers = #tpu.dot_dimension_numbers<[2], [2], [1], [1], [0, 0, 0, 1, 1, 1], [0], [0]>} : vector<4x8x8xbf16>, vector<4x8x8xbf16>, vector<4x8x8xf32> -> vector<4x8x8xf32>
    "tpu.trace_stop"() : () -> ()
    %c0_15 = arith.constant 0 : index
    %c0_16 = arith.constant 0 : index
    %c0_17 = arith.constant 0 : index
    %13 = vector.load %arg6[%c0_15, %c0_16, %c0_17] : memref<1x8x1xf32, #tpu.memory_space<vmem>>, vector<1x8x1xf32>
    %14 = vector.shape_cast %13 : vector<1x8x1xf32> to vector<8x1xf32>
    %cst_18 = arith.constant 0.000000e+00 : f32
    %15 = vector.broadcast %cst_18 : f32 to vector<8x1xf32>
    %16 = arith.cmpf ogt, %14, %15 : vector<8x1xf32>
    %c0_19 = arith.constant 0 : index
    %c0_20 = arith.constant 0 : index
    %c0_21 = arith.constant 0 : index
    %17 = vector.load %arg7[%c0_19, %c0_20, %c0_21] : memref<1x1x8xf32, #tpu.memory_space<vmem>>, vector<1x1x8xf32>
    %18 = vector.shape_cast %17 : vector<1x1x8xf32> to vector<1x8xf32>
    %cst_22 = arith.constant 0.000000e+00 : f32
    %19 = vector.broadcast %cst_22 : f32 to vector<1x8xf32>
    %20 = arith.cmpf ogt, %18, %19 : vector<1x8xf32>
    %21 = vector.broadcast %16 : vector<8x1xi1> to vector<8x8xi1>
    %22 = vector.broadcast %20 : vector<1x8xi1> to vector<8x8xi1>
    %23 = arith.andi %21, %22 : vector<8x8xi1>
    %cst_23 = arith.constant 0.000000e+00 : f32
    %cst_24 = arith.constant -1.000000e+30 : f32
    %24 = vector.broadcast %cst_23 : f32 to vector<8x8xf32>
    %25 = vector.broadcast %cst_24 : f32 to vector<8x8xf32>
    %26 = arith.select %23, %24, %25 : vector<8x8xi1>, vector<8x8xf32>
    %27 = vector.shape_cast %26 : vector<8x8xf32> to vector<1x8x8xf32>
    %28 = vector.broadcast %27 : vector<1x8x8xf32> to vector<4x8x8xf32>
    %29 = arith.addf %12, %28 : vector<4x8x8xf32>
    %c0_25 = arith.constant 0 : index
    %c0_26 = arith.constant 0 : index
    %c0_27 = arith.constant 0 : index
    %30 = vector.load %arg9[%c0_25, %c0_26, %c0_27] : memref<4x8x1xf32, #tpu.memory_space<vmem>>, vector<4x8x1xf32>
    %cst_28 = arith.constant dense<0xFF800000> : vector<4x8xf32>
    %31 = vector.multi_reduction <maximumf>, %29, %cst_28 [2] : vector<4x8x8xf32> to vector<4x8xf32>
    %32 = vector.shape_cast %31 : vector<4x8xf32> to vector<4x8x1xf32>
    %33 = arith.maximumf %30, %32 : vector<4x8x1xf32>
    %34 = arith.subf %30, %33 : vector<4x8x1xf32>
    %35 = math.exp %34 : vector<4x8x1xf32>
    %36 = vector.broadcast %33 : vector<4x8x1xf32> to vector<4x8x8xf32>
    %37 = arith.subf %29, %36 : vector<4x8x8xf32>
    %38 = math.exp %37 : vector<4x8x8xf32>
    %c0_29 = arith.constant 0 : index
    %c0_30 = arith.constant 0 : index
    %c0_31 = arith.constant 0 : index
    %39 = vector.load %arg10[%c0_29, %c0_30, %c0_31] : memref<4x8x1xf32, #tpu.memory_space<vmem>>, vector<4x8x1xf32>
    %40 = arith.mulf %35, %39 : vector<4x8x1xf32>
    %cst_32 = arith.constant dense<0.000000e+00> : vector<4x8xf32>
    %41 = vector.multi_reduction <add>, %38, %cst_32 [2] : vector<4x8x8xf32> to vector<4x8xf32>
    %42 = vector.shape_cast %41 : vector<4x8xf32> to vector<4x8x1xf32>
    %43 = arith.addf %40, %42 : vector<4x8x1xf32>
    %c0_33 = arith.constant 0 : index
    %c0_34 = arith.constant 0 : index
    %c0_35 = arith.constant 0 : index
    %44 = vector.load %arg10[%c0_33, %c0_34, %c0_35] : memref<4x8x1xf32, #tpu.memory_space<vmem>>, vector<4x8x1xf32>
    tpu.vector_store %arg10[%c0_33, %c0_34, %c0_35], %43 {strides = array<i32>} : memref<4x8x1xf32, #tpu.memory_space<vmem>>, vector<4x8x1xf32>,
    %c0_36 = arith.constant 0 : index
    %c0_37 = arith.constant 0 : index
    %c0_38 = arith.constant 0 : index
    %45 = vector.load %arg11[%c0_36, %c0_37, %c0_38] : memref<4x8x8xf32, #tpu.memory_space<vmem>>, vector<4x8x8xf32>
    %46 = vector.broadcast %35 : vector<4x8x1xf32> to vector<4x8x8xf32>
    %47 = arith.mulf %46, %45 : vector<4x8x8xf32>
    %48 = arith.truncf %38 : vector<4x8x8xf32> to vector<4x8x8xbf16>
    "tpu.trace_start"() <{level = 10 : i32, message = "hqk,hkd->hqd"}> : () -> ()
    %cst_39 = arith.constant dense<0.000000e+00> : vector<4x8x8xf32>
    %49 = tpu.matmul %48, %11, %cst_39 {dimension_numbers = #tpu.dot_dimension_numbers<[2], [1], [1], [2], [0, 0, 0, 1, 1, 2], [0], [0]>} : vector<4x8x8xbf16>, vector<4x8x8xbf16>, vector<4x8x8xf32> -> vector<4x8x8xf32>
    "tpu.trace_stop"() : () -> ()
    %50 = arith.addf %47, %49 : vector<4x8x8xf32>
    %c0_40 = arith.constant 0 : index
    %c0_41 = arith.constant 0 : index
    %c0_42 = arith.constant 0 : index
    %51 = vector.load %arg11[%c0_40, %c0_41, %c0_42] : memref<4x8x8xf32, #tpu.memory_space<vmem>>, vector<4x8x8xf32>
    tpu.vector_store %arg11[%c0_40, %c0_41, %c0_42], %50 {strides = array<i32>} : memref<4x8x8xf32, #tpu.memory_space<vmem>>, vector<4x8x8xf32>,
    %c0_43 = arith.constant 0 : index
    %c0_44 = arith.constant 0 : index
    %c0_45 = arith.constant 0 : index
    %52 = vector.load %arg9[%c0_43, %c0_44, %c0_45] : memref<4x8x1xf32, #tpu.memory_space<vmem>>, vector<4x8x1xf32>
    tpu.vector_store %arg9[%c0_43, %c0_44, %c0_45], %33 {strides = array<i32>} : memref<4x8x1xf32, #tpu.memory_space<vmem>>, vector<4x8x1xf32>,
    %c0_i32_46 = arith.constant 0 : i32
    %53 = arith.cmpi eq, %arg2, %c0_i32_46 : i32
    %54 = arith.extui %53 : i1 to i32
    %c0_i32_47 = arith.constant 0 : i32
    %55 = arith.cmpi ne, %54, %c0_i32_47 : i32
    scf.if %55 {
      %c0_48 = arith.constant 0 : index
      %c0_49 = arith.constant 0 : index
      %c0_50 = arith.constant 0 : index
      %56 = vector.load %arg11[%c0_48, %c0_49, %c0_50] : memref<4x8x8xf32, #tpu.memory_space<vmem>>, vector<4x8x8xf32>
      %c0_51 = arith.constant 0 : index
      %c0_52 = arith.constant 0 : index
      %c0_53 = arith.constant 0 : index
      %57 = vector.load %arg10[%c0_51, %c0_52, %c0_53] : memref<4x8x1xf32, #tpu.memory_space<vmem>>, vector<4x8x1xf32>
      %58 = tpu.reciprocal %57 {approx = true} : vector<4x8x1xf32> -> vector<4x8x1xf32>
      %59 = vector.broadcast %58 : vector<4x8x1xf32> to vector<4x8x8xf32>
      %60 = arith.mulf %56, %59 : vector<4x8x8xf32>
      %61 = tpu.transpose %60, [1, 0, 2] : vector<4x8x8xf32> -> vector<8x4x8xf32>
      %62 = arith.truncf %61 : vector<8x4x8xf32> to vector<8x4x8xbf16>
      %c0_54 = arith.constant 0 : index
      %c0_55 = arith.constant 0 : index
      %c0_56 = arith.constant 0 : index
      %c0_57 = arith.constant 0 : index
      %63 = vector.load %arg8[%c0_54, %c0_55, %c0_56, %c0_57] : memref<1x8x4x8xbf16, #tpu.memory_space<vmem>>, vector<1x8x4x8xbf16>
      %64 = vector.shape_cast %63 : vector<1x8x4x8xbf16> to vector<8x4x8xbf16>
      %65 = vector.shape_cast %62 : vector<8x4x8xbf16> to vector<1x8x4x8xbf16>
      tpu.vector_store %arg8[%c0_54, %c0_55, %c0_56, %c0_57], %65 {strides = array<i32>} : memref<1x8x4x8xbf16, #tpu.memory_space<vmem>>, vector<1x8x4x8xbf16>,
    } else {
    }
    return
  }
  func.func @transform_0(%arg0: i32, %arg1: i32, %arg2: i32) -> (i32, i32, i32, i32, i32) {
    %c0_i32 = arith.constant 0 : i32
    %c0_i32_0 = arith.constant 0 : i32
    %c0_i32_1 = arith.constant 0 : i32
    %c0_i32_2 = arith.constant 0 : i32
    return %arg0, %arg1, %c0_i32, %c0_i32_0, %c0_i32_1 : i32, i32, i32, i32, i32
  }
  func.func @transform_1(%arg0: i32, %arg1: i32, %arg2: i32) -> (i32, i32, i32, i32, i32) {
    %c1_i32 = arith.constant 1 : i32
    %c0_i32 = arith.constant 0 : i32
    %c0_i32_0 = arith.constant 0 : i32
    %c0_i32_1 = arith.constant 0 : i32
    return %arg0, %arg2, %c1_i32, %c0_i32, %c0_i32_0 : i32, i32, i32, i32, i32
  }
  func.func @transform_2(%arg0: i32, %arg1: i32, %arg2: i32) -> (i32, i32, i32, i32, i32) {
    %c2_i32 = arith.constant 2 : i32
    %c0_i32 = arith.constant 0 : i32
    %c0_i32_0 = arith.constant 0 : i32
    %c0_i32_1 = arith.constant 0 : i32
    return %arg0, %arg2, %c2_i32, %c0_i32, %c0_i32_0 : i32, i32, i32, i32, i32
  }
  func.func @transform_3(%arg0: i32, %arg1: i32, %arg2: i32) -> (i32, i32, i32) {
    %c0_i32 = arith.constant 0 : i32
    %c0_i32_0 = arith.constant 0 : i32
    return %arg0, %arg1, %c0_i32 : i32, i32, i32
  }
  func.func @transform_4(%arg0: i32, %arg1: i32, %arg2: i32) -> (i32, i32, i32) {
    %c0_i32 = arith.constant 0 : i32
    %c0_i32_0 = arith.constant 0 : i32
    return %arg0, %c0_i32, %arg2 : i32, i32, i32
  }
  func.func @transform_5(%arg0: i32, %arg1: i32, %arg2: i32) -> (i32, i32, i32, i32) {
    %c0_i32 = arith.constant 0 : i32
    %c0_i32_0 = arith.constant 0 : i32
    %c0_i32_1 = arith.constant 0 : i32
    return %arg0, %arg1, %c0_i32, %c0_i32_0 : i32, i32, i32, i32
  }
}

module attributes {stable_mosaic.version = 11 : i64} {
  func.func @linear_kernel(%arg0: i32, %arg1: i32, %arg2: i32, %arg3: memref<16x32xbf16, #tpu.memory_space<vmem>>, %arg4: memref<32x64xbf16, #tpu.memory_space<vmem>>, %arg5: memref<1x64xf32, #tpu.memory_space<vmem>>, %arg6: memref<16x64xbf16, #tpu.memory_space<vmem>>, %arg7: memref<16x64xf32, #tpu.memory_space<vmem>>) attributes {dimension_semantics = [#tpu.dimension_semantics<parallel>, #tpu.dimension_semantics<parallel>, #tpu.dimension_semantics<arbitrary>], iteration_bounds = array<i64: 1, 1, 1>, scalar_prefetch = 0 : i64, scratch_operands = 1 : i64, tpu.core_type = #tpu.core_type<tc>, window_params = [{transform_indices = @transform_0, window_bounds = array<i64: 16, 32>}, {transform_indices = @transform_1, window_bounds = array<i64: 32, 64>}, {transform_indices = @transform_2, window_bounds = array<i64: 1, 64>}, {transform_indices = @transform_3, window_bounds = array<i64: 16, 64>}]} {
    %c0_i32 = arith.constant 0 : i32
    %0 = arith.cmpi eq, %arg2, %c0_i32 : i32
    %1 = arith.extui %0 : i1 to i32
    %c0_i32_0 = arith.constant 0 : i32
    %2 = arith.cmpi ne, %1, %c0_i32_0 : i32
    scf.if %2 {
      %cst_10 = arith.constant 0.000000e+00 : f32
      %12 = vector.broadcast %cst_10 : f32 to vector<16x64xf32>
      %c0_11 = arith.constant 0 : index
      %c0_12 = arith.constant 0 : index
      %13 = vector.load %arg7[%c0_11, %c0_12] : memref<16x64xf32, #tpu.memory_space<vmem>>, vector<16x64xf32>
      tpu.vector_store %arg7[%c0_11, %c0_12], %12 {strides = array<i32>} : memref<16x64xf32, #tpu.memory_space<vmem>>, vector<16x64xf32>,
    } else {
    }
    %c0 = arith.constant 0 : index
    %c0_1 = arith.constant 0 : index
    %3 = vector.load %arg7[%c0, %c0_1] : memref<16x64xf32, #tpu.memory_space<vmem>>, vector<16x64xf32>
    %c0_2 = arith.constant 0 : index
    %c0_3 = arith.constant 0 : index
    %4 = vector.load %arg3[%c0_2, %c0_3] : memref<16x32xbf16, #tpu.memory_space<vmem>>, vector<16x32xbf16>
    %c0_4 = arith.constant 0 : index
    %c0_5 = arith.constant 0 : index
    %5 = vector.load %arg4[%c0_4, %c0_5] : memref<32x64xbf16, #tpu.memory_space<vmem>>, vector<32x64xbf16>
    %cst = arith.constant dense<0.000000e+00> : vector<16x64xf32>
    %6 = tpu.matmul %4, %5, %cst {dimension_numbers = #tpu.dot_dimension_numbers<[1], [0], [0], [1], [0, 0, 1, 1], [], []>} : vector<16x32xbf16>, vector<32x64xbf16>, vector<16x64xf32> -> vector<16x64xf32>
    %7 = arith.addf %3, %6 : vector<16x64xf32>
    %c0_6 = arith.constant 0 : index
    %c0_7 = arith.constant 0 : index
    %8 = vector.load %arg7[%c0_6, %c0_7] : memref<16x64xf32, #tpu.memory_space<vmem>>, vector<16x64xf32>
    tpu.vector_store %arg7[%c0_6, %c0_7], %7 {strides = array<i32>} : memref<16x64xf32, #tpu.memory_space<vmem>>, vector<16x64xf32>,
    %c0_i32_8 = arith.constant 0 : i32
    %9 = arith.cmpi eq, %arg2, %c0_i32_8 : i32
    %10 = arith.extui %9 : i1 to i32
    %c0_i32_9 = arith.constant 0 : i32
    %11 = arith.cmpi ne, %10, %c0_i32_9 : i32
    scf.if %11 {
      %c0_10 = arith.constant 0 : index
      %c0_11 = arith.constant 0 : index
      %12 = vector.load %arg7[%c0_10, %c0_11] : memref<16x64xf32, #tpu.memory_space<vmem>>, vector<16x64xf32>
      %c0_12 = arith.constant 0 : index
      %c0_13 = arith.constant 0 : index
      %13 = vector.load %arg5[%c0_12, %c0_13] : memref<1x64xf32, #tpu.memory_space<vmem>>, vector<1x64xf32>
      %14 = vector.broadcast %13 : vector<1x64xf32> to vector<16x64xf32>
      %15 = arith.addf %12, %14 : vector<16x64xf32>
      %16 = arith.truncf %15 : vector<16x64xf32> to vector<16x64xbf16>
      %c0_14 = arith.constant 0 : index
      %c0_15 = arith.constant 0 : index
      %17 = vector.load %arg6[%c0_14, %c0_15] : memref<16x64xbf16, #tpu.memory_space<vmem>>, vector<16x64xbf16>
      tpu.vector_store %arg6[%c0_14, %c0_15], %16 {strides = array<i32>} : memref<16x64xbf16, #tpu.memory_space<vmem>>, vector<16x64xbf16>,
    } else {
    }
    return
  }
  func.func @transform_0(%arg0: i32, %arg1: i32, %arg2: i32) -> (i32, i32) {
    %c0_i32 = arith.constant 0 : i32
    return %arg0, %arg2 : i32, i32
  }
  func.func @transform_1(%arg0: i32, %arg1: i32, %arg2: i32) -> (i32, i32) {
    %c0_i32 = arith.constant 0 : i32
    return %arg2, %arg1 : i32, i32
  }
  func.func @transform_2(%arg0: i32, %arg1: i32, %arg2: i32) -> (i32, i32) {
    %c0_i32 = arith.constant 0 : i32
    %c0_i32_0 = arith.constant 0 : i32
    return %c0_i32, %arg1 : i32, i32
  }
  func.func @transform_3(%arg0: i32, %arg1: i32, %arg2: i32) -> (i32, i32) {
    %c0_i32 = arith.constant 0 : i32
    return %arg0, %arg1 : i32, i32
  }
}

module attributes {stable_mosaic.version = 11 : i64} {
  func.func @attn_kernel(%arg0: i32, %arg1: i32, %arg2: i32, %arg3: memref<1x8x1x4x8xbf16, #tpu.memory_space<vmem>>, %arg4: memref<1x8x1x4x8xbf16, #tpu.memory_space<vmem>>, %arg5: memref<1x8x1x4x8xbf16, #tpu.memory_space<vmem>>, %arg6: memref<1x8x1xf32, #tpu.memory_space<vmem>>, %arg7: memref<1x1x8xf32, #tpu.memory_space<vmem>>, %arg8: memref<1x8x4x8xbf16, #tpu.memory_space<vmem>>, %arg9: memref<4x8x1xf32, #tpu.memory_space<vmem>>, %arg10: memref<4x8x1xf32, #tpu.memory_space<vmem>>, %arg11: memref<4x8x8xf32, #tpu.memory_space<vmem>>) attributes {dimension_semantics = [#tpu.dimension_semantics<parallel>, #tpu.dimension_semantics<parallel>, #tpu.dimension_semantics<arbitrary>], iteration_bounds = array<i64: 2, 1, 1>, scalar_prefetch = 0 : i64, scratch_operands = 3 : i64, tpu.core_type = #tpu.core_type<tc>, window_params = [{transform_indices = @transform_0, window_bounds = array<i64: 1, 8, 1, 4, 8>}, {transform_indices = @transform_1, window_bounds = array<i64: 1, 8, 1, 4, 8>}, {transform_indices = @transform_2, window_bounds = array<i64: 1, 8, 1, 4, 8>}, {transform_indices = @transform_3, window_bounds = array<i64: 1, 8, 1>}, {transform_indices = @transform_4, window_bounds = array<i64: 1, 1, 8>}, {transform_indices = @transform_5, window_bounds = array<i64: 1, 8, 4, 8>}]} {
    %c0_i32 = arith.constant 0 : i32
    %0 = arith.cmpi eq, %arg2, %c0_i32 : i32
    %1 = arith.extui %0 : i1 to i32
    %c0_i32_0 = arith.constant 0 : i32
    %2 = arith.cmpi ne, %1, %c0_i32_0 : i32
    scf.if %2 {
      %cst_48 = arith.constant -1.000000e+30 : f32
      %56 = vector.broadcast %cst_48 : f32 to vector<4x8x1xf32>
      %c0_49 = arith.constant 0 : index
      %c0_50 = arith.constant 0 : index
      %c0_51 = arith.constant 0 : index
      %57 = vector.load %arg9[%c0_49, %c0_50, %c0_51] : memref<4x8x1xf32, #tpu.memory_space<vmem>>, vector<4x8x1xf32>
      tpu.vector_store %arg9[%c0_49, %c0_50, %c0_51], %56 {strides = array<i32>} : memref<4x8x1xf32, #tpu.memory_space<vmem>>, vector<4x8x1xf32>,
      %cst_52 = arith.constant 0.000000e+00 : f32
      %58 = vector.broadcast %cst_52 : f32 to vector<4x8x1xf32>
      %c0_53 = arith.constant 0 : index
      %c0_54 = arith.constant 0 : index
      %c0_55 = arith.constant 0 : index
      %59 = vector.load %arg10[%c0_53, %c0_54, %c0_55] : memref<4x8x1xf32, #tpu.memory_space<vmem>>, vector<4x8x1xf32>
      tpu.vector_store %arg10[%c0_53, %c0_54, %c0_55], %58 {strides = array<i32>} : memref<4x8x1xf32, #tpu.memory_space<vmem>>, vector<4x8x1xf32>,
      %cst_56 = arith.constant 0.000000e+00 : f32
      %60 = vector.broadcast %cst_56 : f32 to vector<4x8x8xf32>
      %c0_57 = arith.constant 0 : index
      %c0_58 = arith.constant 0 : index
      %c0_59 = arith.constant 0 : index
      %61 = vector.load %arg11[%c0_57, %c0_58, %c0_59] : memref<4x8x8xf32, #tpu.memory_space<vmem>>, vector<4x8x8xf32>
      tpu.vector_store %arg11[%c0_57, %c0_58, %c0_59], %60 {strides = array<i32>} : memref<4x8x8xf32, #tpu.memory_space<vmem>>, vector<4x8x8xf32>,
    } else {
    }
    %c0 = arith.constant 0 : index
    %c0_1 = arith.constant 0 : index
    %c0_2 = arith.constant 0 : index
    %c0_3 = arith.constant 0 : index
    %c0_4 = arith.constant 0 : index
    %3 = vector.load %arg3[%c0, %c0_1, %c0_2, %c0_3, %c0_4] : memref<1x8x1x4x8xbf16, #tpu.memory_space<vmem>>, vector<1x8x1x4x8xbf16>
    %4 = vector.shape_cast %3 : vector<1x8x1x4x8xbf16> to vector<8x4x8xbf16>
    %5 = tpu.transpose %4, [1, 0, 2] : vector<8x4x8xbf16> -> vector<4x8x8xbf16>
    %c0_5 = arith.constant 0 : index
    %c0_6 = arith.constant 0 : index
    %c0_7 = arith.constant 0 : index
    %c0_8 = arith.constant 0 : index
    %c0_9 = arith.constant 0 : index
    %6 = vector.load %arg4[%c0_5, %c0_6, %c0_7, %c0_8, %c0_9] : memref<1x8x1x4x8xbf16, #tpu.memory_space<vmem>>, vector<1x8x1x4x8xbf16>
    %7 = vector.shape_cast %6 : vector<1x8x1x4x8xbf16> to vector<8x4x8xbf16>
    %8 = tpu.transpose %7, [1, 0, 2] : vector<8x4x8xbf16> -> vector<4x8x8xbf16>
    %c0_10 = arith.constant 0 : index
    %c0_11 = arith.constant 0 : index
    %c0_12 = arith.constant 0 : index
    %c0_13 = arith.constant 0 : index
    %c0_14 = arith.constant 0 : index
    %9 = vector.load %arg5[%c0_10, %c0_11, %c0_12, %c0_13, %c0_14] : memref<1x8x1x4x8xbf16, #tpu.memory_space<vmem>>, vector<1x8x1x4x8xbf16>
    %10 = vector.shape_cast %9 : vector<1x8x1x4x8xbf16> to vector<8x4x8xbf16>
    %11 = tpu.transpose %10, [1, 0, 2] : vector<8x4x8xbf16> -> vector<4x8x8xbf16>
    "tpu.trace_start"() <{level = 10 : i32, message = "hqd,hkd->hqk"}> : () -> ()
    %cst = arith.constant dense<0.000000e+00> : vector<4x8x8xf32>
    %12 = tpu.matmul %5, %8, %cst {dimension_numbers = #tpu.dot_dimension_numbers<[2], [2], [1], [1], [0, 0, 0, 1, 1, 1], [0], [0]>} : vector<4x8x8xbf16>, vector<4x8x8xbf16>, vector<4x8x8xf32> -> vector<4x8x8xf32>
    "tpu.trace_stop"() : () -> ()
    %c0_15 = arith.constant 0 : index
    %c0_16 = arith.constant 0 : index
    %c0_17 = arith.constant 0 : index
    %13 = vector.load %arg6[%c0_15, %c0_16, %c0_17] : memref<1x8x1xf32, #tpu.memory_space<vmem>>, vector<1x8x1xf32>
    %14 = vector.shape_cast %13 : vector<1x8x1xf32> to vector<8x1xf32>
    %cst_18 = arith.constant 0.000000e+00 : f32
    %15 = vector.broadcast %cst_18 : f32 to vector<8x1xf32>
    %16 = arith.cmpf ogt, %14, %15 : vector<8x1xf32>
    %c0_19 = arith.constant 0 : index
    %c0_20 = arith.constant 0 : index
    %c0_21 = arith.constant 0 : index
    %17 = vector.load %arg7[%c0_19, %c0_20, %c0_21] : memref<1x1x8xf32, #tpu.memory_space<vmem>>, vector<1x1x8xf32>
    %18 = vector.shape_cast %17 : vector<1x1x8xf32> to vector<1x8xf32>
    %cst_22 = arith.constant 0.000000e+00 : f32
    %19 = vector.broadcast %cst_22 : f32 to vector<1x8xf32>
    %20 = arith.cmpf ogt, %18, %19 : vector<1x8xf32>
    %21 = vector.broadcast %16 : vector<8x1xi1> to vector<8x8xi1>
    %22 = vector.broadcast %20 : vector<1x8xi1> to vector<8x8xi1>
    %23 = arith.andi %21, %22 : vector<8x8xi1>
    %cst_23 = arith.constant 0.000000e+00 : f32
    %cst_24 = arith.constant -1.000000e+30 : f32
    %24 = vector.broadcast %cst_23 : f32 to vector<8x8xf32>
    %25 = vector.broadcast %cst_24 : f32 to vector<8x8xf32>
    %26 = arith.select %23, %24, %25 : vector<8x8xi1>, vector<8x8xf32>
    %27 = vector.shape_cast %26 : vector<8x8xf32> to vector<1x8x8xf32>
    %28 = vector.broadcast %27 : vector<1x8x8xf32> to vector<4x8x8xf32>
    %29 = arith.addf %12, %28 : vector<4x8x8xf32>
    %c0_25 = arith.constant 0 : index
    %c0_26 = arith.constant 0 : index
    %c0_27 = arith.constant 0 : index
    %30 = vector.load %arg9[%c0_25, %c0_26, %c0_27] : memref<4x8x1xf32, #tpu.memory_space<vmem>>, vector<4x8x1xf32>
    %cst_28 = arith.constant dense<0xFF800000> : vector<4x8xf32>
    %31 = vector.multi_reduction <maximumf>, %29, %cst_28 [2] : vector<4x8x8xf32> to vector<4x8xf32>
    %32 = vector.shape_cast %31 : vector<4x8xf32> to vector<4x8x1xf32>
    %33 = arith.maximumf %30, %32 : vector<4x8x1xf32>
    %34 = arith.subf %30, %33 : vector<4x8x1xf32>
    %35 = math.exp %34 : vector<4x8x1xf32>
    %36 = vector.broadcast %33 : vector<4x8x1xf32> to vector<4x8x8xf32>
    %37 = arith.subf %29, %36 : vector<4x8x8xf32>
    %38 = math.exp %37 : vector<4x8x8xf32>
    %c0_29 = arith.constant 0 : index
    %c0_30 = arith.constant 0 : index
    %c0_31 = arith.constant 0 : index
    %39 = vector.load %arg10[%c0_29, %c0_30, %c0_31] : memref<4x8x1xf32, #tpu.memory_space<vmem>>, vector<4x8x1xf32>
    %40 = arith.mulf %35, %39 : vector<4x8x1xf32>
    %cst_32 = arith.constant dense<0.000000e+00> : vector<4x8xf32>
    %41 = vector.multi_reduction <add>, %38, %cst_32 [2] : vector<4x8x8xf32> to vector<4x8xf32>
    %42 = vector.shape_cast %41 : vector<4x8xf32> to vector<4x8x1xf32>
    %43 = arith.addf %40, %42 : vector<4x8x1xf32>
    %c0_33 = arith.constant 0 : index
    %c0_34 = arith.constant 0 : index
    %c0_35 = arith.constant 0 : index
    %44 = vector.load %arg10[%c0_33, %c0_34, %c0_35] : memref<4x8x1xf32, #tpu.memory_space<vmem>>, vector<4x8x1xf32>
    tpu.vector_store %arg10[%c0_33, %c0_34, %c0_35], %43 {strides = array<i32>} : memref<4x8x1xf32, #tpu.memory_space<vmem>>, vector<4x8x1xf32>,
    %c0_36 = arith.constant 0 : index
    %c0_37 = arith.constant 0 : index
    %c0_38 = arith.constant 0 : index
    %45 = vector.load %arg11[%c0_36, %c0_37, %c0_38] : memref<4x8x8xf32, #tpu.memory_space<vmem>>, vector<4x8x8xf32>
    %46 = vector.broadcast %35 : vector<4x8x1xf32> to vector<4x8x8xf32>
    %47 = arith.mulf %46, %45 : vector<4x8x8xf32>
    %48 = arith.truncf %38 : vector<4x8x8xf32> to vector<4x8x8xbf16>
    "tpu.trace_start"() <{level = 10 : i32, message = "hqk,hkd->hqd"}> : () -> ()
    %cst_39 = arith.constant dense<0.000000e+00> : vector<4x8x8xf32>
    %49 = tpu.matmul %48, %11, %cst_39 {dimension_numbers = #tpu.dot_dimension_numbers<[2], [1], [1], [2], [0, 0, 0, 1, 1, 2], [0], [0]>} : vector<4x8x8xbf16>, vector<4x8x8xbf16>, vector<4x8x8xf32> -> vector<4x8x8xf32>
    "tpu.trace_stop"() : () -> ()
    %50 = arith.addf %47, %49 : vector<4x8x8xf32>
    %c0_40 = arith.constant 0 : index
    %c0_41 = arith.constant 0 : index
    %c0_42 = arith.constant 0 : index
    %51 = vector.load %arg11[%c0_40, %c0_41, %c0_42] : memref<4x8x8xf32, #tpu.memory_space<vmem>>, vector<4x8x8xf32>
    tpu.vector_store %arg11[%c0_40, %c0_41, %c0_42], %50 {strides = array<i32>} : memref<4x8x8xf32, #tpu.memory_space<vmem>>, vector<4x8x8xf32>,
    %c0_43 = arith.constant 0 : index
    %c0_44 = arith.constant 0 : index
    %c0_45 = arith.constant 0 : index
    %52 = vector.load %arg9[%c0_43, %c0_44, %c0_45] : memref<4x8x1xf32, #tpu.memory_space<vmem>>, vector<4x8x1xf32>
    tpu.vector_store %arg9[%c0_43, %c0_44, %c0_45], %33 {strides = array<i32>} : memref<4x8x1xf32, #tpu.memory_space<vmem>>, vector<4x8x1xf32>,
    %c0_i32_46 = arith.constant 0 : i32
    %53 = arith.cmpi eq, %arg2, %c0_i32_46 : i32
    %54 = arith.extui %53 : i1 to i32
    %c0_i32_47 = arith.constant 0 : i32
    %55 = arith.cmpi ne, %54, %c0_i32_47 : i32
    scf.if %55 {
      %c0_48 = arith.constant 0 : index
      %c0_49 = arith.constant 0 : index
      %c0_50 = arith.constant 0 : index
      %56 = vector.load %arg11[%c0_48, %c0_49, %c0_50] : memref<4x8x8xf32, #tpu.memory_space<vmem>>, vector<4x8x8xf32>
      %c0_51 = arith.constant 0 : index
      %c0_52 = arith.constant 0 : index
      %c0_53 = arith.constant 0 : index
      %57 = vector.load %arg10[%c0_51, %c0_52, %c0_53] : memref<4x8x1xf32, #tpu.memory_space<vmem>>, vector<4x8x1xf32>
      %58 = tpu.reciprocal %57 {approx = true} : vector<4x8x1xf32> -> vector<4x8x1xf32>
      %59 = vector.broadcast %58 : vector<4x8x1xf32> to vector<4x8x8xf32>
      %60 = arith.mulf %56, %59 : vector<4x8x8xf32>
      %61 = tpu.transpose %60, [1, 0, 2] : vector<4x8x8xf32> -> vector<8x4x8xf32>
      %62 = arith.truncf %61 : vector<8x4x8xf32> to vector<8x4x8xbf16>
      %c0_54 = arith.constant 0 : index
      %c0_55 = arith.constant 0 : index
      %c0_56 = arith.constant 0 : index
      %c0_57 = arith.constant 0 : index
      %63 = vector.load %arg8[%c0_54, %c0_55, %c0_56, %c0_57] : memref<1x8x4x8xbf16, #tpu.memory_space<vmem>>, vector<1x8x4x8xbf16>
      %64 = vector.shape_cast %63 : vector<1x8x4x8xbf16> to vector<8x4x8xbf16>
      %65 = vector.shape_cast %62 : vector<8x4x8xbf16> to vector<1x8x4x8xbf16>
      tpu.vector_store %arg8[%c0_54, %c0_55, %c0_56, %c0_57], %65 {strides = array<i32>} : memref<1x8x4x8xbf16, #tpu.memory_space<vmem>>, vector<1x8x4x8xbf16>,
    } else {
    }
    return
  }
  func.func @transform_0(%arg0: i32, %arg1: i32, %arg2: i32) -> (i32, i32, i32, i32, i32) {
    %c0_i32 = arith.constant 0 : i32
    %c0_i32_0 = arith.constant 0 : i32
    %c0_i32_1 = arith.constant 0 : i32
    %c0_i32_2 = arith.constant 0 : i32
    return %arg0, %arg1, %c0_i32, %c0_i32_0, %c0_i32_1 : i32, i32, i32, i32, i32
  }
  func.func @transform_1(%arg0: i32, %arg1: i32, %arg2: i32) -> (i32, i32, i32, i32, i32) {
    %c0_i32 = arith.constant 0 : i32
    %c0_i32_0 = arith.constant 0 : i32
    %c0_i32_1 = arith.constant 0 : i32
    %c0_i32_2 = arith.constant 0 : i32
    return %arg0, %arg2, %c0_i32, %c0_i32_0, %c0_i32_1 : i32, i32, i32, i32, i32
  }
  func.func @transform_2(%arg0: i32, %arg1: i32, %arg2: i32) -> (i32, i32, i32, i32, i32) {
    %c1_i32 = arith.constant 1 : i32
    %c0_i32 = arith.constant 0 : i32
    %c0_i32_0 = arith.constant 0 : i32
    %c0_i32_1 = arith.constant 0 : i32
    return %arg0, %arg2, %c1_i32, %c0_i32, %c0_i32_0 : i32, i32, i32, i32, i32
  }
  func.func @transform_3(%arg0: i32, %arg1: i32, %arg2: i32) -> (i32, i32, i32) {
    %c0_i32 = arith.constant 0 : i32
    %c0_i32_0 = arith.constant 0 : i32
    return %arg0, %arg1, %c0_i32 : i32, i32, i32
  }
  func.func @transform_4(%arg0: i32, %arg1: i32, %arg2: i32) -> (i32, i32, i32) {
    %c0_i32 = arith.constant 0 : i32
    %c0_i32_0 = arith.constant 0 : i32
    return %arg0, %c0_i32, %arg2 : i32, i32, i32
  }
  func.func @transform_5(%arg0: i32, %arg1: i32, %arg2: i32) -> (i32, i32, i32, i32) {
    %c0_i32 = arith.constant 0 : i32
    %c0_i32_0 = arith.constant 0 : i32
    %c0_i32_1 = arith.constant 0 : i32
    return %arg0, %arg1, %c0_i32, %c0_i32_0 : i32, i32, i32, i32
  }
}

module attributes {stable_mosaic.version = 11 : i64} {
  func.func @linear_kernel(%arg0: i32, %arg1: i32, %arg2: i32, %arg3: memref<16x32xbf16, #tpu.memory_space<vmem>>, %arg4: memref<32x41xbf16, #tpu.memory_space<vmem>>, %arg5: memref<1x41xf32, #tpu.memory_space<vmem>>, %arg6: memref<16x41xf32, #tpu.memory_space<vmem>>, %arg7: memref<16x41xf32, #tpu.memory_space<vmem>>) attributes {dimension_semantics = [#tpu.dimension_semantics<parallel>, #tpu.dimension_semantics<parallel>, #tpu.dimension_semantics<arbitrary>], iteration_bounds = array<i64: 1, 1, 1>, scalar_prefetch = 0 : i64, scratch_operands = 1 : i64, tpu.core_type = #tpu.core_type<tc>, window_params = [{transform_indices = @transform_0, window_bounds = array<i64: 16, 32>}, {transform_indices = @transform_1, window_bounds = array<i64: 32, 41>}, {transform_indices = @transform_2, window_bounds = array<i64: 1, 41>}, {transform_indices = @transform_3, window_bounds = array<i64: 16, 41>}]} {
    %c0_i32 = arith.constant 0 : i32
    %0 = arith.cmpi eq, %arg2, %c0_i32 : i32
    %1 = arith.extui %0 : i1 to i32
    %c0_i32_0 = arith.constant 0 : i32
    %2 = arith.cmpi ne, %1, %c0_i32_0 : i32
    scf.if %2 {
      %cst_10 = arith.constant 0.000000e+00 : f32
      %12 = vector.broadcast %cst_10 : f32 to vector<16x41xf32>
      %c0_11 = arith.constant 0 : index
      %c0_12 = arith.constant 0 : index
      %13 = vector.load %arg7[%c0_11, %c0_12] : memref<16x41xf32, #tpu.memory_space<vmem>>, vector<16x41xf32>
      tpu.vector_store %arg7[%c0_11, %c0_12], %12 {strides = array<i32>} : memref<16x41xf32, #tpu.memory_space<vmem>>, vector<16x41xf32>,
    } else {
    }
    %c0 = arith.constant 0 : index
    %c0_1 = arith.constant 0 : index
    %3 = vector.load %arg7[%c0, %c0_1] : memref<16x41xf32, #tpu.memory_space<vmem>>, vector<16x41xf32>
    %c0_2 = arith.constant 0 : index
    %c0_3 = arith.constant 0 : index
    %4 = vector.load %arg3[%c0_2, %c0_3] : memref<16x32xbf16, #tpu.memory_space<vmem>>, vector<16x32xbf16>
    %c0_4 = arith.constant 0 : index
    %c0_5 = arith.constant 0 : index
    %5 = vector.load %arg4[%c0_4, %c0_5] : memref<32x41xbf16, #tpu.memory_space<vmem>>, vector<32x41xbf16>
    %cst = arith.constant dense<0.000000e+00> : vector<16x41xf32>
    %6 = tpu.matmul %4, %5, %cst {dimension_numbers = #tpu.dot_dimension_numbers<[1], [0], [0], [1], [0, 0, 1, 1], [], []>} : vector<16x32xbf16>, vector<32x41xbf16>, vector<16x41xf32> -> vector<16x41xf32>
    %7 = arith.addf %3, %6 : vector<16x41xf32>
    %c0_6 = arith.constant 0 : index
    %c0_7 = arith.constant 0 : index
    %8 = vector.load %arg7[%c0_6, %c0_7] : memref<16x41xf32, #tpu.memory_space<vmem>>, vector<16x41xf32>
    tpu.vector_store %arg7[%c0_6, %c0_7], %7 {strides = array<i32>} : memref<16x41xf32, #tpu.memory_space<vmem>>, vector<16x41xf32>,
    %c0_i32_8 = arith.constant 0 : i32
    %9 = arith.cmpi eq, %arg2, %c0_i32_8 : i32
    %10 = arith.extui %9 : i1 to i32
    %c0_i32_9 = arith.constant 0 : i32
    %11 = arith.cmpi ne, %10, %c0_i32_9 : i32
    scf.if %11 {
      %c0_10 = arith.constant 0 : index
      %c0_11 = arith.constant 0 : index
      %12 = vector.load %arg7[%c0_10, %c0_11] : memref<16x41xf32, #tpu.memory_space<vmem>>, vector<16x41xf32>
      %c0_12 = arith.constant 0 : index
      %c0_13 = arith.constant 0 : index
      %13 = vector.load %arg5[%c0_12, %c0_13] : memref<1x41xf32, #tpu.memory_space<vmem>>, vector<1x41xf32>
      %14 = vector.broadcast %13 : vector<1x41xf32> to vector<16x41xf32>
      %15 = arith.addf %12, %14 : vector<16x41xf32>
      %c0_14 = arith.constant 0 : index
      %c0_15 = arith.constant 0 : index
      %16 = vector.load %arg6[%c0_14, %c0_15] : memref<16x41xf32, #tpu.memory_space<vmem>>, vector<16x41xf32>
      tpu.vector_store %arg6[%c0_14, %c0_15], %15 {strides = array<i32>} : memref<16x41xf32, #tpu.memory_space<vmem>>, vector<16x41xf32>,
    } else {
    }
    return
  }
  func.func @transform_0(%arg0: i32, %arg1: i32, %arg2: i32) -> (i32, i32) {
    %c0_i32 = arith.constant 0 : i32
    return %arg0, %arg2 : i32, i32
  }
  func.func @transform_1(%arg0: i32, %arg1: i32, %arg2: i32) -> (i32, i32) {
    %c0_i32 = arith.constant 0 : i32
    return %arg2, %arg1 : i32, i32
  }
  func.func @transform_2(%arg0: i32, %arg1: i32, %arg2: i32) -> (i32, i32) {
    %c0_i32 = arith.constant 0 : i32
    %c0_i32_0 = arith.constant 0 : i32
    return %c0_i32, %arg1 : i32, i32
  }
  func.func @transform_3(%arg0: i32, %arg1: i32, %arg2: i32) -> (i32, i32) {
    %c0_i32 = arith.constant 0 : i32
    return %arg0, %arg1 : i32, i32
  }
}

</mosaic_0001>

<bundles_post_ra>
// kernel: transformer_forward.33
= control target key start
LH: loop header
LB: loop body
LE: loop exit
PB: predicated region body
PF: predicated region fallthrough
CT: control target
= control target key end

     0   :  { %vm19_vm0 = vcmask 785408   ;;  %v151_v0 = vmov 0.0   ;;  %vm152_vm1 = vmmov 0   ;;  %vm47_vm2 = vcmask 261120   ;;  %s195_s1 = inlined_call_operand.vmem [shape: bf16[32,96], index: 1, kind: input, shape index: {}]   ;;  %s196_s0 = inlined_call_operand.vmem [shape: bf16[16,32], index: 0, kind: input, shape index: {}]   ;;  %s197_s2 = inlined_call_operand.vmem [shape: f32[1,96], index: 2, kind: input, shape index: {}]   ;;  %s198_s3 = inlined_call_operand.vmem [shape: bf16[16,96], index: 3, kind: output, shape index: {}]  }
   0x1   :  { %138 = vmatprep.subr.bf16.mxu0 %v151_v0  ;;  %v148_v1 = vld [vmem:[%s195_s1 + $0x8] sm:$0xff]   ;;  %142 = vmatprep.mubr.msk.bf16.mxu0 %vm152_vm1, %v151_v0  ;;  %20 = vst.msk [vmem:[#allocation2] sm:$0xff] %vm19_vm0, %v151_v0  ;;  %21 = vst.msk [vmem:[#allocation2 + $0x8] sm:$0xff] %vm19_vm0, %v151_v0  ;;  %v149_v2 = vld [vmem:[%s195_s1] sm:$0xff]   ;;  %vm119_vm3 = vcmask 781312  }
   0x2   :  { %139 = vmatpush3.bf16.msra.mxu0 %v148_v1  ;;  %v150_v3 = vld [vmem:[%s196_s0] sm:$0xff]  }
   0x3   :  { %140 = vmatprep.subr.bf16.mxu0 %v151_v0  ;;  %v130_v12 = vld [vmem:[%s197_s2] ss:$0 sm:$0xff] }
   0x6   :  { %141 = vmatpush3.bf16.msra.mxu0 %v149_v2 }
   0x8   :  { %v22_v4 = vld [vmem:[#allocation2] sm:$0xff]  ;;  %v23_v8 = vld [vmem:[#allocation2 + $0x8] sm:$0xff] }
   0x9   :  { %143 = vmatmul.mubr.msk.bf16.vlgmr.msra.gmra.mxu0 %vm47_vm2, %v150_v3 }
  0xc9   :  { %v85_v5 = vpop.f32.mrf.mxu0 }
  0xca   :  { %v92_v6 = vadd.f32 %v85_v5, %v22_v4 }
  0xcb   :  { %v144_v7 = vpop.f32.mrf.mxu0 }
  0xcc   :  { %95 = vst.msk [vmem:[#allocation2] sm:$0xff] %vm19_vm0, %v92_v6 }
  0xcd   :  { %v88_v9 = vpop.f32.mrf.mxu0 }
  0xce   :  { %v93_v10 = vadd.f32 %v88_v9, %v23_v8 }
  0xcf   :  { %v145_v11 = vpop.f32.mrf.mxu0 }
  0xd0   :  { %96 = vst.msk [vmem:[#allocation2 + $0x8] sm:$0xff] %vm19_vm0, %v93_v10 }
  0xd3   :  { %v100_v13 = vld [vmem:[#allocation2] sm:$0xff] }
  0xd4   :  { %v109_v14 = vadd.f32 %v130_v12, %v100_v13 }
  0xd6   :  { %v133_v15 = vpack.c.bf16 %v109_v14, %v109_v14 }
  0xd7   :  { %v101_v16 = vld [vmem:[#allocation2 + $0x8] sm:$0xff] }
  0xd8   :  { %120 = vst.msk [vmem:[%s198_s3] sm:$0xf] %vm119_vm3, %v133_v15  ;;  %v110_v17 = vadd.f32 %v130_v12, %v101_v16 }
  0xda   :  { %v134_v18 = vpack.c.bf16 %v110_v17, %v110_v17 }
  0xdc   :  { %121 = vst.msk [vmem:[%s198_s3 + $0x4] sm:$0xf] %vm119_vm3, %v134_v18 }

// kernel: transformer_forward.36
= control target key start
LH: loop header
LB: loop body
LE: loop exit
PB: predicated region body
PF: predicated region fallthrough
CT: control target
= control target key end

     0   :  { %vm19_vm0 = vcmask 261120   ;;  %v150_v0 = vmov 0.0   ;;  %vm151_vm1 = vmmov 0   ;;  %vm118_vm2 = vcmask 257024   ;;  %s195_s1 = inlined_call_operand.vmem [shape: bf16[32,32], index: 1, kind: input, shape index: {}]   ;;  %s196_s0 = inlined_call_operand.vmem [shape: bf16[16,32], index: 0, kind: input, shape index: {}]   ;;  %s197_s2 = inlined_call_operand.vmem [shape: f32[1,32], index: 2, kind: input, shape index: {}]   ;;  %s198_s3 = inlined_call_operand.vmem [shape: bf16[16,32], index: 3, kind: output, shape index: {}]  }
   0x1   :  { %137 = vmatprep.subr.bf16.mxu0 %v150_v0  ;;  %v147_v1 = vld [vmem:[%s195_s1 + $0x8] sm:$0xff]   ;;  %141 = vmatprep.mubr.msk.bf16.mxu0 %vm151_vm1, %v150_v0  ;;  %20 = vst.msk [vmem:[#allocation2] sm:$0xff] %vm19_vm0, %v150_v0  ;;  %21 = vst.msk [vmem:[#allocation2 + $0x8] sm:$0xff] %vm19_vm0, %v150_v0  ;;  %v148_v2 = vld [vmem:[%s195_s1] sm:$0xff]  }
   0x2   :  { %138 = vmatpush3.bf16.msra.mxu0 %v147_v1  ;;  %v149_v3 = vld [vmem:[%s196_s0] sm:$0xff]  }
   0x3   :  { %139 = vmatprep.subr.bf16.mxu0 %v150_v0  ;;  %v129_v12 = vld [vmem:[%s197_s2] ss:$0 sm:$0xff] }
   0x6   :  { %140 = vmatpush3.bf16.msra.mxu0 %v148_v2 }
   0x8   :  { %v22_v4 = vld [vmem:[#allocation2] sm:$0xff]  ;;  %v23_v8 = vld [vmem:[#allocation2 + $0x8] sm:$0xff] }
   0x9   :  { %142 = vmatmul.mubr.msk.bf16.vlgmr.msra.gmra.mxu0 %vm19_vm0, %v149_v3 }
  0xc9   :  { %v85_v5 = vpop.f32.mrf.mxu0 }
  0xca   :  { %v92_v6 = vadd.f32 %v85_v5, %v22_v4 }
  0xcb   :  { %v143_v7 = vpop.f32.mrf.mxu0 }
  0xcc   :  { %94 = vst.msk [vmem:[#allocation2] sm:$0xff] %vm19_vm0, %v92_v6 }
  0xcd   :  { %v88_v9 = vpop.f32.mrf.mxu0 }
  0xce   :  { %v93_v10 = vadd.f32 %v88_v9, %v23_v8 }
  0xcf   :  { %v144_v11 = vpop.f32.mrf.mxu0 }
  0xd0   :  { %95 = vst.msk [vmem:[#allocation2 + $0x8] sm:$0xff] %vm19_vm0, %v93_v10 }
  0xd3   :  { %v99_v13 = vld [vmem:[#allocation2] sm:$0xff] }
  0xd4   :  { %v108_v14 = vadd.f32 %v129_v12, %v99_v13 }
  0xd6   :  { %v132_v15 = vpack.c.bf16 %v108_v14, %v108_v14 }
  0xd7   :  { %v100_v16 = vld [vmem:[#allocation2 + $0x8] sm:$0xff] }
  0xd8   :  { %119 = vst.msk [vmem:[%s198_s3] sm:$0xf] %vm118_vm2, %v132_v15  ;;  %v109_v17 = vadd.f32 %v129_v12, %v100_v16 }
  0xda   :  { %v133_v18 = vpack.c.bf16 %v109_v17, %v109_v17 }
  0xdc   :  { %120 = vst.msk [vmem:[%s198_s3 + $0x4] sm:$0xf] %vm118_vm2, %v133_v18 }

// kernel: transformer_forward.35
= control target key start
LH: loop header
LB: loop body
LE: loop exit
PB: predicated region body
PF: predicated region fallthrough
CT: control target
= control target key end

     0   :  { %vm28_vm0 = vcmask 261120   ;;  %v220_v0 = vmov 0.0   ;;  %vm221_vm1 = vmmov 0   ;;  %vm178_vm2 = vcmask 257024   ;;  %s293_s1 = inlined_call_operand.vmem [shape: bf16[32,32], index: 1, kind: input, shape index: {}]   ;;  %s294_s0 = inlined_call_operand.vmem [shape: bf16[16,32], index: 0, kind: input, shape index: {}]   ;;  %s295_s3 = inlined_call_operand.vmem [shape: bf16[16,32], index: 3, kind: input, shape index: {}]   ;;  %s296_s2 = inlined_call_operand.vmem [shape: f32[1,32], index: 2, kind: input, shape index: {}]   ;;  %s297_s4 = inlined_call_operand.vmem [shape: f32[1,32], index: 4, kind: input, shape index: {}]   ;;  %s298_s5 = inlined_call_operand.vmem [shape: f32[1,32], index: 5, kind: input, shape index: {}]   ;;  %s299_s6 = inlined_call_operand.vmem [shape: bf16[16,32], index: 6, kind: output, shape index: {}]  }
   0x1   :  { %203 = vmatprep.subr.bf16.mxu0 %v220_v0  ;;  %v213_v1 = vld [vmem:[%s293_s1 + $0x8] sm:$0xff]   ;;  %207 = vmatprep.mubr.msk.bf16.mxu0 %vm221_vm1, %v220_v0  ;;  %29 = vst.msk [vmem:[#allocation2] sm:$0xff] %vm28_vm0, %v220_v0  ;;  %30 = vst.msk [vmem:[#allocation2 + $0x8] sm:$0xff] %vm28_vm0, %v220_v0  ;;  %v214_v2 = vld [vmem:[%s293_s1] sm:$0xff]  }
   0x2   :  { %204 = vmatpush3.bf16.msra.mxu0 %v213_v1  ;;  %v215_v3 = vld [vmem:[%s294_s0] sm:$0xff]  }
   0x3   :  { %205 = vmatprep.subr.bf16.mxu0 %v220_v0  ;;  %v197_v12 = vld [vmem:[%s295_s3] sm:$0xff]  }
   0x4   :  { %v189_v13 = vld [vmem:[%s296_s2] ss:$0 sm:$0xff]  ;;  %v198_v14 = vunpack.c.l.bf16 %v197_v12  ;;  %v199_v18 = vunpack.c.h.bf16 %v197_v12 }
   0x5   :  { %v190_v41 = vld [vmem:[%s297_s4] ss:$0 sm:$0xff] }
   0x6   :  { %206 = vmatpush3.bf16.msra.mxu0 %v214_v2  ;;  %v191_v43 = vld [vmem:[%s298_s5] ss:$0 sm:$0xff] }
   0x8   :  { %v31_v4 = vld [vmem:[#allocation2] sm:$0xff]  ;;  %v32_v8 = vld [vmem:[#allocation2 + $0x8] sm:$0xff] }
   0x9   :  { %208 = vmatmul.mubr.msk.bf16.vlgmr.msra.gmra.mxu0 %vm28_vm0, %v215_v3 }
  0xc9   :  { %v94_v5 = vpop.f32.mrf.mxu0 }
  0xca   :  { %v101_v6 = vadd.f32 %v94_v5, %v31_v4 }
  0xcb   :  { %v209_v7 = vpop.f32.mrf.mxu0 }
  0xcc   :  { %103 = vst.msk [vmem:[#allocation2] sm:$0xff] %vm28_vm0, %v101_v6 }
  0xcd   :  { %v97_v9 = vpop.f32.mrf.mxu0 }
  0xce   :  { %v102_v10 = vadd.f32 %v97_v9, %v32_v8 }
  0xcf   :  { %v210_v11 = vpop.f32.mrf.mxu0 }
  0xd0   :  { %104 = vst.msk [vmem:[#allocation2 + $0x8] sm:$0xff] %vm28_vm0, %v102_v10 }
  0xd3   :  { %v108_v15 = vld [vmem:[#allocation2] sm:$0xff] }
  0xd4   :  { %v117_v16 = vadd.f32 %v189_v13, %v108_v15 }
  0xd6   :  { %v123_v17 = vadd.f32 %v198_v14, %v117_v16 }
  0xd7   :  { %v109_v19 = vld [vmem:[#allocation2 + $0x8] sm:$0xff] }
  0xd8   :  { %v125_v20 = vsel %vm28_vm0, %v123_v17, 0.0  ;;  %v118_v21 = vadd.f32 %v189_v13, %v109_v19 }
  0xd9   :  { %126 = vadd.xlane.f32.xlu0 %v125_v20 }
  0xda   :  { %v124_v22 = vadd.f32 %v199_v18, %v118_v21 }
  0xdc   :  { %v128_v23 = vsel %vm28_vm0, %v124_v22, 0.0 }
  0xdd   :  { %129 = vadd.xlane.f32.xlu0 %v128_v23 }
 0x162   :  { %v127_v24 = vpop.xlane.xlu0 %126 }
 0x163   :  { %v132_v25 = vmul.f32 0.03125, %v127_v24 }
 0x165   :  { %v134_v26 = vsub.f32 %v123_v17, %v132_v25 }
 0x166   :  { %v130_v27 = vpop.xlane.xlu0 %129 }
 0x167   :  { %v133_v28 = vmul.f32 0.03125, %v130_v27  ;;  %v136_v29 = vmul.f32 %v134_v26, %v134_v26 }
 0x169   :  { %v135_v30 = vsub.f32 %v124_v22, %v133_v28  ;;  %v138_v31 = vsel %vm28_vm0, %v136_v29, 0.0 }
 0x16a   :  { %139 = vadd.xlane.f32.xlu1 %v138_v31 }
 0x16b   :  { %v137_v32 = vmul.f32 %v135_v30, %v135_v30 }
 0x16d   :  { %v141_v33 = vsel %vm28_vm0, %v137_v32, 0.0 }
 0x16e   :  { %142 = vadd.xlane.f32.xlu1 %v141_v33 }
 0x1f3   :  { %v140_v34 = vpop.xlane.xlu1 %139 }
 0x1f4   :  { %v144_v35 = vmul.f32 0.03125, %v140_v34 }
 0x1f6   :  { %v146_v36 = vadd.f32 1e-05, %v144_v35 }
 0x1f7   :  { %v143_v37 = vpop.xlane.xlu1 %142 }
 0x1f8   :  { %216 = vrsqrt.f32 %v146_v36  ;;  %v145_v38 = vmul.f32 0.03125, %v143_v37 }
 0x1fa   :  { %v147_v39 = vadd.f32 1e-05, %v145_v38 }
 0x1fc   :  { %218 = vrsqrt.f32 %v147_v39 }
 0x205   :  { %v217_v40 = vpop.eup %216 }
 0x206   :  { %v150_v42 = vmul.f32 %v217_v40, %v134_v26 }
 0x208   :  { %v159_v44 = vmul.f32 %v190_v41, %v150_v42 }
 0x209   :  { %v219_v45 = vpop.eup %218 }
 0x20a   :  { %v168_v46 = vadd.f32 %v191_v43, %v159_v44  ;;  %v151_v47 = vmul.f32 %v219_v45, %v135_v30 }
 0x20c   :  { %v194_v48 = vpack.c.bf16 %v168_v46, %v168_v46  ;;  %v160_v49 = vmul.f32 %v190_v41, %v151_v47 }
 0x20e   :  { %179 = vst.msk [vmem:[%s299_s6] sm:$0xf] %vm178_vm2, %v194_v48  ;;  %v169_v50 = vadd.f32 %v191_v43, %v160_v49 }
 0x210   :  { %v195_v51 = vpack.c.bf16 %v169_v50, %v169_v50 }
 0x212   :  { %180 = vst.msk [vmem:[%s299_s6 + $0x4] sm:$0xf] %vm178_vm2, %v195_v51 }

// kernel: transformer_forward.34
= control target key start
LH: loop header
LB: loop body
LE: loop exit
PB: predicated region body
PF: predicated region fallthrough
CT: control target
= control target key end

     0   :  { %s2014_s18 = smov 0   ;;  %s2016_s19 = smov 0   ;;  %s2326_s0 = inlined_call_operand.vmem [shape: bf16[2,8,3,4,8], index: 0, kind: input, shape index: {}, may-alias: {0,1,2}]   ;;  %s2327_s1 = inlined_call_operand.vmem [shape: bf16[2,8,3,4,8], index: 1, kind: input, shape index: {}, may-alias: {0,1,2}]   ;;  %s2328_s2 = inlined_call_operand.vmem [shape: bf16[2,8,3,4,8], index: 2, kind: input, shape index: {}, may-alias: {0,1,2}]   ;;  %s2329_s3 = inlined_call_operand.vmem [shape: f32[2,8,1], index: 3, kind: input, shape index: {}]   ;;  %s2330_s4 = inlined_call_operand.vmem [shape: f32[2,1,8], index: 4, kind: input, shape index: {}]   ;;  %s2331_s5 = inlined_call_operand.vmem [shape: bf16[2,8,4,8], index: 5, kind: output, shape index: {}]  }
   0x1   :  { %s2018_s20 = smov 0   ;;  %s2020_s21 = smov 0  }
   0x2   :  { %s2022_s22 = smov 0  }
   0x3 LB: > { %s34_s23 = sadd.s32 1, %s1972_s21  ;;  %p50_p1 = scmp.ne.s32.totalorder %s1964_s19, %s1960_s18  ;;  %s1976_s22 = sphi %s2022_s22, %s15_s22   ;;  %s1972_s21 = sphi %s2020_s21, %s2336_s21   ;;  %s1968_s20 = sphi %s2018_s20, %s2335_s20   ;;  %s1964_s19 = sphi %s2016_s19, %s2334_s19   ;;  %s1960_s18 = sphi %s2014_s18, %s2333_s18  }
   0x4   : > { %p36_p0 = scmp.ge.s32.totalorder %s34_s23, 2  ;;  %p51_p2 = scmp.eq.s32.totalorder %s1976_s22, 0 }
   0x5   : > { %s43_s26 = sadd.s32 1, %s1964_s19  ;;  %p1736_p5 = scmp.ge.s32.totalorder %s1976_s22, 2 }
   0x6   : > { %s2338_s23 = smov (%p36_p0, %s34_s23), 0  ;;  %p2045_p3 = por %p51_p2, %p50_p1 }
   0x7   : > { %s38_s25 = ssub.s32 %s1972_s21, %s2338_s23  ;;  %216 = sbr.rel (%p1736_p5) target bundleno = 42 (0x2a), region = 16 }
   0x8   : > { %p41_p4 = scmp.eq.s32.totalorder %s38_s25, 0 }
   0xa   : > { %s2053_s27 = scalar_select %p41_p4, %s1964_s19, %s43_s26  }
   0xc   : > { %219 = sbr.rel (!%p2045_p3) target bundleno = 22 (0x16), region = 20  ;;  %s221_s28 = sand.u32 (%p2045_p3), 1, %s1964_s19  }
   0xd   : > { %s1841_s29 = smul.u32 (%p2045_p3), 48, %s1972_s21  ;;  %s1737_s30 = sshll.u32 (%p2045_p3), %s221_s28, 4 }
   0xe   : > { %s223_s9 = scalar_lea.vmem (%p2045_p3), [#allocation5], %s1737_s30 }
   0xf   : > { %s229_s8 = scalar_lea.vmem (%p2045_p3), %s2326_s0, %s1841_s29 }
  0x10   : > { %v246_v0 = vld [vmem:[%s229_s8] sm:$0x3] (%p2045_p3)  ;;  %v248_v1 = vld [vmem:[%s229_s8 + $0x6] sm:$0x3] (%p2045_p3)  ;;  %v250_v2 = vld [vmem:[%s229_s8 + $0xc] sm:$0x3] (%p2045_p3) }
  0x11   : > { %247 = vst [vmem:[%s223_s9] sm:$0x3] %v246_v0  ;;  %249 = vst [vmem:[%s223_s9 + $0x2] sm:$0x3] %v248_v1  ;;  %v252_v3 = vld [vmem:[%s229_s8 + $0x12] sm:$0x3] }
  0x12   : > { %251 = vst [vmem:[%s223_s9 + $0x4] sm:$0x3] %v250_v2  ;;  %v254_v4 = vld [vmem:[%s229_s8 + $0x18] sm:$0x3]  ;;  %v256_v5 = vld [vmem:[%s229_s8 + $0x1e] sm:$0x3] }
  0x13   : > { %253 = vst [vmem:[%s223_s9 + $0x6] sm:$0x3] %v252_v3  ;;  %255 = vst [vmem:[%s223_s9 + $0x8] sm:$0x3] %v254_v4  ;;  %v258_v6 = vld [vmem:[%s229_s8 + $0x24] sm:$0x3] }
  0x14   : > { %257 = vst [vmem:[%s223_s9 + $0xa] sm:$0x3] %v256_v5  ;;  %v260_v7 = vld [vmem:[%s229_s8 + $0x2a] sm:$0x3]  ;;  %259 = vst [vmem:[%s223_s9 + $0xc] sm:$0x3] %v258_v6 }
  0x15   : > { %261 = vst [vmem:[%s223_s9 + $0xe] sm:$0x3] %v260_v7 }
  0x16 PF: > { %301 = sbr.rel (!%p2045_p3) target bundleno = 32 (0x20), region = 61  ;;  %s303_s10 = sand.u32 (%p2045_p3), 1, %s1964_s19  }
  0x17   : > { %s1740_s11 = smul.u32 (%p2045_p3), 48, %s1972_s21  ;;  %s1739_s12 = sshll.u32 (%p2045_p3), %s303_s10, 4 }
  0x18   : > { %s305_s16 = scalar_lea.vmem (%p2045_p3), [#allocation6], %s1739_s12 }
  0x19   : > { %s1612_s15 = scalar_lea.vmem (%p2045_p3), %s2327_s1, %s1740_s11 }
  0x1a   : > { %v1741_v8 = vld [vmem:[%s1612_s15 + $0x2] sm:$0x3] (%p2045_p3)  ;;  %v1742_v9 = vld [vmem:[%s1612_s15 + $0x8] sm:$0x3] (%p2045_p3)  ;;  %v1743_v10 = vld [vmem:[%s1612_s15 + $0xe] sm:$0x3] (%p2045_p3) }
  0x1b   : > { %330 = vst [vmem:[%s305_s16] sm:$0x3] %v1741_v8  ;;  %332 = vst [vmem:[%s305_s16 + $0x2] sm:$0x3] %v1742_v9  ;;  %v1744_v11 = vld [vmem:[%s1612_s15 + $0x14] sm:$0x3] }
  0x1c   : > { %334 = vst [vmem:[%s305_s16 + $0x4] sm:$0x3] %v1743_v10  ;;  %v1745_v12 = vld [vmem:[%s1612_s15 + $0x1a] sm:$0x3]  ;;  %v1746_v13 = vld [vmem:[%s1612_s15 + $0x20] sm:$0x3] }
  0x1d   : > { %336 = vst [vmem:[%s305_s16 + $0x6] sm:$0x3] %v1744_v11  ;;  %338 = vst [vmem:[%s305_s16 + $0x8] sm:$0x3] %v1745_v12  ;;  %v1747_v14 = vld [vmem:[%s1612_s15 + $0x26] sm:$0x3] }
  0x1e   : > { %340 = vst [vmem:[%s305_s16 + $0xa] sm:$0x3] %v1746_v13  ;;  %v1748_v15 = vld [vmem:[%s1612_s15 + $0x2c] sm:$0x3]  ;;  %342 = vst [vmem:[%s305_s16 + $0xc] sm:$0x3] %v1747_v14 }
  0x1f   : > { %344 = vst [vmem:[%s305_s16 + $0xe] sm:$0x3] %v1748_v15 }
  0x20 PF: > { %384 = sbr.rel (!%p2045_p3) target bundleno = 42 (0x2a), region = 102  ;;  %s386_s17 = sand.u32 (%p2045_p3), 1, %s1964_s19  }
  0x21   : > { %s1750_s25 = smul.u32 (%p2045_p3), 48, %s1972_s21  ;;  %s1749_s26 = sshll.u32 (%p2045_p3), %s386_s17, 4 }
  0x22   : > { %s388_s6 = scalar_lea.vmem (%p2045_p3), [#allocation7], %s1749_s26 }
  0x23   : > { %s1620_s30 = scalar_lea.vmem (%p2045_p3), %s2328_s2, %s1750_s25 }
  0x24   : > { %v1751_v16 = vld [vmem:[%s1620_s30 + $0x4] sm:$0x3] (%p2045_p3)  ;;  %v1752_v17 = vld [vmem:[%s1620_s30 + $0xa] sm:$0x3] (%p2045_p3)  ;;  %v1753_v18 = vld [vmem:[%s1620_s30 + $0x10] sm:$0x3] (%p2045_p3) }
  0x25   : > { %413 = vst [vmem:[%s388_s6] sm:$0x3] %v1751_v16  ;;  %415 = vst [vmem:[%s388_s6 + $0x2] sm:$0x3] %v1752_v17  ;;  %v1754_v19 = vld [vmem:[%s1620_s30 + $0x16] sm:$0x3] }
  0x26   : > { %417 = vst [vmem:[%s388_s6 + $0x4] sm:$0x3] %v1753_v18  ;;  %v1755_v20 = vld [vmem:[%s1620_s30 + $0x1c] sm:$0x3]  ;;  %v1756_v21 = vld [vmem:[%s1620_s30 + $0x22] sm:$0x3] }
  0x27   : > { %419 = vst [vmem:[%s388_s6 + $0x6] sm:$0x3] %v1754_v19  ;;  %421 = vst [vmem:[%s388_s6 + $0x8] sm:$0x3] %v1755_v20  ;;  %v1757_v22 = vld [vmem:[%s1620_s30 + $0x28] sm:$0x3] }
  0x28   : > { %423 = vst [vmem:[%s388_s6 + $0xa] sm:$0x3] %v1756_v21  ;;  %v1758_v23 = vld [vmem:[%s1620_s30 + $0x2e] sm:$0x3]  ;;  %425 = vst [vmem:[%s388_s6 + $0xc] sm:$0x3] %v1757_v22 }
  0x29   : > { %427 = vst [vmem:[%s388_s6 + $0xe] sm:$0x3] %v1758_v23 }
  0x2a PF: > { %p1759_p6 = scmp.ge.s32.totalorder %s1976_s22, 1  ;;  %p485_p7 = scmp.lt.s32.totalorder %s1976_s22, 3 }
  0x2c   : > { %p486_p8 = pnand %p1759_p6, %p485_p7 }
  0x2d   : > { %s492_s24 = sand.u32 (!%p486_p8), 1, %s1960_s18   ;;  %p561_p9 = scmp.lt.s32.totalorder (!%p486_p8), %s1968_s20, 1 }
  0x2e   : > { %489 = sbr.rel (%p486_p8) target bundleno = 866 (0x362), region = 151  ;;  %s2081_s7 = sshll.u32 (!%p486_p8), %s492_s24, 4 }
  0x2f   : > { %s501_s18 = scalar_lea.vmem (!%p486_p8), [#allocation6], %s2081_s7  ;;  %s494_s8 = scalar_lea.vmem (!%p486_p8), [#allocation5], %s2081_s7 }
  0x30   : > { %s508_s16 = scalar_lea.vmem (!%p486_p8), [#allocation7], %s2081_s7 }
  0x33   : > { %vm598_vm0 = vcmask 64512   ;;  %v622_v24 = vlaneseq  ;;  %v1978_v25 = vmov 0.0   ;;  %v1979_v26 = vmov 1934713408   ;;  %s2340_s20 = smov (!%p561_p9, %s1968_s20), 1 }
  0x34   : > { %1793 = vmatprep.subr.bf16.mxu0 %v1978_v25  ;;  %v620_v27 = vunpack.c.l.s4 %v1979_v26  ;;  %599 = vst.msk [vmem:[#allocation4] sm:$0xff] %vm598_vm0, %v1978_v25  ;;  %600 = vst.msk [vmem:[#allocation4 + $0x8] sm:$0xff] %vm598_vm0, %v1978_v25  ;;  %1799 = vmatprep.subr.bf16.mxu1 %v1978_v25  ;;  %v1980_v29 = vmov 1983009808   ;;  %vm1981_vm1 = vmmov 0   ;;  %v1982_v33 = vmov 0   ;;  %s573_s15 = scalar_lea.vmem %s2330_s4, %s2340_s20 }
  0x35   : > { %601 = vst.msk [vmem:[#allocation4 + $0x10] sm:$0xff] %vm598_vm0, %v1978_v25  ;;  %602 = vst.msk [vmem:[#allocation4 + $0x18] sm:$0xff] %vm598_vm0, %v1978_v25  ;;  %v2093_v28 = vshrl.u32 %v622_v24, 7  ;;  %v844_v30 = vunpack.c.l.s4 %v1980_v29  ;;  %1795 = vmatprep.mubr.msk.bf16.mxu0 %vm1981_vm1, %v1978_v25  ;;  %1801 = vmatprep.mubr.msk.bf16.mxu1 %vm1981_vm1, %v1978_v25  ;;  %v2099_v31 = vand.u32 127, %v622_v24  ;;  %s1763_s9 = sshll.u32 %s2340_s20, 3  ;;  %vm589_vm5 = vcmask 7168  }
  0x36   : > { %v621_v32 = vunpack.c.0.s8 %v620_v27  ;;  %1888 = vset.pattern.permute.xlu0 %v1982_v33  ;;  %1889 = vset.pattern.permute.xlu1 %v1982_v33  ;;  %v1926_v35 = vld.sshfl [vmem:[%s501_s18] sm:$0x33 pattern:$0x73516240]  ;;  %s567_s12 = scalar_lea.vmem %s2329_s3, %s1763_s9  ;;  %594 = vst.msk [vmem:[#allocation3] sm:$0xff] %vm589_vm5, %v1978_v25  ;;  %595 = vst.msk [vmem:[#allocation3 + $0x8] sm:$0xff] %vm589_vm5, %v1978_v25 }
  0x37   : > { %vm839_vm2 = vcmp.ge.s32.totalorder %v2093_v28, %v2099_v31  ;;  %v845_v36 = vunpack.c.0.s8 %v844_v30  ;;  %v1927_v37 = vld.sshfl [vmem:[%s501_s18 + $0x2] sm:$0x33 pattern:$0x73516240]  ;;  %v725_v41 = vshrl.u32 %v1926_v35, 16  ;;  %v694_v42 = vcombine.high %v1926_v35, %v1982_v33  ;;  %596 = vst.msk [vmem:[#allocation3 + $0x10] sm:$0xff] %vm589_vm5, %v1978_v25 }
  0x38   : > { %v2107_v34 = vsub.s32 %v621_v32, %v2093_v28  ;;  %v1928_v38 = vld.sshfl [vmem:[%s501_s18 + $0x8] sm:$0x33 pattern:$0x73516240]  ;;  %v724_v43 = vpack.i.b16 %v1927_v37, %v1926_v35  ;;  %v726_v45 = vshrl.u32 %v1927_v37, 16  ;;  %v703_v52 = vcombine.high %v1927_v37, %v1982_v33  ;;  %v814_v15 = vld [vmem:[%s567_s12] sm:$0xff] }
  0x39   : > { %v1929_v39 = vld.sshfl [vmem:[%s501_s18 + $0xa] sm:$0x33 pattern:$0x73516240]  ;;  %v2111_v40 = vsub.s32 %v845_v36, %v2093_v28  ;;  %v737_v46 = vshrl.u32 %v1928_v38, 16  ;;  %v712_v53 = vcombine.high %v1928_v38, %v1982_v33  ;;  %v731_v6 = vshrl.u32 %v694_v42, 16 }
  0x3a   : > { %v736_v44 = vpack.i.b16 %v1929_v39, %v1928_v38  ;;  %v1930_v47 = vld.sshfl [vmem:[%s494_s8] sm:$0x33 pattern:$0x73516240]  ;;  %v738_v49 = vshrl.u32 %v1929_v39, 16  ;;  %v721_v54 = vcombine.high %v1929_v39, %v1982_v33  ;;  %v727_v56 = vpack.i.b16 %v726_v45, %v725_v41  ;;  %597 = vst.msk [vmem:[#allocation3 + $0x18] sm:$0xff] %vm589_vm5, %v1978_v25 }
  0x3b   : > { %v1931_v48 = vld.sshfl [vmem:[%s494_s8 + $0x2] sm:$0x33 pattern:$0x73516240]  ;;  %v730_v58 = vpack.i.b16 %v703_v52, %v694_v42  ;;  %v657_v62 = vshrl.u32 %v1930_v47, 16  ;;  %v732_v10 = vshrl.u32 %v703_v52, 16  ;;  %v626_v19 = vcombine.high %v1930_v47, %v1982_v33 }
  0x3c   : > { %v1932_v50 = vld.sshfl [vmem:[%s494_s8 + $0x8] sm:$0x33 pattern:$0x73516240]  ;;  %v850_v55 = vcombine.low %v724_v43, %v736_v44  ;;  %v739_v57 = vpack.i.b16 %v738_v49, %v737_v46  ;;  %v656_v60 = vpack.i.b16 %v1931_v48, %v1930_v47  ;;  %v742_v61 = vpack.i.b16 %v721_v54, %v712_v53  ;;  %v816_v29 = vld [vmem:[%s573_s15] sm:$0x1] }
  0x3d   : > { %v1933_v51 = vld.sshfl [vmem:[%s494_s8 + $0xa] sm:$0x33 pattern:$0x73516240]  ;;  %v658_v1 = vshrl.u32 %v1931_v48, 16  ;;  %v669_v2 = vshrl.u32 %v1932_v50, 16  ;;  %v733_v18 = vpack.i.b16 %v732_v10, %v731_v6  ;;  %v635_v23 = vcombine.high %v1931_v48, %v1982_v33 }
  0x3e   : > { %v857_v59 = vrot.slane %v850_v55, %v2111_v40  ;;  %v913_v63 = vcombine.low %v727_v56, %v739_v57  ;;  %v668_v0 = vpack.i.b16 %v1933_v51, %v1932_v50  ;;  %v975_v4 = vcombine.low %v730_v58, %v742_v61  ;;  %s1776_s17 = sshll.u32 %s2340_s20, 4 }
  0x3f   : > { %v670_v5 = vshrl.u32 %v1933_v51, 16  ;;  %v659_v9 = vpack.i.b16 %v658_v1, %v657_v62  ;;  %v743_v13 = vshrl.u32 %v712_v53, 16  ;;  %v744_v14 = vshrl.u32 %v721_v54, 16  ;;  %s582_s28 = scalar_lea.vmem %s2331_s5, %s1776_s17 }
  0x40   : > { %v863_v3 = vsel %vm598_vm0, %v857_v59, 0  ;;  %v920_v7 = vrot.slane %v913_v63, %v2111_v40  ;;  %v842_v8 = vcombine.low %v656_v60, %v668_v0  ;;  %v982_v11 = vrot.slane %v975_v4, %v2111_v40 }
  0x41   : > { %1794 = vmatpush3.bf16.xpose.msra.mxu0 %v863_v3  ;;  %v671_v12 = vpack.i.b16 %v670_v5, %v669_v2  ;;  %v745_v22 = vpack.i.b16 %v744_v14, %v743_v13  ;;  %v644_v24 = vcombine.high %v1932_v50, %v1982_v33  ;;  %v653_v26 = vcombine.high %v1933_v51, %v1982_v33 }
  0x42   : > { %1805 = vmatprep.subr.bf16.mxu0 %v1978_v25  ;;  %v925_v16 = vsel %vm598_vm0, %v920_v7, 0  ;;  %v849_v17 = vrot.slane %v842_v8, %v2111_v40  ;;  %v987_v20 = vsel %vm598_vm0, %v982_v11, 0  ;;  %v663_v27 = vshrl.u32 %v626_v19, 16 }
  0x43   : > { %1800 = vmatpush3.bf16.xpose.msra.mxu1 %v925_v16  ;;  %v905_v21 = vcombine.low %v659_v9, %v671_v12  ;;  %vm815_vm3 = vcmp.gt.f32.partialorder %v814_v15, 0.0  ;;  %v1037_v32 = vcombine.low %v733_v18, %v745_v22  ;;  %v662_v35 = vpack.i.b16 %v635_v23, %v626_v19 }
  0x44   : > { %1811 = vmatprep.subr.bf16.mxu1 %v1978_v25  ;;  %v664_v36 = vshrl.u32 %v635_v23, 16  ;;  %v674_v37 = vpack.i.b16 %v653_v26, %v644_v24  ;;  %v675_v38 = vshrl.u32 %v644_v24, 16  ;;  %v676_v39 = vshrl.u32 %v653_v26, 16 }
  0x45   : > { %v912_v30 = vrot.slane %v905_v21, %v2111_v40  ;;  %v818_v41 = vsel %vm815_vm3, 1, %v1982_v33  ;;  %v1044_v42 = vrot.slane %v1037_v32, %v2111_v40  ;;  %vm817_vm4 = vcmp.gt.f32.partialorder %v816_v29, 0.0  ;;  %v1934_v26 = vld.sshfl [vmem:[%s508_s16] sm:$0x33 pattern:$0x73516240] }
  0x46   : > { %v665_v43 = vpack.i.b16 %v664_v36, %v663_v27  ;;  %820 = vperm.xlu0 %1888, %v818_v41   ;;  %v826_v44 = vsub.s32 0, %v2093_v28  ;;  %v967_v45 = vcombine.low %v662_v35, %v674_v37  ;;  %v677_v46 = vpack.i.b16 %v676_v39, %v675_v38  ;;  %v1935_v27 = vld.sshfl [vmem:[%s508_s16 + $0x2] sm:$0x33 pattern:$0x73516240] }
  0x47   : > { %v823_v47 = vsel %vm817_vm4, 1, %v1982_v33  ;;  %v1049_v48 = vsel %vm598_vm0, %v1044_v42, 0  ;;  %v1983_v53 = vmov -1e+30   ;;  %v792_v38 = vpack.i.b16 %v1935_v27, %v1934_v26 }
  0x48   : > { %1796 = vmatmul.mubr.msk.bf16.vlgmr.msra.gmra.mxu0 %vm598_vm0, %v849_v17  ;;  %v827_v49 = vrot.slane %v823_v47, %v826_v44  ;;  %v1029_v50 = vcombine.low %v665_v43, %v677_v46  ;;  %v974_v51 = vrot.slane %v967_v45, %v2111_v40  ;;  %590 = vst.msk [vmem:[#allocation2] sm:$0xff] %vm589_vm5, %v1983_v53  ;;  %591 = vst.msk [vmem:[#allocation2 + $0x8] sm:$0xff] %vm589_vm5, %v1983_v53  ;;  %v1936_v29 = vld.sshfl [vmem:[%s508_s16 + $0x8] sm:$0x33 pattern:$0x73516240] }
  0x49   : > { %1806 = vmatpush3.bf16.xpose.msra.mxu0 %v987_v20  ;;  %1807 = vmatprep.mubr.msk.bf16.mxu0 %vm1981_vm1, %v1978_v25  ;;  %592 = vst.msk [vmem:[#allocation2 + $0x10] sm:$0xff] %vm589_vm5, %v1983_v53  ;;  %593 = vst.msk [vmem:[#allocation2 + $0x18] sm:$0xff] %vm589_vm5, %v1983_v53  ;;  %v1937_v32 = vld.sshfl [vmem:[%s508_s16 + $0xa] sm:$0x33 pattern:$0x73516240] }
  0x4a   : > { %1817 = vmatprep.subr.bf16.mxu0 %v1978_v25  ;;  %1802 = vmatmul.mubr.msk.bf16.vlgmr.msra.gmra.mxu1 %vm598_vm0, %v912_v30  ;;  %v1036_v52 = vrot.slane %v1029_v50, %v2111_v40  ;;  %vm828_vm6 = vcmp.eq.s32.totalorder %v827_v49, 1  ;;  %v793_v39 = vshrl.u32 %v1934_v26, 16  ;;  %v804_v41 = vpack.i.b16 %v1937_v32, %v1936_v29 }
  0x4b   : > { %1812 = vmatpush3.bf16.xpose.msra.mxu1 %v1049_v48  ;;  %1813 = vmatprep.mubr.msk.bf16.mxu1 %vm1981_vm1, %v1978_v25  ;;  %v794_v42 = vshrl.u32 %v1935_v27, 16  ;;  %v805_v43 = vshrl.u32 %v1936_v29, 16  ;;  %v806_v44 = vshrl.u32 %v1937_v32, 16  ;;  %v762_v49 = vcombine.high %v1934_v26, %v1982_v33 }
  0x4c   : > { %1823 = vmatprep.subr.bf16.mxu1 %v1978_v25  ;;  %v1216_v46 = vcombine.low %v792_v38, %v804_v41  ;;  %vm1227_vm10 = vcmask 1043456   ;;  %v771_v50 = vcombine.high %v1935_v27, %v1982_v33  ;;  %vm1560_vm11 = vcmask 58368  }
  0x4d   : > { %v795_v47 = vpack.i.b16 %v794_v42, %v793_v39  ;;  %v807_v48 = vpack.i.b16 %v806_v44, %v805_v43 }
  0x4f   : > { %v2196_v14 = vld [vmem:[#allocation2] sm:$0xff]  ;;  %v2201_v17 = vld [vmem:[#allocation2 + $0x8] sm:$0xff] }
  0x50   : > { %1808 = vmatmul.mubr.msk.bf16.vlgmr.msra.gmra.mxu0 %vm598_vm0, %v974_v51  ;;  %v2211_v21 = vld [vmem:[#allocation2 + $0x10] sm:$0xff]  ;;  %v2222_v30 = vld [vmem:[#allocation2 + $0x18] sm:$0xff]  ;;  %v780_v51 = vcombine.high %v1936_v29, %v1982_v33 }
  0x51   : > { %1819 = vmatprep.mubr.msk.bf16.mxu0 %vm1981_vm1, %v1978_v25 }
  0x52   : > { %1814 = vmatmul.mubr.msk.bf16.vlgmr.msra.gmra.mxu1 %vm598_vm0, %v1036_v52  ;;  %v789_v52 = vcombine.high %v1937_v32, %v1982_v33 }
  0x53   : > { %1825 = vmatprep.mubr.msk.bf16.mxu1 %vm1981_vm1, %v1978_v25 }
  0xc1   : > { %v821_v54 = vpop.permute.xlu0 %820 }
  0xc2   : > { %vm822_vm7 = vcmp.eq.s32.totalorder %v821_v54, 1  ;;  %v1271_v54 = vcombine.low %v795_v47, %v807_v48 }
  0xc3   : > { %vm829_vm8 = vmand %vm822_vm7, %vm828_vm6 }
  0xc4   : > { %vm840_vm9 = vmand %vm829_vm8, %vm839_vm2 }
  0xc5   : > { %v841_v55 = vsel %vm840_vm9, 0.0, %v1983_v53  ;;  %v1223_v53 = vrot.slane %v1216_v46, %v2111_v40 }
 0x108   : > { %v899_v56 = vpop.f32.mrf.mxu0 }
 0x109   : > { %v2180_v57 = vadd.f32 %v899_v56, %v841_v55  ;;  %v810_v56 = vpack.i.b16 %v789_v52, %v780_v51 }
 0x10a   : > { %v1797_v58 = vpop.f32.mrf.mxu0  ;;  %v961_v59 = vpop.f32.mrf.mxu1 }
 0x10b   : > { %v1095_v60 = vsel %vm598_vm0, %v2180_v57, -inf  ;;  %v2184_v61 = vadd.f32 %v961_v59, %v841_v55  ;;  %v1229_v58 = vsel %vm1227_vm10, %v1223_v53, 0  ;;  %v1278_v59 = vrot.slane %v1271_v54, %v2111_v40  ;;  %v1158_v54 = vld [vmem:[#allocation3 + $0x18] sm:$0xff] }
 0x10c   : > { %1096 = vmax.xlane.f32.xlu0 %v1095_v60  ;;  %v902_v62 = vpop.f32.mrf.mxu0  ;;  %v1803_v63 = vpop.f32.mrf.mxu1  ;;  %v799_v60 = vshrl.u32 %v762_v49, 16  ;;  %1818 = vmatpush3.bf16.msra.mxu0 %v1229_v58 }
 0x10d   : > { %v1098_v0 = vsel %vm598_vm0, %v2184_v61, -inf  ;;  %v800_v62 = vshrl.u32 %v771_v50, 16  ;;  %1829 = vmatprep.subr.bf16.mxu0 %v1978_v25 }
 0x10e   : > { %v1798_v1 = vpop.f32.mrf.mxu0  ;;  %1099 = vmax.xlane.f32.xlu1 %v1098_v0  ;;  %v964_v28 = vpop.f32.mrf.mxu1  ;;  %v811_v0 = vshrl.u32 %v780_v51, 16 }
 0x10f   : > { %v812_v1 = vshrl.u32 %v789_v52, 16  ;;  %v1283_v28 = vsel %vm1227_vm10, %v1278_v59, 0  ;;  %v801_v33 = vpack.i.b16 %v800_v62, %v799_v60  ;;  %v1156_v52 = vld [vmem:[#allocation3 + $0x8] sm:$0xff] }
 0x110   : > { %v1023_v31 = vpop.f32.mrf.mxu0  ;;  %v1804_v2 = vpop.f32.mrf.mxu1  ;;  %1824 = vmatpush3.bf16.msra.mxu1 %v1283_v28 }
 0x111   : > { %v2188_v3 = vadd.f32 %v1023_v31, %v841_v55  ;;  %v813_v2 = vpack.i.b16 %v812_v1, %v811_v0  ;;  %1835 = vmatprep.subr.bf16.mxu1 %v1978_v25 }
 0x112   : > { %v1809_v4 = vpop.f32.mrf.mxu0  ;;  %v1085_v5 = vpop.f32.mrf.mxu1 }
 0x113   : > { %v1101_v6 = vsel %vm598_vm0, %v2188_v3, -inf  ;;  %v2192_v7 = vadd.f32 %v1085_v5, %v841_v55  ;;  %v798_v55 = vpack.i.b16 %v771_v50, %v762_v49  ;;  %v1379_v5 = vcombine.low %v801_v33, %v813_v2  ;;  %v1155_v49 = vld [vmem:[#allocation3] sm:$0xff] }
 0x114   : > { %1102 = vmax.xlane.f32.xlu1 %v1101_v6  ;;  %v1026_v8 = vpop.f32.mrf.mxu0  ;;  %v1815_v9 = vpop.f32.mrf.mxu1 }
 0x115   : > { %v1104_v12 = vsel %vm598_vm0, %v2192_v7, -inf  ;;  %v1325_v63 = vcombine.low %v798_v55, %v810_v56  ;;  %v1386_v6 = vrot.slane %v1379_v5, %v2111_v40 }
 0x116   : > { %v1810_v10 = vpop.f32.mrf.mxu0  ;;  %v1088_v11 = vpop.f32.mrf.mxu1 }
 0x117   : > { %v1332_v31 = vrot.slane %v1325_v63, %v2111_v40  ;;  %v1391_v8 = vsel %vm1227_vm10, %v1386_v6, 0  ;;  %v1185_v6 = vld [vmem:[#allocation4 + $0x8] sm:$0xff] }
 0x118   : > { %1105 = vmax.xlane.f32.xlu1 %v1104_v12  ;;  %v1816_v13 = vpop.f32.mrf.mxu1 }
 0x119   : > { %v1337_v4 = vsel %vm1227_vm10, %v1332_v31, 0 }
 0x195   : > { %v1097_v15 = vpop.xlane.xlu0 %1096 }
 0x196   : > { %v2199_v16 = vmax.f32 %v2196_v14, %v1097_v15 }
 0x197   : > { %v1100_v19 = vpop.xlane.xlu1 %1099 }
 0x198   : > { %v1111_v18 = vsub.f32 %v2196_v14, %v2199_v16  ;;  %1441 = vst.msk [vmem:[#allocation2] sm:$0xff] %vm589_vm5, %v2199_v16  ;;  %1125 = vperm.xlu1 %1889, %v2199_v16   ;;  %v2209_v20 = vmax.f32 %v2201_v17, %v1100_v19 }
 0x19a   : > { %v1112_v22 = vsub.f32 %v2201_v17, %v2209_v20  ;;  %1442 = vst.msk [vmem:[#allocation2 + $0x8] sm:$0xff] %vm589_vm5, %v2209_v20  ;;  %v1115_v46 = vmul.f32 1.442695, %v1111_v18 }
 0x19c   : > { %1130 = vperm.xlu1 %1889, %v2209_v20   ;;  %v1117_v43 = vmul.f32 1.442695, %v1112_v22 }
 0x19d   : > { %v1103_v23 = vpop.xlane.xlu1 %1102 }
 0x19e   : > { %v2220_v24 = vmax.f32 %v2211_v21, %v1103_v23 }
 0x1a0   : > { %v1113_v35 = vsub.f32 %v2211_v21, %v2220_v24  ;;  %1443 = vst.msk [vmem:[#allocation2 + $0x10] sm:$0xff] %vm589_vm5, %v2220_v24  ;;  %1135 = vperm.xlu1 %1889, %v2220_v24  }
 0x1a1   : > { %v1106_v36 = vpop.xlane.xlu1 %1105 }
 0x1a2   : > { %v2230_v37 = vmax.f32 %v2222_v30, %v1106_v36  ;;  %v1119_v17 = vmul.f32 1.442695, %v1113_v35 }
 0x1a4   : > { %v1114_v45 = vsub.f32 %v2222_v30, %v2230_v37  ;;  %1444 = vst.msk [vmem:[#allocation2 + $0x18] sm:$0xff] %vm589_vm5, %v2230_v37  ;;  %1140 = vperm.xlu0 %1888, %v2230_v37   ;;  %v1157_v30 = vld [vmem:[#allocation3 + $0x10] sm:$0xff] }
 0x1a6   : > { %v1121_v20 = vmul.f32 1.442695, %v1114_v45 }
 0x213   : > { %v1126_v9 = vpop.permute.xlu1 %1125 }
 0x214   : > { %v1143_v10 = vsub.f32 %v2180_v57, %v1126_v9 }
 0x216   : > { %v1147_v11 = vmul.f32 1.442695, %v1143_v10 }
 0x217   : > { %v1131_v12 = vpop.permute.xlu1 %1130 }
 0x218   : > { %1902 = vpow2.f32 %v1147_v11  ;;  %v1144_v13 = vsub.f32 %v2184_v61, %v1131_v12 }
 0x21a   : > { %v1149_v15 = vmul.f32 1.442695, %v1144_v13 }
 0x21b   : > { %v1136_v19 = vpop.permute.xlu1 %1135 }
 0x21c   : > { %1904 = vpow2.f32 %v1149_v15  ;;  %v1145_v23 = vsub.f32 %v2188_v3, %v1136_v19  ;;  %v1186_v15 = vld [vmem:[#allocation4 + $0x10] sm:$0xff] }
 0x21e   : > { %v1151_v26 = vmul.f32 1.442695, %v1145_v23 }
 0x21f   : > { %v1141_v27 = vpop.permute.xlu0 %1140 }
 0x220   : > { %1906 = vpow2.f32 %v1151_v26  ;;  %v1146_v29 = vsub.f32 %v2192_v7, %v1141_v27 }
 0x222   : > { %v1153_v32 = vmul.f32 1.442695, %v1146_v29 }
 0x224   : > { %1908 = vpow2.f32 %v1153_v32 }
 0x225   : > { %v1903_v36 = vpop.eup %1902  ;;  %1910 = vpow2.f32 %v1117_v43 }
 0x226   : > { %v1163_v57 = vsel %vm598_vm0, %v1903_v36, 0.0  ;;  %v1212_v38 = vpack.c.bf16 %v1903_v36, %v1903_v36  ;;  %1912 = vpow2.f32 %v1115_v46 }
 0x227   : > { %1164 = vadd.xlane.f32.xlu1 %v1163_v57  ;;  %1914 = vpow2.f32 %v1119_v17  ;;  %v1187_v57 = vld [vmem:[#allocation4 + $0x18] sm:$0xff] }
 0x228   : > { %1820 = vmatmul.mubr.msk.bf16.vlgmr.msra.gmra.mxu0 %vm598_vm0, %v1212_v38  ;;  %1916 = vpow2.f32 %v1121_v20 }
 0x229   : > { %v1905_v61 = vpop.eup %1904  ;;  %1830 = vmatpush3.bf16.msra.mxu0 %v1337_v4  ;;  %1831 = vmatprep.mubr.msk.bf16.mxu0 %vm1981_vm1, %v1978_v25  ;;  %v1184_v4 = vld [vmem:[#allocation4] sm:$0xff] }
 0x22a   : > { %v1166_v3 = vsel %vm598_vm0, %v1905_v61, 0.0  ;;  %v1213_v39 = vpack.c.bf16 %v1905_v61, %v1905_v61 }
 0x22b   : > { %1167 = vadd.xlane.f32.xlu0 %v1166_v3 }
 0x22c   : > { %1826 = vmatmul.mubr.msk.bf16.vlgmr.msra.gmra.mxu1 %vm598_vm0, %v1213_v39 }
 0x22d   : > { %v1907_v7 = vpop.eup %1906  ;;  %1836 = vmatpush3.bf16.msra.mxu1 %v1391_v8  ;;  %1837 = vmatprep.mubr.msk.bf16.mxu1 %vm1981_vm1, %v1978_v25 }
 0x22e   : > { %v1169_v41 = vsel %vm598_vm0, %v1907_v7, 0.0  ;;  %v1214_v42 = vpack.c.bf16 %v1907_v7, %v1907_v7 }
 0x22f   : > { %1170 = vadd.xlane.f32.xlu1 %v1169_v41 }
 0x230   : > { %1832 = vmatmul.mubr.msk.bf16.vlgmr.msra.gmra.mxu0 %vm598_vm0, %v1214_v42 }
 0x231   : > { %v1909_v44 = vpop.eup %1908 }
 0x232   : > { %v1172_v47 = vsel %vm598_vm0, %v1909_v44, 0.0  ;;  %v1215_v48 = vpack.c.bf16 %v1909_v44, %v1909_v44  ;;  %v1911_v14 = vpop.eup %1910 }
 0x233   : > { %1173 = vadd.xlane.f32.xlu1 %v1172_v47  ;;  %v1913_v16 = vpop.eup %1912  ;;  %v1160_v24 = vmul.f32 %v1911_v14, %v1156_v52 }
 0x234   : > { %1838 = vmatmul.mubr.msk.bf16.vlgmr.msra.gmra.mxu1 %vm598_vm0, %v1215_v48  ;;  %v1915_v18 = vpop.eup %1914  ;;  %v1159_v50 = vmul.f32 %v1913_v16, %v1155_v49 }
 0x235   : > { %v1917_v22 = vpop.eup %1916  ;;  %v1161_v45 = vmul.f32 %v1915_v18, %v1157_v30 }
 0x236   : > { %v1162_v58 = vmul.f32 %v1917_v22, %v1158_v54 }
 0x241   : > { %1195 = vperm.xlu0 %1888, %v1911_v14  }
 0x244   : > { %1190 = vperm.xlu1 %1889, %v1913_v16  }
 0x248   : > { %1200 = vperm.xlu1 %1889, %v1915_v18  }
 0x24c   : > { %1205 = vperm.xlu1 %1889, %v1917_v22  }
 0x2b0   : > { %v1165_v51 = vpop.xlane.xlu1 %1164 }
 0x2b1   : > { %v1175_v21 = vadd.f32 %v1165_v51, %v1159_v50 }
 0x2b3   : > { %1180 = vst.msk [vmem:[#allocation3] sm:$0xff] %vm589_vm5, %v1175_v21 }
 0x2b4   : > { %v1168_v35 = vpop.xlane.xlu0 %1167 }
 0x2b5   : > { %v1176_v37 = vadd.f32 %v1168_v35, %v1160_v24 }
 0x2b7   : > { %1181 = vst.msk [vmem:[#allocation3 + $0x8] sm:$0xff] %vm589_vm5, %v1176_v37 }
 0x2b8   : > { %v1171_v53 = vpop.xlane.xlu1 %1170 }
 0x2b9   : > { %v1177_v55 = vadd.f32 %v1171_v53, %v1161_v45 }
 0x2ba   : > { %v1452_v56 = vld [vmem:[#allocation3] sm:$0xff] }
 0x2bb   : > { %1182 = vst.msk [vmem:[#allocation3 + $0x10] sm:$0xff] %vm589_vm5, %v1177_v55  ;;  %1918 = vrcp.f32 %v1452_v56 }
 0x2bc   : > { %v1174_v59 = vpop.xlane.xlu1 %1173  ;;  %v1196_v8 = vpop.permute.xlu0 %1195 }
 0x2bd   : > { %v1178_v60 = vadd.f32 %v1174_v59, %v1162_v58  ;;  %v1209_v13 = vmul.f32 %v1196_v8, %v1185_v6 }
 0x2be   : > { %v1453_v62 = vld [vmem:[#allocation3 + $0x8] sm:$0xff] }
 0x2bf   : > { %1183 = vst.msk [vmem:[#allocation3 + $0x18] sm:$0xff] %vm589_vm5, %v1178_v60  ;;  %1920 = vrcp.f32 %v1453_v62 }
 0x2c0   : > { %v1191_v2 = vpop.permute.xlu1 %1190 }
 0x2c1   : > { %v1208_v5 = vmul.f32 %v1191_v2, %v1184_v4 }
 0x2c2   : > { %v1454_v63 = vld [vmem:[#allocation3 + $0x10] sm:$0xff] }
 0x2c3   : > { %1922 = vrcp.f32 %v1454_v63 }
 0x2c4   : > { %v1201_v10 = vpop.permute.xlu1 %1200 }
 0x2c5   : > { %v1210_v32 = vmul.f32 %v1201_v10, %v1186_v15 }
 0x2c6   : > { %v1455_v0 = vld [vmem:[#allocation3 + $0x18] sm:$0xff] }
 0x2c7   : > { %1924 = vrcp.f32 %v1455_v0 }
 0x2c8   : > { %v1919_v1 = vpop.eup %1918  ;;  %v1206_v36 = vpop.permute.xlu1 %1205 }
 0x2c9   : > { %1462 = vperm.xlu1 %1889, %v1919_v1   ;;  %v1211_v41 = vmul.f32 %v1206_v36, %v1187_v57 }
 0x2cc   : > { %v1921_v28 = vpop.eup %1920 }
 0x2cd   : > { %1467 = vperm.xlu0 %1888, %v1921_v28  }
 0x2d0   : > { %v1923_v33 = vpop.eup %1922 }
 0x2d1   : > { %1472 = vperm.xlu1 %1889, %v1923_v33  }
 0x2d4   : > { %v1925_v31 = vpop.eup %1924 }
 0x2d5   : > { %1477 = vperm.xlu0 %1888, %v1925_v31  }
 0x2e8   : > { %v1265_v9 = vpop.f32.mrf.mxu0 }
 0x2e9   : > { %v1433_v11 = vadd.f32 %v1265_v9, %v1208_v5 }
 0x2ea   : > { %v1821_v12 = vpop.f32.mrf.mxu0 }
 0x2eb   : > { %1437 = vst.msk [vmem:[#allocation4] sm:$0xff] %vm598_vm0, %v1433_v11 }
 0x2ec   : > { %v1268_v19 = vpop.f32.mrf.mxu0  ;;  %v1319_v23 = vpop.f32.mrf.mxu1 }
 0x2ed   : > { %v1434_v26 = vadd.f32 %v1319_v23, %v1209_v13 }
 0x2ee   : > { %v1822_v27 = vpop.f32.mrf.mxu0  ;;  %v1827_v29 = vpop.f32.mrf.mxu1 }
 0x2ef   : > { %1438 = vst.msk [vmem:[#allocation4 + $0x8] sm:$0xff] %vm598_vm0, %v1434_v26 }
 0x2f0   : > { %v1322_v38 = vpop.f32.mrf.mxu1  ;;  %v1373_v61 = vpop.f32.mrf.mxu0 }
 0x2f1   : > { %v1435_v3 = vadd.f32 %v1373_v61, %v1210_v32 }
 0x2f2   : > { %v1828_v39 = vpop.f32.mrf.mxu1  ;;  %v1833_v7 = vpop.f32.mrf.mxu0  ;;  %v1448_v49 = vld [vmem:[#allocation4] sm:$0xff] }
 0x2f3   : > { %1439 = vst.msk [vmem:[#allocation4 + $0x10] sm:$0xff] %vm598_vm0, %v1435_v3 }
 0x2f4   : > { %v1376_v42 = vpop.f32.mrf.mxu0  ;;  %v1427_v43 = vpop.f32.mrf.mxu1 }
 0x2f5   : > { %v1436_v44 = vadd.f32 %v1427_v43, %v1211_v41 }
 0x2f6   : > { %v1834_v46 = vpop.f32.mrf.mxu0  ;;  %v1839_v47 = vpop.f32.mrf.mxu1  ;;  %v1449_v51 = vld [vmem:[#allocation4 + $0x8] sm:$0xff] }
 0x2f7   : > { %1440 = vst.msk [vmem:[#allocation4 + $0x18] sm:$0xff] %vm598_vm0, %v1436_v44 }
 0x2f8   : > { %v1430_v48 = vpop.f32.mrf.mxu1 }
 0x2fa   : > { %v1840_v17 = vpop.f32.mrf.mxu1  ;;  %v1450_v18 = vld [vmem:[#allocation4 + $0x10] sm:$0xff] }
 0x2fe   : > { %v1451_v21 = vld [vmem:[#allocation4 + $0x18] sm:$0xff] }
 0x344   : > { %v1463_v20 = vpop.permute.xlu1 %1462 }
 0x345   : > { %v1480_v50 = vmul.f32 %v1463_v20, %v1448_v49 }
 0x348   : > { %v1468_v14 = vpop.permute.xlu0 %1467 }
 0x349   : > { %v1481_v24 = vmul.f32 %v1468_v14, %v1449_v51 }
 0x34c   : > { %v1473_v16 = vpop.permute.xlu1 %1472 }
 0x34d   : > { %v1482_v22 = vmul.f32 %v1473_v16, %v1450_v18 }
 0x34f   : > { %v1484_v35 = vcombine.low %v1480_v50, %v1482_v22  ;;  %v1485_v30 = vcombine.high %v1480_v50, %v1482_v22 }
 0x350   : > { %v1478_v52 = vpop.permute.xlu0 %1477 }
 0x351   : > { %v1483_v37 = vmul.f32 %v1478_v52, %v1451_v21  ;;  %v1492_v54 = vrot.slane %v1484_v35, %v2111_v40  ;;  %v1499_v55 = vrot.slane %v1485_v30, %v2111_v40 }
 0x353   : > { %v1500_v45 = vcombine.low %v1481_v24, %v1483_v37  ;;  %v1501_v53 = vcombine.high %v1481_v24, %v1483_v37 }
 0x355   : > { %v1508_v56 = vrot.slane %v1500_v45, %v2111_v40  ;;  %v1515_v58 = vrot.slane %v1501_v53, %v2111_v40 }
 0x357   : > { %v1516_v59 = vcombine.low %v1492_v54, %v1508_v56  ;;  %v1517_v60 = vcombine.high %v1492_v54, %v1508_v56  ;;  %v1532_v62 = vcombine.low %v1499_v55, %v1515_v58  ;;  %v1533_v63 = vcombine.high %v1499_v55, %v1515_v58 }
 0x359   : > { %v1524_v0 = vrot.slane %v1516_v59, %v2107_v34  ;;  %v1531_v1 = vrot.slane %v1517_v60, %v2107_v34  ;;  %v1540_v28 = vrot.slane %v1532_v62, %v2107_v34  ;;  %v1547_v33 = vrot.slane %v1533_v63, %v2107_v34 }
 0x35b   : > { %v1548_v40 = vcombine.high %v1524_v0, %v1978_v25  ;;  %v1549_v31 = vcombine.high %v1531_v1, %v1978_v25  ;;  %v1550_v2 = vcombine.high %v1540_v28, %v1978_v25  ;;  %v1551_v4 = vcombine.high %v1547_v33, %v1978_v25 }
 0x35c   : > { %v1552_v5 = vpack.c.bf16 %v1524_v0, %v1524_v0  ;;  %v1554_v6 = vpack.c.bf16 %v1531_v1, %v1531_v1  ;;  %v1556_v8 = vpack.c.bf16 %v1540_v28, %v1540_v28  ;;  %v1558_v9 = vpack.c.bf16 %v1547_v33, %v1547_v33 }
 0x35d   : > { %v1553_v10 = vpack.c.bf16 %v1548_v40, %v1548_v40  ;;  %v1555_v11 = vpack.c.bf16 %v1549_v31, %v1549_v31  ;;  %v1557_v34 = vpack.c.bf16 %v1550_v2, %v1550_v2  ;;  %v1559_v12 = vpack.c.bf16 %v1551_v4, %v1551_v4 }
 0x35e   : > { %1561 = vst.msk [vmem:[%s582_s28] sm:$0x3] %vm1560_vm11, %v1552_v5  ;;  %1563 = vst.msk [vmem:[%s582_s28 + $0x4] sm:$0x3] %vm1560_vm11, %v1554_v6 }
 0x35f   : > { %1565 = vst.msk [vmem:[%s582_s28 + $0x8] sm:$0x3] %vm1560_vm11, %v1556_v8  ;;  %1567 = vst.msk [vmem:[%s582_s28 + $0xc] sm:$0x3] %vm1560_vm11, %v1558_v9 }
 0x360   : > { %1562 = vst.msk [vmem:[%s582_s28 + $0x2] sm:$0x3] %vm1560_vm11, %v1553_v10  ;;  %1564 = vst.msk [vmem:[%s582_s28 + $0x6] sm:$0x3] %vm1560_vm11, %v1555_v11 }
 0x361   : > { %1566 = vst.msk [vmem:[%s582_s28 + $0xa] sm:$0x3] %vm1560_vm11, %v1557_v34  ;;  %1568 = vst.msk [vmem:[%s582_s28 + $0xe] sm:$0x3] %vm1560_vm11, %v1559_v12 }
 0x362 PF: > { %s15_s22 = sadd.s32 1, %s1976_s22   ;;  %s2333_s18 = smov %s1964_s19 }
 0x363   : > { %p12_p10 = scmp.ge.s32.totalorder %s15_s22, 4   ;;  %s2334_s19 = smov %s2053_s27 }
 0x364   : > { %s2335_s20 = smov %s1972_s21  ;;  %s2336_s21 = smov %s2338_s23 }
 0x365   :  { %14 = sbr.rel (!%p12_p10) target bundleno = 3 (0x3), region = 232 }

// kernel: transformer_forward.37
= control target key start
LH: loop header
LB: loop body
LE: loop exit
PB: predicated region body
PF: predicated region fallthrough
CT: control target
= control target key end

     0   :  { %vm19_vm0 = vcmask 523264   ;;  %v151_v0 = vmov 0.0   ;;  %vm152_vm1 = vmmov 0   ;;  %vm47_vm2 = vcmask 261120   ;;  %s195_s1 = inlined_call_operand.vmem [shape: bf16[32,64], index: 1, kind: input, shape index: {}]   ;;  %s196_s0 = inlined_call_operand.vmem [shape: bf16[16,32], index: 0, kind: input, shape index: {}]   ;;  %s197_s2 = inlined_call_operand.vmem [shape: f32[1,64], index: 2, kind: input, shape index: {}]   ;;  %s198_s3 = inlined_call_operand.vmem [shape: bf16[16,64], index: 3, kind: output, shape index: {}]  }
   0x1   :  { %138 = vmatprep.subr.bf16.mxu0 %v151_v0  ;;  %v148_v1 = vld [vmem:[%s195_s1 + $0x8] sm:$0xff]   ;;  %142 = vmatprep.mubr.msk.bf16.mxu0 %vm152_vm1, %v151_v0  ;;  %20 = vst.msk [vmem:[#allocation2] sm:$0xff] %vm19_vm0, %v151_v0  ;;  %21 = vst.msk [vmem:[#allocation2 + $0x8] sm:$0xff] %vm19_vm0, %v151_v0  ;;  %v149_v2 = vld [vmem:[%s195_s1] sm:$0xff]   ;;  %vm119_vm3 = vcmask 519168  }
   0x2   :  { %139 = vmatpush3.bf16.msra.mxu0 %v148_v1  ;;  %v150_v3 = vld [vmem:[%s196_s0] sm:$0xff]  }
   0x3   :  { %140 = vmatprep.subr.bf16.mxu0 %v151_v0  ;;  %v130_v12 = vld [vmem:[%s197_s2] ss:$0 sm:$0xff] }
   0x6   :  { %141 = vmatpush3.bf16.msra.mxu0 %v149_v2 }
   0x8   :  { %v22_v4 = vld [vmem:[#allocation2] sm:$0xff]  ;;  %v23_v8 = vld [vmem:[#allocation2 + $0x8] sm:$0xff] }
   0x9   :  { %143 = vmatmul.mubr.msk.bf16.vlgmr.msra.gmra.mxu0 %vm47_vm2, %v150_v3 }
  0xc9   :  { %v85_v5 = vpop.f32.mrf.mxu0 }
  0xca   :  { %v92_v6 = vadd.f32 %v85_v5, %v22_v4 }
  0xcb   :  { %v144_v7 = vpop.f32.mrf.mxu0 }
  0xcc   :  { %95 = vst.msk [vmem:[#allocation2] sm:$0xff] %vm19_vm0, %v92_v6 }
  0xcd   :  { %v88_v9 = vpop.f32.mrf.mxu0 }
  0xce   :  { %v93_v10 = vadd.f32 %v88_v9, %v23_v8 }
  0xcf   :  { %v145_v11 = vpop.f32.mrf.mxu0 }
  0xd0   :  { %96 = vst.msk [vmem:[#allocation2 + $0x8] sm:$0xff] %vm19_vm0, %v93_v10 }
  0xd3   :  { %v100_v13 = vld [vmem:[#allocation2] sm:$0xff] }
  0xd4   :  { %v109_v14 = vadd.f32 %v130_v12, %v100_v13 }
  0xd6   :  { %v133_v15 = vpack.c.bf16 %v109_v14, %v109_v14 }
  0xd7   :  { %v101_v16 = vld [vmem:[#allocation2 + $0x8] sm:$0xff] }
  0xd8   :  { %120 = vst.msk [vmem:[%s198_s3] sm:$0xf] %vm119_vm3, %v133_v15  ;;  %v110_v17 = vadd.f32 %v130_v12, %v101_v16 }
  0xda   :  { %v134_v18 = vpack.c.bf16 %v110_v17, %v110_v17 }
  0xdc   :  { %121 = vst.msk [vmem:[%s198_s3 + $0x4] sm:$0xf] %vm119_vm3, %v134_v18 }

// kernel: transformer_forward.28
= control target key start
LH: loop header
LB: loop body
LE: loop exit
PB: predicated region body
PF: predicated region fallthrough
CT: control target
= control target key end

     0   :  { %vm31_vm0 = vcmask 261120   ;;  %v337_v0 = vmov 0.0   ;;  %vm338_vm1 = vmmov 0   ;;  %vm146_vm2 = vcmask 523264   ;;  %s430_s1 = inlined_call_operand.vmem [shape: bf16[32,64], index: 1, kind: input, shape index: {}]   ;;  %s431_s3 = inlined_call_operand.vmem [shape: bf16[64,32], index: 3, kind: input, shape index: {}]   ;;  %s432_s0 = inlined_call_operand.vmem [shape: bf16[16,32], index: 0, kind: input, shape index: {}]   ;;  %s433_s2 = inlined_call_operand.vmem [shape: f32[1,64], index: 2, kind: input, shape index: {}]   ;;  %s434_s4 = inlined_call_operand.vmem [shape: f32[1,32], index: 4, kind: input, shape index: {}]   ;;  %s435_s5 = inlined_call_operand.vmem [shape: f32[1,32], index: 5, kind: input, shape index: {}]   ;;  %s436_s6 = inlined_call_operand.vmem [shape: f32[1,32], index: 6, kind: input, shape index: {}]   ;;  %s437_s7 = inlined_call_operand.vmem [shape: bf16[16,32], index: 7, kind: output, shape index: {}]  }
   0x1   :  { %304 = vmatprep.subr.bf16.mxu0 %v337_v0  ;;  %v326_v1 = vld [vmem:[%s430_s1 + $0x8] sm:$0xff]   ;;  %308 = vmatprep.mubr.msk.bf16.mxu0 %vm338_vm1, %v337_v0  ;;  %32 = vst.msk [vmem:[#allocation2] sm:$0xff] %vm31_vm0, %v337_v0  ;;  %33 = vst.msk [vmem:[#allocation2 + $0x8] sm:$0xff] %vm31_vm0, %v337_v0  ;;  %v327_v2 = vld [vmem:[%s430_s1] sm:$0xff]   ;;  %vm268_vm3 = vcmask 257024  }
   0x2   :  { %312 = vmatprep.subr.bf16.mxu1 %v337_v0  ;;  %320 = vmatprep.mubr.msk.bf16.mxu1 %vm338_vm1, %v337_v0  ;;  %v329_v3 = vld [vmem:[%s431_s3 + $0x18] sm:$0xff]   ;;  %v328_v4 = vld [vmem:[%s432_s0] sm:$0xff]   ;;  %v330_v5 = vld [vmem:[%s431_s3 + $0x10] sm:$0xff]  }
   0x3   :  { %305 = vmatpush3.bf16.msra.mxu0 %v326_v1  ;;  %313 = vmatpush3.bf16.msra.mxu1 %v329_v3  ;;  %v331_v6 = vld [vmem:[%s431_s3 + $0x8] sm:$0xff]   ;;  %v332_v7 = vld [vmem:[%s431_s3] sm:$0xff]  }
   0x4   :  { %306 = vmatprep.subr.bf16.mxu0 %v337_v0  ;;  %314 = vmatprep.subr.bf16.mxu1 %v337_v0  ;;  %v275_v8 = vld [vmem:[%s433_s2] ss:$0 sm:$0xff] }
   0x5   :  { %v293_v26 = vld [vmem:[%s432_s0] sm:$0xff]  }
   0x6   :  { %v285_v27 = vld [vmem:[%s434_s4] ss:$0 sm:$0xff]  ;;  %v294_v28 = vunpack.c.l.bf16 %v293_v26  ;;  %v295_v32 = vunpack.c.h.bf16 %v293_v26 }
   0x7   :  { %307 = vmatpush3.bf16.msra.mxu0 %v327_v2  ;;  %315 = vmatpush3.bf16.msra.mxu1 %v330_v5  ;;  %v286_v55 = vld [vmem:[%s435_s5] ss:$0 sm:$0xff] }
   0x8   :  { %316 = vmatprep.subr.bf16.mxu1 %v337_v0  ;;  %v111_v18 = vld [vmem:[#allocation2] sm:$0xff]  ;;  %v112_v22 = vld [vmem:[#allocation2 + $0x8] sm:$0xff] }
   0x9   :  { %v287_v57 = vld [vmem:[%s436_s6] ss:$0 sm:$0xff] }
   0xa   :  { %309 = vmatmul.mubr.msk.bf16.vlgmr.msra.gmra.mxu0 %vm31_vm0, %v328_v4 }
   0xb   :  { %317 = vmatpush3.bf16.msra.mxu1 %v331_v6 }
   0xc   :  { %318 = vmatprep.subr.bf16.mxu1 %v337_v0 }
   0xf   :  { %319 = vmatpush3.bf16.msra.mxu1 %v332_v7 }
  0xca   :  { %v102_v9 = vpop.f32.mrf.mxu0 }
  0xcb   :  { %v103_v11 = vadd.f32 %v275_v8, %v102_v9 }
  0xcc   :  { %v310_v10 = vpop.f32.mrf.mxu0 }
  0xcd   :  { %v109_v15 = vmax.f32 %v103_v11, 0.0 }
  0xce   :  { %v105_v12 = vpop.f32.mrf.mxu0 }
  0xcf   :  { %v106_v13 = vadd.f32 %v275_v8, %v105_v12 }
  0xd0   :  { %v311_v14 = vpop.f32.mrf.mxu0 }
  0xd1   :  { %v110_v16 = vmax.f32 %v106_v13, 0.0 }
  0xd3   :  { %v113_v17 = vpack.c.bf16 %v110_v16, %v109_v15 }
  0xd5   :  { %321 = vmatmul.mubr.msk.bf16.vlgmr.msra.gmra.mxu1 %vm146_vm2, %v113_v17 }
 0x195   :  { %v184_v19 = vpop.f32.mrf.mxu1 }
 0x196   :  { %v191_v20 = vadd.f32 %v184_v19, %v111_v18 }
 0x197   :  { %v322_v21 = vpop.f32.mrf.mxu1 }
 0x198   :  { %193 = vst.msk [vmem:[#allocation2] sm:$0xff] %vm31_vm0, %v191_v20 }
 0x199   :  { %v187_v23 = vpop.f32.mrf.mxu1 }
 0x19a   :  { %v192_v24 = vadd.f32 %v187_v23, %v112_v22 }
 0x19b   :  { %v323_v25 = vpop.f32.mrf.mxu1 }
 0x19c   :  { %194 = vst.msk [vmem:[#allocation2 + $0x8] sm:$0xff] %vm31_vm0, %v192_v24 }
 0x19f   :  { %v198_v29 = vld [vmem:[#allocation2] sm:$0xff] }
 0x1a0   :  { %v207_v30 = vadd.f32 %v285_v27, %v198_v29 }
 0x1a2   :  { %v213_v31 = vadd.f32 %v294_v28, %v207_v30 }
 0x1a3   :  { %v199_v33 = vld [vmem:[#allocation2 + $0x8] sm:$0xff] }
 0x1a4   :  { %v215_v34 = vsel %vm31_vm0, %v213_v31, 0.0  ;;  %v208_v35 = vadd.f32 %v285_v27, %v199_v33 }
 0x1a5   :  { %216 = vadd.xlane.f32.xlu0 %v215_v34 }
 0x1a6   :  { %v214_v36 = vadd.f32 %v295_v32, %v208_v35 }
 0x1a8   :  { %v218_v37 = vsel %vm31_vm0, %v214_v36, 0.0 }
 0x1a9   :  { %219 = vadd.xlane.f32.xlu0 %v218_v37 }
 0x22e   :  { %v217_v38 = vpop.xlane.xlu0 %216 }
 0x22f   :  { %v222_v39 = vmul.f32 0.03125, %v217_v38 }
 0x231   :  { %v224_v40 = vsub.f32 %v213_v31, %v222_v39 }
 0x232   :  { %v220_v41 = vpop.xlane.xlu0 %219 }
 0x233   :  { %v223_v42 = vmul.f32 0.03125, %v220_v41  ;;  %v226_v43 = vmul.f32 %v224_v40, %v224_v40 }
 0x235   :  { %v225_v44 = vsub.f32 %v214_v36, %v223_v42  ;;  %v228_v45 = vsel %vm31_vm0, %v226_v43, 0.0 }
 0x236   :  { %229 = vadd.xlane.f32.xlu1 %v228_v45 }
 0x237   :  { %v227_v46 = vmul.f32 %v225_v44, %v225_v44 }
 0x239   :  { %v231_v47 = vsel %vm31_vm0, %v227_v46, 0.0 }
 0x23a   :  { %232 = vadd.xlane.f32.xlu1 %v231_v47 }
 0x2bf   :  { %v230_v48 = vpop.xlane.xlu1 %229 }
 0x2c0   :  { %v234_v49 = vmul.f32 0.03125, %v230_v48 }
 0x2c2   :  { %v236_v50 = vadd.f32 1e-05, %v234_v49 }
 0x2c3   :  { %v233_v51 = vpop.xlane.xlu1 %232 }
 0x2c4   :  { %333 = vrsqrt.f32 %v236_v50  ;;  %v235_v52 = vmul.f32 0.03125, %v233_v51 }
 0x2c6   :  { %v237_v53 = vadd.f32 1e-05, %v235_v52 }
 0x2c8   :  { %335 = vrsqrt.f32 %v237_v53 }
 0x2d1   :  { %v334_v54 = vpop.eup %333 }
 0x2d2   :  { %v240_v56 = vmul.f32 %v334_v54, %v224_v40 }
 0x2d4   :  { %v249_v58 = vmul.f32 %v286_v55, %v240_v56 }
 0x2d5   :  { %v336_v59 = vpop.eup %335 }
 0x2d6   :  { %v258_v60 = vadd.f32 %v287_v57, %v249_v58  ;;  %v241_v61 = vmul.f32 %v336_v59, %v225_v44 }
 0x2d8   :  { %v290_v62 = vpack.c.bf16 %v258_v60, %v258_v60  ;;  %v250_v63 = vmul.f32 %v286_v55, %v241_v61 }
 0x2da   :  { %269 = vst.msk [vmem:[%s437_s7] sm:$0xf] %vm268_vm3, %v290_v62  ;;  %v259_v0 = vadd.f32 %v287_v57, %v250_v63 }
 0x2dc   :  { %v291_v1 = vpack.c.bf16 %v259_v0, %v259_v0 }
 0x2de   :  { %270 = vst.msk [vmem:[%s437_s7 + $0x4] sm:$0xf] %vm268_vm3, %v291_v1 }

// kernel: transformer_forward.26
= control target key start
LH: loop header
LB: loop body
LE: loop exit
PB: predicated region body
PF: predicated region fallthrough
CT: control target
= control target key end

     0   :  { %s1996_s18 = smov 0   ;;  %s1998_s19 = smov 0   ;;  %s2301_s0 = inlined_call_operand.vmem [shape: bf16[2,8,3,4,8], index: 0, kind: input, shape index: {}, may-alias: {0,1,2}]   ;;  %s2302_s1 = inlined_call_operand.vmem [shape: bf16[2,8,3,4,8], index: 1, kind: input, shape index: {}, may-alias: {0,1,2}]   ;;  %s2303_s2 = inlined_call_operand.vmem [shape: bf16[2,8,3,4,8], index: 2, kind: input, shape index: {}, may-alias: {0,1,2}]   ;;  %s2304_s3 = inlined_call_operand.vmem [shape: f32[2,8,1], index: 3, kind: input, shape index: {}]   ;;  %s2305_s4 = inlined_call_operand.vmem [shape: f32[2,1,8], index: 4, kind: input, shape index: {}]   ;;  %s2306_s5 = inlined_call_operand.vmem [shape: bf16[2,8,4,8], index: 5, kind: output, shape index: {}]  }
   0x1   :  { %s2000_s20 = smov 0   ;;  %s2002_s21 = smov 0  }
   0x2   :  { %s2004_s22 = smov 0  }
   0x3 LB: > { %s34_s23 = sadd.s32 1, %s1954_s21  ;;  %p50_p1 = scmp.ne.s32.totalorder %s1946_s19, %s1942_s18  ;;  %s1958_s22 = sphi %s2004_s22, %s15_s22   ;;  %s1954_s21 = sphi %s2002_s21, %s2311_s21   ;;  %s1950_s20 = sphi %s2000_s20, %s2310_s20   ;;  %s1946_s19 = sphi %s1998_s19, %s2309_s19   ;;  %s1942_s18 = sphi %s1996_s18, %s2308_s18  }
   0x4   : > { %p36_p0 = scmp.ge.s32.totalorder %s34_s23, 2  ;;  %p51_p2 = scmp.eq.s32.totalorder %s1958_s22, 0 }
   0x5   : > { %s43_s26 = sadd.s32 1, %s1946_s19  ;;  %p1718_p5 = scmp.ge.s32.totalorder %s1958_s22, 2 }
   0x6   : > { %s2313_s23 = smov (%p36_p0, %s34_s23), 0  ;;  %p2027_p3 = por %p51_p2, %p50_p1 }
   0x7   : > { %s38_s25 = ssub.s32 %s1954_s21, %s2313_s23  ;;  %216 = sbr.rel (%p1718_p5) target bundleno = 42 (0x2a), region = 16 }
   0x8   : > { %p41_p4 = scmp.eq.s32.totalorder %s38_s25, 0 }
   0xa   : > { %s2035_s27 = scalar_select %p41_p4, %s1946_s19, %s43_s26  }
   0xc   : > { %219 = sbr.rel (!%p2027_p3) target bundleno = 22 (0x16), region = 20  ;;  %s221_s28 = sand.u32 (%p2027_p3), 1, %s1946_s19  }
   0xd   : > { %s1823_s29 = smul.u32 (%p2027_p3), 48, %s1954_s21  ;;  %s1719_s30 = sshll.u32 (%p2027_p3), %s221_s28, 4 }
   0xe   : > { %s223_s9 = scalar_lea.vmem (%p2027_p3), [#allocation5], %s1719_s30 }
   0xf   : > { %s229_s8 = scalar_lea.vmem (%p2027_p3), %s2301_s0, %s1823_s29 }
  0x10   : > { %v246_v0 = vld [vmem:[%s229_s8] sm:$0x3] (%p2027_p3)  ;;  %v248_v1 = vld [vmem:[%s229_s8 + $0x6] sm:$0x3] (%p2027_p3)  ;;  %v250_v2 = vld [vmem:[%s229_s8 + $0xc] sm:$0x3] (%p2027_p3) }
  0x11   : > { %247 = vst [vmem:[%s223_s9] sm:$0x3] %v246_v0  ;;  %249 = vst [vmem:[%s223_s9 + $0x2] sm:$0x3] %v248_v1  ;;  %v252_v3 = vld [vmem:[%s229_s8 + $0x12] sm:$0x3] }
  0x12   : > { %251 = vst [vmem:[%s223_s9 + $0x4] sm:$0x3] %v250_v2  ;;  %v254_v4 = vld [vmem:[%s229_s8 + $0x18] sm:$0x3]  ;;  %v256_v5 = vld [vmem:[%s229_s8 + $0x1e] sm:$0x3] }
  0x13   : > { %253 = vst [vmem:[%s223_s9 + $0x6] sm:$0x3] %v252_v3  ;;  %255 = vst [vmem:[%s223_s9 + $0x8] sm:$0x3] %v254_v4  ;;  %v258_v6 = vld [vmem:[%s229_s8 + $0x24] sm:$0x3] }
  0x14   : > { %257 = vst [vmem:[%s223_s9 + $0xa] sm:$0x3] %v256_v5  ;;  %v260_v7 = vld [vmem:[%s229_s8 + $0x2a] sm:$0x3]  ;;  %259 = vst [vmem:[%s223_s9 + $0xc] sm:$0x3] %v258_v6 }
  0x15   : > { %261 = vst [vmem:[%s223_s9 + $0xe] sm:$0x3] %v260_v7 }
  0x16 PF: > { %301 = sbr.rel (!%p2027_p3) target bundleno = 32 (0x20), region = 61  ;;  %s303_s10 = sand.u32 (%p2027_p3), 1, %s1946_s19  }
  0x17   : > { %s1722_s11 = smul.u32 (%p2027_p3), 48, %s1954_s21  ;;  %s1721_s12 = sshll.u32 (%p2027_p3), %s303_s10, 4 }
  0x18   : > { %s305_s16 = scalar_lea.vmem (%p2027_p3), [#allocation6], %s1721_s12 }
  0x19   : > { %s1594_s15 = scalar_lea.vmem (%p2027_p3), %s2302_s1, %s1722_s11 }
  0x1a   : > { %v1723_v8 = vld [vmem:[%s1594_s15 + $0x2] sm:$0x3] (%p2027_p3)  ;;  %v1724_v9 = vld [vmem:[%s1594_s15 + $0x8] sm:$0x3] (%p2027_p3)  ;;  %v1725_v10 = vld [vmem:[%s1594_s15 + $0xe] sm:$0x3] (%p2027_p3) }
  0x1b   : > { %330 = vst [vmem:[%s305_s16] sm:$0x3] %v1723_v8  ;;  %332 = vst [vmem:[%s305_s16 + $0x2] sm:$0x3] %v1724_v9  ;;  %v1726_v11 = vld [vmem:[%s1594_s15 + $0x14] sm:$0x3] }
  0x1c   : > { %334 = vst [vmem:[%s305_s16 + $0x4] sm:$0x3] %v1725_v10  ;;  %v1727_v12 = vld [vmem:[%s1594_s15 + $0x1a] sm:$0x3]  ;;  %v1728_v13 = vld [vmem:[%s1594_s15 + $0x20] sm:$0x3] }
  0x1d   : > { %336 = vst [vmem:[%s305_s16 + $0x6] sm:$0x3] %v1726_v11  ;;  %338 = vst [vmem:[%s305_s16 + $0x8] sm:$0x3] %v1727_v12  ;;  %v1729_v14 = vld [vmem:[%s1594_s15 + $0x26] sm:$0x3] }
  0x1e   : > { %340 = vst [vmem:[%s305_s16 + $0xa] sm:$0x3] %v1728_v13  ;;  %v1730_v15 = vld [vmem:[%s1594_s15 + $0x2c] sm:$0x3]  ;;  %342 = vst [vmem:[%s305_s16 + $0xc] sm:$0x3] %v1729_v14 }
  0x1f   : > { %344 = vst [vmem:[%s305_s16 + $0xe] sm:$0x3] %v1730_v15 }
  0x20 PF: > { %384 = sbr.rel (!%p2027_p3) target bundleno = 42 (0x2a), region = 102  ;;  %s386_s17 = sand.u32 (%p2027_p3), 1, %s1946_s19  }
  0x21   : > { %s1732_s25 = smul.u32 (%p2027_p3), 48, %s1954_s21  ;;  %s1731_s26 = sshll.u32 (%p2027_p3), %s386_s17, 4 }
  0x22   : > { %s388_s6 = scalar_lea.vmem (%p2027_p3), [#allocation7], %s1731_s26 }
  0x23   : > { %s1602_s30 = scalar_lea.vmem (%p2027_p3), %s2303_s2, %s1732_s25 }
  0x24   : > { %v1733_v16 = vld [vmem:[%s1602_s30 + $0x4] sm:$0x3] (%p2027_p3)  ;;  %v1734_v17 = vld [vmem:[%s1602_s30 + $0xa] sm:$0x3] (%p2027_p3)  ;;  %v1735_v18 = vld [vmem:[%s1602_s30 + $0x10] sm:$0x3] (%p2027_p3) }
  0x25   : > { %413 = vst [vmem:[%s388_s6] sm:$0x3] %v1733_v16  ;;  %415 = vst [vmem:[%s388_s6 + $0x2] sm:$0x3] %v1734_v17  ;;  %v1736_v19 = vld [vmem:[%s1602_s30 + $0x16] sm:$0x3] }
  0x26   : > { %417 = vst [vmem:[%s388_s6 + $0x4] sm:$0x3] %v1735_v18  ;;  %v1737_v20 = vld [vmem:[%s1602_s30 + $0x1c] sm:$0x3]  ;;  %v1738_v21 = vld [vmem:[%s1602_s30 + $0x22] sm:$0x3] }
  0x27   : > { %419 = vst [vmem:[%s388_s6 + $0x6] sm:$0x3] %v1736_v19  ;;  %421 = vst [vmem:[%s388_s6 + $0x8] sm:$0x3] %v1737_v20  ;;  %v1739_v22 = vld [vmem:[%s1602_s30 + $0x28] sm:$0x3] }
  0x28   : > { %423 = vst [vmem:[%s388_s6 + $0xa] sm:$0x3] %v1738_v21  ;;  %v1740_v23 = vld [vmem:[%s1602_s30 + $0x2e] sm:$0x3]  ;;  %425 = vst [vmem:[%s388_s6 + $0xc] sm:$0x3] %v1739_v22 }
  0x29   : > { %427 = vst [vmem:[%s388_s6 + $0xe] sm:$0x3] %v1740_v23 }
  0x2a PF: > { %p1741_p6 = scmp.ge.s32.totalorder %s1958_s22, 1  ;;  %p485_p7 = scmp.lt.s32.totalorder %s1958_s22, 3 }
  0x2c   : > { %p486_p8 = pnand %p1741_p6, %p485_p7 }
  0x2d   : > { %s492_s24 = sand.u32 (!%p486_p8), 1, %s1942_s18   ;;  %p561_p9 = scmp.lt.s32.totalorder (!%p486_p8), %s1950_s20, 1 }
  0x2e   : > { %489 = sbr.rel (%p486_p8) target bundleno = 866 (0x362), region = 151  ;;  %s2063_s7 = sshll.u32 (!%p486_p8), %s492_s24, 4 }
  0x2f   : > { %s501_s18 = scalar_lea.vmem (!%p486_p8), [#allocation6], %s2063_s7  ;;  %s494_s8 = scalar_lea.vmem (!%p486_p8), [#allocation5], %s2063_s7 }
  0x30   : > { %s508_s16 = scalar_lea.vmem (!%p486_p8), [#allocation7], %s2063_s7 }
  0x33   : > { %vm598_vm0 = vcmask 64512   ;;  %v615_v24 = vlaneseq  ;;  %v1960_v25 = vmov 0.0   ;;  %v1961_v26 = vmov 1934713408   ;;  %s2315_s20 = smov (!%p561_p9, %s1950_s20), 1 }
  0x34   : > { %1775 = vmatprep.subr.bf16.mxu0 %v1960_v25  ;;  %v613_v27 = vunpack.c.l.s4 %v1961_v26  ;;  %599 = vst.msk [vmem:[#allocation4] sm:$0xff] %vm598_vm0, %v1960_v25  ;;  %600 = vst.msk [vmem:[#allocation4 + $0x8] sm:$0xff] %vm598_vm0, %v1960_v25  ;;  %1781 = vmatprep.subr.bf16.mxu1 %v1960_v25  ;;  %v1962_v29 = vmov 1983009808   ;;  %vm1963_vm1 = vmmov 0   ;;  %v1964_v32 = vmov 0   ;;  %s573_s15 = scalar_lea.vmem %s2305_s4, %s2315_s20 }
  0x35   : > { %601 = vst.msk [vmem:[#allocation4 + $0x10] sm:$0xff] %vm598_vm0, %v1960_v25  ;;  %602 = vst.msk [vmem:[#allocation4 + $0x18] sm:$0xff] %vm598_vm0, %v1960_v25  ;;  %v2075_v28 = vshrl.u32 %v615_v24, 7  ;;  %v826_v30 = vunpack.c.l.s4 %v1962_v29  ;;  %1777 = vmatprep.mubr.msk.bf16.mxu0 %vm1963_vm1, %v1960_v25  ;;  %1783 = vmatprep.mubr.msk.bf16.mxu1 %vm1963_vm1, %v1960_v25  ;;  %s1745_s9 = sshll.u32 %s2315_s20, 3  ;;  %vm589_vm4 = vcmask 7168   ;;  %vm1209_vm8 = vcmask 1043456  }
  0x36   : > { %v614_v31 = vunpack.c.0.s8 %v613_v27  ;;  %1870 = vset.pattern.permute.xlu0 %v1964_v32  ;;  %1871 = vset.pattern.permute.xlu1 %v1964_v32  ;;  %v1908_v34 = vld.sshfl [vmem:[%s501_s18] sm:$0x33 pattern:$0x73516240]  ;;  %s567_s12 = scalar_lea.vmem %s2304_s3, %s1745_s9  ;;  %594 = vst.msk [vmem:[#allocation3] sm:$0xff] %vm589_vm4, %v1960_v25  ;;  %595 = vst.msk [vmem:[#allocation3 + $0x8] sm:$0xff] %vm589_vm4, %v1960_v25 }
  0x37   : > { %v827_v35 = vunpack.c.0.s8 %v826_v30  ;;  %v1909_v36 = vld.sshfl [vmem:[%s501_s18 + $0x2] sm:$0x33 pattern:$0x73516240]  ;;  %v718_v40 = vshrl.u32 %v1908_v34, 16  ;;  %v687_v41 = vcombine.high %v1908_v34, %v1964_v32  ;;  %596 = vst.msk [vmem:[#allocation3 + $0x10] sm:$0xff] %vm589_vm4, %v1960_v25 }
  0x38   : > { %v2085_v33 = vsub.s32 %v614_v31, %v2075_v28  ;;  %v1910_v37 = vld.sshfl [vmem:[%s501_s18 + $0x8] sm:$0x33 pattern:$0x73516240]  ;;  %v717_v42 = vpack.i.b16 %v1909_v36, %v1908_v34  ;;  %v719_v44 = vshrl.u32 %v1909_v36, 16  ;;  %v696_v51 = vcombine.high %v1909_v36, %v1964_v32  ;;  %v807_v14 = vld [vmem:[%s567_s12] sm:$0xff] }
  0x39   : > { %v1911_v38 = vld.sshfl [vmem:[%s501_s18 + $0xa] sm:$0x33 pattern:$0x73516240]  ;;  %v2089_v39 = vsub.s32 %v827_v35, %v2075_v28  ;;  %v730_v45 = vshrl.u32 %v1910_v37, 16  ;;  %v705_v52 = vcombine.high %v1910_v37, %v1964_v32  ;;  %v724_v5 = vshrl.u32 %v687_v41, 16 }
  0x3a   : > { %v729_v43 = vpack.i.b16 %v1911_v38, %v1910_v37  ;;  %v1912_v46 = vld.sshfl [vmem:[%s494_s8] sm:$0x33 pattern:$0x73516240]  ;;  %v731_v48 = vshrl.u32 %v1911_v38, 16  ;;  %v714_v53 = vcombine.high %v1911_v38, %v1964_v32  ;;  %v720_v55 = vpack.i.b16 %v719_v44, %v718_v40  ;;  %597 = vst.msk [vmem:[#allocation3 + $0x18] sm:$0xff] %vm589_vm4, %v1960_v25 }
  0x3b   : > { %v1913_v47 = vld.sshfl [vmem:[%s494_s8 + $0x2] sm:$0x33 pattern:$0x73516240]  ;;  %v723_v57 = vpack.i.b16 %v696_v51, %v687_v41  ;;  %v650_v61 = vshrl.u32 %v1912_v46, 16  ;;  %v725_v9 = vshrl.u32 %v696_v51, 16  ;;  %v619_v18 = vcombine.high %v1912_v46, %v1964_v32 }
  0x3c   : > { %v1914_v49 = vld.sshfl [vmem:[%s494_s8 + $0x8] sm:$0x33 pattern:$0x73516240]  ;;  %v832_v54 = vcombine.low %v717_v42, %v729_v43  ;;  %v732_v56 = vpack.i.b16 %v731_v48, %v730_v45  ;;  %v649_v59 = vpack.i.b16 %v1913_v47, %v1912_v46  ;;  %v735_v60 = vpack.i.b16 %v714_v53, %v705_v52  ;;  %v809_v27 = vld [vmem:[%s573_s15] sm:$0x1] }
  0x3d   : > { %v1915_v50 = vld.sshfl [vmem:[%s494_s8 + $0xa] sm:$0x33 pattern:$0x73516240]  ;;  %v651_v0 = vshrl.u32 %v1913_v47, 16  ;;  %v662_v1 = vshrl.u32 %v1914_v49, 16  ;;  %v726_v17 = vpack.i.b16 %v725_v9, %v724_v5  ;;  %v628_v22 = vcombine.high %v1913_v47, %v1964_v32 }
  0x3e   : > { %v839_v58 = vrot.slane %v832_v54, %v2089_v39  ;;  %v895_v62 = vcombine.low %v720_v55, %v732_v56  ;;  %v661_v63 = vpack.i.b16 %v1915_v50, %v1914_v49  ;;  %v957_v3 = vcombine.low %v723_v57, %v735_v60  ;;  %s1758_s17 = sshll.u32 %s2315_s20, 4 }
  0x3f   : > { %v663_v4 = vshrl.u32 %v1915_v50, 16  ;;  %v652_v8 = vpack.i.b16 %v651_v0, %v650_v61  ;;  %v736_v12 = vshrl.u32 %v705_v52, 16  ;;  %v737_v13 = vshrl.u32 %v714_v53, 16  ;;  %s582_s28 = scalar_lea.vmem %s2306_s5, %s1758_s17 }
  0x40   : > { %v845_v2 = vsel %vm598_vm0, %v839_v58, 0  ;;  %v902_v6 = vrot.slane %v895_v62, %v2089_v39  ;;  %v824_v7 = vcombine.low %v649_v59, %v661_v63  ;;  %v964_v10 = vrot.slane %v957_v3, %v2089_v39 }
  0x41   : > { %1776 = vmatpush3.bf16.xpose.msra.mxu0 %v845_v2  ;;  %v664_v11 = vpack.i.b16 %v663_v4, %v662_v1  ;;  %v738_v21 = vpack.i.b16 %v737_v13, %v736_v12  ;;  %v637_v23 = vcombine.high %v1914_v49, %v1964_v32  ;;  %v646_v24 = vcombine.high %v1915_v50, %v1964_v32 }
  0x42   : > { %1787 = vmatprep.subr.bf16.mxu0 %v1960_v25  ;;  %v907_v15 = vsel %vm598_vm0, %v902_v6, 0  ;;  %v831_v16 = vrot.slane %v824_v7, %v2089_v39  ;;  %v969_v19 = vsel %vm598_vm0, %v964_v10, 0  ;;  %v656_v26 = vshrl.u32 %v619_v18, 16 }
  0x43   : > { %1782 = vmatpush3.bf16.xpose.msra.mxu1 %v907_v15  ;;  %v887_v20 = vcombine.low %v652_v8, %v664_v11  ;;  %vm808_vm2 = vcmp.gt.f32.partialorder %v807_v14, 0.0  ;;  %v1019_v30 = vcombine.low %v726_v17, %v738_v21  ;;  %v655_v31 = vpack.i.b16 %v628_v22, %v619_v18 }
  0x44   : > { %1793 = vmatprep.subr.bf16.mxu1 %v1960_v25  ;;  %v657_v34 = vshrl.u32 %v628_v22, 16  ;;  %v667_v35 = vpack.i.b16 %v646_v24, %v637_v23  ;;  %v668_v36 = vshrl.u32 %v637_v23, 16  ;;  %v669_v37 = vshrl.u32 %v646_v24, 16 }
  0x45   : > { %v894_v29 = vrot.slane %v887_v20, %v2089_v39  ;;  %v811_v38 = vsel %vm808_vm2, 1, %v1964_v32  ;;  %v1026_v40 = vrot.slane %v1019_v30, %v2089_v39  ;;  %vm810_vm3 = vcmp.gt.f32.partialorder %v809_v27, 0.0  ;;  %v1916_v24 = vld.sshfl [vmem:[%s508_s16] sm:$0x33 pattern:$0x73516240] }
  0x46   : > { %v658_v41 = vpack.i.b16 %v657_v34, %v656_v26  ;;  %813 = vperm.xlu0 %1870, %v811_v38   ;;  %v819_v42 = vsub.s32 0, %v2075_v28  ;;  %v949_v43 = vcombine.low %v655_v31, %v667_v35  ;;  %v670_v44 = vpack.i.b16 %v669_v37, %v668_v36  ;;  %v1917_v26 = vld.sshfl [vmem:[%s508_s16 + $0x2] sm:$0x33 pattern:$0x73516240] }
  0x47   : > { %v816_v45 = vsel %vm810_vm3, 1, %v1964_v32  ;;  %v1031_v46 = vsel %vm598_vm0, %v1026_v40, 0  ;;  %v1965_v50 = vmov -1e+30   ;;  %v785_v36 = vpack.i.b16 %v1917_v26, %v1916_v24 }
  0x48   : > { %1778 = vmatmul.mubr.msk.bf16.vlgmr.msra.gmra.mxu0 %vm598_vm0, %v831_v16  ;;  %v820_v47 = vrot.slane %v816_v45, %v819_v42  ;;  %v1011_v48 = vcombine.low %v658_v41, %v670_v44  ;;  %v956_v49 = vrot.slane %v949_v43, %v2089_v39  ;;  %590 = vst.msk [vmem:[#allocation2] sm:$0xff] %vm589_vm4, %v1965_v50  ;;  %591 = vst.msk [vmem:[#allocation2 + $0x8] sm:$0xff] %vm589_vm4, %v1965_v50  ;;  %v1918_v27 = vld.sshfl [vmem:[%s508_s16 + $0x8] sm:$0x33 pattern:$0x73516240] }
  0x49   : > { %1788 = vmatpush3.bf16.xpose.msra.mxu0 %v969_v19  ;;  %1789 = vmatprep.mubr.msk.bf16.mxu0 %vm1963_vm1, %v1960_v25  ;;  %592 = vst.msk [vmem:[#allocation2 + $0x10] sm:$0xff] %vm589_vm4, %v1965_v50  ;;  %593 = vst.msk [vmem:[#allocation2 + $0x18] sm:$0xff] %vm589_vm4, %v1965_v50  ;;  %v1919_v30 = vld.sshfl [vmem:[%s508_s16 + $0xa] sm:$0x33 pattern:$0x73516240] }
  0x4a   : > { %1799 = vmatprep.subr.bf16.mxu0 %v1960_v25  ;;  %1784 = vmatmul.mubr.msk.bf16.vlgmr.msra.gmra.mxu1 %vm598_vm0, %v894_v29  ;;  %v1018_v28 = vrot.slane %v1011_v48, %v2089_v39  ;;  %vm821_vm5 = vcmp.eq.s32.totalorder %v820_v47, 1  ;;  %v786_v37 = vshrl.u32 %v1916_v24, 16  ;;  %v797_v38 = vpack.i.b16 %v1919_v30, %v1918_v27 }
  0x4b   : > { %1794 = vmatpush3.bf16.xpose.msra.mxu1 %v1031_v46  ;;  %1795 = vmatprep.mubr.msk.bf16.mxu1 %vm1963_vm1, %v1960_v25  ;;  %v787_v40 = vshrl.u32 %v1917_v26, 16  ;;  %v798_v41 = vshrl.u32 %v1918_v27, 16  ;;  %v799_v42 = vshrl.u32 %v1919_v30, 16  ;;  %v755_v47 = vcombine.high %v1916_v24, %v1964_v32 }
  0x4c   : > { %1805 = vmatprep.subr.bf16.mxu1 %v1960_v25  ;;  %v1198_v44 = vcombine.low %v785_v36, %v797_v38  ;;  %v764_v48 = vcombine.high %v1917_v26, %v1964_v32  ;;  %vm1542_vm9 = vcmask 58368  }
  0x4d   : > { %v788_v45 = vpack.i.b16 %v787_v40, %v786_v37  ;;  %v800_v46 = vpack.i.b16 %v799_v42, %v798_v41 }
  0x4f   : > { %v2171_v13 = vld [vmem:[#allocation2] sm:$0xff]  ;;  %v2176_v16 = vld [vmem:[#allocation2 + $0x8] sm:$0xff] }
  0x50   : > { %1790 = vmatmul.mubr.msk.bf16.vlgmr.msra.gmra.mxu0 %vm598_vm0, %v956_v49  ;;  %v2186_v20 = vld [vmem:[#allocation2 + $0x10] sm:$0xff]  ;;  %v2197_v29 = vld [vmem:[#allocation2 + $0x18] sm:$0xff]  ;;  %v773_v49 = vcombine.high %v1918_v27, %v1964_v32 }
  0x51   : > { %1801 = vmatprep.mubr.msk.bf16.mxu0 %vm1963_vm1, %v1960_v25 }
  0x52   : > { %1796 = vmatmul.mubr.msk.bf16.vlgmr.msra.gmra.mxu1 %vm598_vm0, %v1018_v28  ;;  %v782_v28 = vcombine.high %v1919_v30, %v1964_v32 }
  0x53   : > { %1807 = vmatprep.mubr.msk.bf16.mxu1 %vm1963_vm1, %v1960_v25 }
  0xc1   : > { %v814_v51 = vpop.permute.xlu0 %813 }
  0xc2   : > { %vm815_vm6 = vcmp.eq.s32.totalorder %v814_v51, 1  ;;  %v1253_v51 = vcombine.low %v788_v45, %v800_v46 }
  0xc3   : > { %vm822_vm7 = vmand %vm815_vm6, %vm821_vm5 }
  0xc4   : > { %v823_v52 = vsel %vm822_vm7, 0.0, %v1965_v50  ;;  %v1205_v50 = vrot.slane %v1198_v44, %v2089_v39 }
 0x108   : > { %v881_v53 = vpop.f32.mrf.mxu0 }
 0x109   : > { %v2155_v54 = vadd.f32 %v881_v53, %v823_v52  ;;  %v803_v53 = vpack.i.b16 %v782_v28, %v773_v49 }
 0x10a   : > { %v1779_v55 = vpop.f32.mrf.mxu0  ;;  %v943_v56 = vpop.f32.mrf.mxu1 }
 0x10b   : > { %v1077_v57 = vsel %vm598_vm0, %v2155_v54, -inf  ;;  %v2159_v58 = vadd.f32 %v943_v56, %v823_v52  ;;  %v1211_v55 = vsel %vm1209_vm8, %v1205_v50, 0  ;;  %v1260_v56 = vrot.slane %v1253_v51, %v2089_v39  ;;  %v1140_v51 = vld [vmem:[#allocation3 + $0x18] sm:$0xff] }
 0x10c   : > { %1078 = vmax.xlane.f32.xlu0 %v1077_v57  ;;  %v884_v59 = vpop.f32.mrf.mxu0  ;;  %v1785_v60 = vpop.f32.mrf.mxu1  ;;  %v792_v57 = vshrl.u32 %v755_v47, 16  ;;  %1800 = vmatpush3.bf16.msra.mxu0 %v1211_v55 }
 0x10d   : > { %v1080_v61 = vsel %vm598_vm0, %v2159_v58, -inf  ;;  %v793_v59 = vshrl.u32 %v764_v48, 16  ;;  %1811 = vmatprep.subr.bf16.mxu0 %v1960_v25 }
 0x10e   : > { %v1780_v62 = vpop.f32.mrf.mxu0  ;;  %1081 = vmax.xlane.f32.xlu1 %v1080_v61  ;;  %v946_v63 = vpop.f32.mrf.mxu1  ;;  %v804_v61 = vshrl.u32 %v773_v49, 16 }
 0x10f   : > { %v805_v62 = vshrl.u32 %v782_v28, 16  ;;  %v1265_v63 = vsel %vm1209_vm8, %v1260_v56, 0  ;;  %v794_v32 = vpack.i.b16 %v793_v59, %v792_v57  ;;  %v1138_v28 = vld [vmem:[#allocation3 + $0x8] sm:$0xff] }
 0x110   : > { %v1005_v0 = vpop.f32.mrf.mxu0  ;;  %v1786_v1 = vpop.f32.mrf.mxu1  ;;  %1806 = vmatpush3.bf16.msra.mxu1 %v1265_v63 }
 0x111   : > { %v2163_v2 = vadd.f32 %v1005_v0, %v823_v52  ;;  %v806_v1 = vpack.i.b16 %v805_v62, %v804_v61  ;;  %1817 = vmatprep.subr.bf16.mxu1 %v1960_v25 }
 0x112   : > { %v1791_v3 = vpop.f32.mrf.mxu0  ;;  %v1067_v4 = vpop.f32.mrf.mxu1 }
 0x113   : > { %v1083_v5 = vsel %vm598_vm0, %v2163_v2, -inf  ;;  %v2167_v6 = vadd.f32 %v1067_v4, %v823_v52  ;;  %v791_v52 = vpack.i.b16 %v764_v48, %v755_v47  ;;  %v1361_v4 = vcombine.low %v794_v32, %v806_v1  ;;  %v1137_v47 = vld [vmem:[#allocation3] sm:$0xff] }
 0x114   : > { %1084 = vmax.xlane.f32.xlu1 %v1083_v5  ;;  %v1008_v7 = vpop.f32.mrf.mxu0  ;;  %v1797_v8 = vpop.f32.mrf.mxu1 }
 0x115   : > { %v1086_v11 = vsel %vm598_vm0, %v2167_v6, -inf  ;;  %v1307_v60 = vcombine.low %v791_v52, %v803_v53  ;;  %v1368_v5 = vrot.slane %v1361_v4, %v2089_v39 }
 0x116   : > { %v1792_v9 = vpop.f32.mrf.mxu0  ;;  %v1070_v10 = vpop.f32.mrf.mxu1 }
 0x117   : > { %v1314_v0 = vrot.slane %v1307_v60, %v2089_v39  ;;  %v1373_v7 = vsel %vm1209_vm8, %v1368_v5, 0  ;;  %v1167_v5 = vld [vmem:[#allocation4 + $0x8] sm:$0xff] }
 0x118   : > { %1087 = vmax.xlane.f32.xlu1 %v1086_v11  ;;  %v1798_v12 = vpop.f32.mrf.mxu1 }
 0x119   : > { %v1319_v3 = vsel %vm1209_vm8, %v1314_v0, 0 }
 0x195   : > { %v1079_v14 = vpop.xlane.xlu0 %1078 }
 0x196   : > { %v2174_v15 = vmax.f32 %v2171_v13, %v1079_v14 }
 0x197   : > { %v1082_v18 = vpop.xlane.xlu1 %1081 }
 0x198   : > { %v1093_v17 = vsub.f32 %v2171_v13, %v2174_v15  ;;  %1423 = vst.msk [vmem:[#allocation2] sm:$0xff] %vm589_vm4, %v2174_v15  ;;  %1107 = vperm.xlu1 %1871, %v2174_v15   ;;  %v2184_v19 = vmax.f32 %v2176_v16, %v1082_v18 }
 0x19a   : > { %v1094_v21 = vsub.f32 %v2176_v16, %v2184_v19  ;;  %1424 = vst.msk [vmem:[#allocation2 + $0x8] sm:$0xff] %vm589_vm4, %v2184_v19  ;;  %v1097_v44 = vmul.f32 1.442695, %v1093_v17 }
 0x19c   : > { %1112 = vperm.xlu1 %1871, %v2184_v19   ;;  %v1099_v41 = vmul.f32 1.442695, %v1094_v21 }
 0x19d   : > { %v1085_v22 = vpop.xlane.xlu1 %1084 }
 0x19e   : > { %v2195_v23 = vmax.f32 %v2186_v20, %v1085_v22 }
 0x1a0   : > { %v1095_v31 = vsub.f32 %v2186_v20, %v2195_v23  ;;  %1425 = vst.msk [vmem:[#allocation2 + $0x10] sm:$0xff] %vm589_vm4, %v2195_v23  ;;  %1117 = vperm.xlu1 %1871, %v2195_v23  }
 0x1a1   : > { %v1088_v34 = vpop.xlane.xlu1 %1087 }
 0x1a2   : > { %v2205_v35 = vmax.f32 %v2197_v29, %v1088_v34  ;;  %v1101_v16 = vmul.f32 1.442695, %v1095_v31 }
 0x1a4   : > { %v1096_v43 = vsub.f32 %v2197_v29, %v2205_v35  ;;  %1426 = vst.msk [vmem:[#allocation2 + $0x18] sm:$0xff] %vm589_vm4, %v2205_v35  ;;  %1122 = vperm.xlu0 %1870, %v2205_v35   ;;  %v1139_v29 = vld [vmem:[#allocation3 + $0x10] sm:$0xff] }
 0x1a6   : > { %v1103_v19 = vmul.f32 1.442695, %v1096_v43 }
 0x213   : > { %v1108_v8 = vpop.permute.xlu1 %1107 }
 0x214   : > { %v1125_v9 = vsub.f32 %v2155_v54, %v1108_v8 }
 0x216   : > { %v1129_v10 = vmul.f32 1.442695, %v1125_v9 }
 0x217   : > { %v1113_v11 = vpop.permute.xlu1 %1112 }
 0x218   : > { %1884 = vpow2.f32 %v1129_v10  ;;  %v1126_v12 = vsub.f32 %v2159_v58, %v1113_v11 }
 0x21a   : > { %v1131_v14 = vmul.f32 1.442695, %v1126_v12 }
 0x21b   : > { %v1118_v18 = vpop.permute.xlu1 %1117 }
 0x21c   : > { %1886 = vpow2.f32 %v1131_v14  ;;  %v1127_v22 = vsub.f32 %v2163_v2, %v1118_v18  ;;  %v1168_v14 = vld [vmem:[#allocation4 + $0x10] sm:$0xff] }
 0x21e   : > { %v1133_v24 = vmul.f32 1.442695, %v1127_v22 }
 0x21f   : > { %v1123_v26 = vpop.permute.xlu0 %1122 }
 0x220   : > { %1888 = vpow2.f32 %v1133_v24  ;;  %v1128_v27 = vsub.f32 %v2167_v6, %v1123_v26 }
 0x222   : > { %v1135_v30 = vmul.f32 1.442695, %v1128_v27 }
 0x224   : > { %1890 = vpow2.f32 %v1135_v30 }
 0x225   : > { %v1885_v34 = vpop.eup %1884  ;;  %1892 = vpow2.f32 %v1099_v41 }
 0x226   : > { %v1145_v54 = vsel %vm598_vm0, %v1885_v34, 0.0  ;;  %v1194_v36 = vpack.c.bf16 %v1885_v34, %v1885_v34  ;;  %1894 = vpow2.f32 %v1097_v44 }
 0x227   : > { %1146 = vadd.xlane.f32.xlu1 %v1145_v54  ;;  %1896 = vpow2.f32 %v1101_v16  ;;  %v1169_v54 = vld [vmem:[#allocation4 + $0x18] sm:$0xff] }
 0x228   : > { %1802 = vmatmul.mubr.msk.bf16.vlgmr.msra.gmra.mxu0 %vm598_vm0, %v1194_v36  ;;  %1898 = vpow2.f32 %v1103_v19 }
 0x229   : > { %v1887_v58 = vpop.eup %1886  ;;  %1812 = vmatpush3.bf16.msra.mxu0 %v1319_v3  ;;  %1813 = vmatprep.mubr.msk.bf16.mxu0 %vm1963_vm1, %v1960_v25  ;;  %v1166_v3 = vld [vmem:[#allocation4] sm:$0xff] }
 0x22a   : > { %v1148_v2 = vsel %vm598_vm0, %v1887_v58, 0.0  ;;  %v1195_v37 = vpack.c.bf16 %v1887_v58, %v1887_v58 }
 0x22b   : > { %1149 = vadd.xlane.f32.xlu0 %v1148_v2 }
 0x22c   : > { %1808 = vmatmul.mubr.msk.bf16.vlgmr.msra.gmra.mxu1 %vm598_vm0, %v1195_v37 }
 0x22d   : > { %v1889_v6 = vpop.eup %1888  ;;  %1818 = vmatpush3.bf16.msra.mxu1 %v1373_v7  ;;  %1819 = vmatprep.mubr.msk.bf16.mxu1 %vm1963_vm1, %v1960_v25 }
 0x22e   : > { %v1151_v38 = vsel %vm598_vm0, %v1889_v6, 0.0  ;;  %v1196_v40 = vpack.c.bf16 %v1889_v6, %v1889_v6 }
 0x22f   : > { %1152 = vadd.xlane.f32.xlu1 %v1151_v38 }
 0x230   : > { %1814 = vmatmul.mubr.msk.bf16.vlgmr.msra.gmra.mxu0 %vm598_vm0, %v1196_v40 }
 0x231   : > { %v1891_v42 = vpop.eup %1890 }
 0x232   : > { %v1154_v45 = vsel %vm598_vm0, %v1891_v42, 0.0  ;;  %v1197_v46 = vpack.c.bf16 %v1891_v42, %v1891_v42  ;;  %v1893_v13 = vpop.eup %1892 }
 0x233   : > { %1155 = vadd.xlane.f32.xlu1 %v1154_v45  ;;  %v1895_v15 = vpop.eup %1894  ;;  %v1142_v23 = vmul.f32 %v1893_v13, %v1138_v28 }
 0x234   : > { %1820 = vmatmul.mubr.msk.bf16.vlgmr.msra.gmra.mxu1 %vm598_vm0, %v1197_v46  ;;  %v1897_v17 = vpop.eup %1896  ;;  %v1141_v48 = vmul.f32 %v1895_v15, %v1137_v47 }
 0x235   : > { %v1899_v21 = vpop.eup %1898  ;;  %v1143_v43 = vmul.f32 %v1897_v17, %v1139_v29 }
 0x236   : > { %v1144_v55 = vmul.f32 %v1899_v21, %v1140_v51 }
 0x241   : > { %1177 = vperm.xlu0 %1870, %v1893_v13  }
 0x244   : > { %1172 = vperm.xlu1 %1871, %v1895_v15  }
 0x248   : > { %1182 = vperm.xlu1 %1871, %v1897_v17  }
 0x24c   : > { %1187 = vperm.xlu1 %1871, %v1899_v21  }
 0x2b0   : > { %v1147_v49 = vpop.xlane.xlu1 %1146 }
 0x2b1   : > { %v1157_v20 = vadd.f32 %v1147_v49, %v1141_v48 }
 0x2b3   : > { %1162 = vst.msk [vmem:[#allocation3] sm:$0xff] %vm589_vm4, %v1157_v20 }
 0x2b4   : > { %v1150_v31 = vpop.xlane.xlu0 %1149 }
 0x2b5   : > { %v1158_v35 = vadd.f32 %v1150_v31, %v1142_v23 }
 0x2b7   : > { %1163 = vst.msk [vmem:[#allocation3 + $0x8] sm:$0xff] %vm589_vm4, %v1158_v35 }
 0x2b8   : > { %v1153_v50 = vpop.xlane.xlu1 %1152 }
 0x2b9   : > { %v1159_v52 = vadd.f32 %v1153_v50, %v1143_v43 }
 0x2ba   : > { %v1434_v53 = vld [vmem:[#allocation3] sm:$0xff] }
 0x2bb   : > { %1164 = vst.msk [vmem:[#allocation3 + $0x10] sm:$0xff] %vm589_vm4, %v1159_v52  ;;  %1900 = vrcp.f32 %v1434_v53 }
 0x2bc   : > { %v1156_v56 = vpop.xlane.xlu1 %1155  ;;  %v1178_v7 = vpop.permute.xlu0 %1177 }
 0x2bd   : > { %v1160_v57 = vadd.f32 %v1156_v56, %v1144_v55  ;;  %v1191_v12 = vmul.f32 %v1178_v7, %v1167_v5 }
 0x2be   : > { %v1435_v59 = vld [vmem:[#allocation3 + $0x8] sm:$0xff] }
 0x2bf   : > { %1165 = vst.msk [vmem:[#allocation3 + $0x18] sm:$0xff] %vm589_vm4, %v1160_v57  ;;  %1902 = vrcp.f32 %v1435_v59 }
 0x2c0   : > { %v1173_v1 = vpop.permute.xlu1 %1172 }
 0x2c1   : > { %v1190_v4 = vmul.f32 %v1173_v1, %v1166_v3 }
 0x2c2   : > { %v1436_v60 = vld [vmem:[#allocation3 + $0x10] sm:$0xff] }
 0x2c3   : > { %1904 = vrcp.f32 %v1436_v60 }
 0x2c4   : > { %v1183_v9 = vpop.permute.xlu1 %1182 }
 0x2c5   : > { %v1192_v30 = vmul.f32 %v1183_v9, %v1168_v14 }
 0x2c6   : > { %v1437_v61 = vld [vmem:[#allocation3 + $0x18] sm:$0xff] }
 0x2c7   : > { %1906 = vrcp.f32 %v1437_v61 }
 0x2c8   : > { %v1901_v62 = vpop.eup %1900  ;;  %v1188_v34 = vpop.permute.xlu1 %1187 }
 0x2c9   : > { %1444 = vperm.xlu1 %1871, %v1901_v62   ;;  %v1193_v38 = vmul.f32 %v1188_v34, %v1169_v54 }
 0x2cc   : > { %v1903_v63 = vpop.eup %1902 }
 0x2cd   : > { %1449 = vperm.xlu0 %1870, %v1903_v63  }
 0x2d0   : > { %v1905_v32 = vpop.eup %1904 }
 0x2d1   : > { %1454 = vperm.xlu1 %1871, %v1905_v32  }
 0x2d4   : > { %v1907_v0 = vpop.eup %1906 }
 0x2d5   : > { %1459 = vperm.xlu0 %1870, %v1907_v0  }
 0x2e8   : > { %v1247_v8 = vpop.f32.mrf.mxu0 }
 0x2e9   : > { %v1415_v10 = vadd.f32 %v1247_v8, %v1190_v4 }
 0x2ea   : > { %v1803_v11 = vpop.f32.mrf.mxu0 }
 0x2eb   : > { %1419 = vst.msk [vmem:[#allocation4] sm:$0xff] %vm598_vm0, %v1415_v10 }
 0x2ec   : > { %v1250_v18 = vpop.f32.mrf.mxu0  ;;  %v1301_v22 = vpop.f32.mrf.mxu1 }
 0x2ed   : > { %v1416_v24 = vadd.f32 %v1301_v22, %v1191_v12 }
 0x2ee   : > { %v1804_v26 = vpop.f32.mrf.mxu0  ;;  %v1809_v27 = vpop.f32.mrf.mxu1 }
 0x2ef   : > { %1420 = vst.msk [vmem:[#allocation4 + $0x8] sm:$0xff] %vm598_vm0, %v1416_v24 }
 0x2f0   : > { %v1304_v36 = vpop.f32.mrf.mxu1  ;;  %v1355_v58 = vpop.f32.mrf.mxu0 }
 0x2f1   : > { %v1417_v2 = vadd.f32 %v1355_v58, %v1192_v30 }
 0x2f2   : > { %v1810_v37 = vpop.f32.mrf.mxu1  ;;  %v1815_v6 = vpop.f32.mrf.mxu0  ;;  %v1430_v47 = vld [vmem:[#allocation4] sm:$0xff] }
 0x2f3   : > { %1421 = vst.msk [vmem:[#allocation4 + $0x10] sm:$0xff] %vm598_vm0, %v1417_v2 }
 0x2f4   : > { %v1358_v40 = vpop.f32.mrf.mxu0  ;;  %v1409_v41 = vpop.f32.mrf.mxu1 }
 0x2f5   : > { %v1418_v42 = vadd.f32 %v1409_v41, %v1193_v38 }
 0x2f6   : > { %v1816_v44 = vpop.f32.mrf.mxu0  ;;  %v1821_v45 = vpop.f32.mrf.mxu1  ;;  %v1431_v49 = vld [vmem:[#allocation4 + $0x8] sm:$0xff] }
 0x2f7   : > { %1422 = vst.msk [vmem:[#allocation4 + $0x18] sm:$0xff] %vm598_vm0, %v1418_v42 }
 0x2f8   : > { %v1412_v46 = vpop.f32.mrf.mxu1 }
 0x2fa   : > { %v1822_v16 = vpop.f32.mrf.mxu1  ;;  %v1432_v17 = vld [vmem:[#allocation4 + $0x10] sm:$0xff] }
 0x2fe   : > { %v1433_v20 = vld [vmem:[#allocation4 + $0x18] sm:$0xff] }
 0x344   : > { %v1445_v19 = vpop.permute.xlu1 %1444 }
 0x345   : > { %v1462_v48 = vmul.f32 %v1445_v19, %v1430_v47 }
 0x348   : > { %v1450_v13 = vpop.permute.xlu0 %1449 }
 0x349   : > { %v1463_v23 = vmul.f32 %v1450_v13, %v1431_v49 }
 0x34c   : > { %v1455_v15 = vpop.permute.xlu1 %1454 }
 0x34d   : > { %v1464_v21 = vmul.f32 %v1455_v15, %v1432_v17 }
 0x34f   : > { %v1466_v31 = vcombine.low %v1462_v48, %v1464_v21  ;;  %v1467_v29 = vcombine.high %v1462_v48, %v1464_v21 }
 0x350   : > { %v1460_v28 = vpop.permute.xlu0 %1459 }
 0x351   : > { %v1465_v35 = vmul.f32 %v1460_v28, %v1433_v20  ;;  %v1474_v51 = vrot.slane %v1466_v31, %v2089_v39  ;;  %v1481_v52 = vrot.slane %v1467_v29, %v2089_v39 }
 0x353   : > { %v1482_v43 = vcombine.low %v1463_v23, %v1465_v35  ;;  %v1483_v50 = vcombine.high %v1463_v23, %v1465_v35 }
 0x355   : > { %v1490_v53 = vrot.slane %v1482_v43, %v2089_v39  ;;  %v1497_v55 = vrot.slane %v1483_v50, %v2089_v39 }
 0x357   : > { %v1498_v56 = vcombine.low %v1474_v51, %v1490_v53  ;;  %v1499_v57 = vcombine.high %v1474_v51, %v1490_v53  ;;  %v1514_v59 = vcombine.low %v1481_v52, %v1497_v55  ;;  %v1515_v60 = vcombine.high %v1481_v52, %v1497_v55 }
 0x359   : > { %v1506_v61 = vrot.slane %v1498_v56, %v2085_v33  ;;  %v1513_v62 = vrot.slane %v1499_v57, %v2085_v33  ;;  %v1522_v63 = vrot.slane %v1514_v59, %v2085_v33  ;;  %v1529_v32 = vrot.slane %v1515_v60, %v2085_v33 }
 0x35b   : > { %v1530_v39 = vcombine.high %v1506_v61, %v1960_v25  ;;  %v1531_v0 = vcombine.high %v1513_v62, %v1960_v25  ;;  %v1532_v1 = vcombine.high %v1522_v63, %v1960_v25  ;;  %v1533_v3 = vcombine.high %v1529_v32, %v1960_v25 }
 0x35c   : > { %v1534_v4 = vpack.c.bf16 %v1506_v61, %v1506_v61  ;;  %v1536_v5 = vpack.c.bf16 %v1513_v62, %v1513_v62  ;;  %v1538_v7 = vpack.c.bf16 %v1522_v63, %v1522_v63  ;;  %v1540_v8 = vpack.c.bf16 %v1529_v32, %v1529_v32 }
 0x35d   : > { %v1535_v9 = vpack.c.bf16 %v1530_v39, %v1530_v39  ;;  %v1537_v10 = vpack.c.bf16 %v1531_v0, %v1531_v0  ;;  %v1539_v33 = vpack.c.bf16 %v1532_v1, %v1532_v1  ;;  %v1541_v11 = vpack.c.bf16 %v1533_v3, %v1533_v3 }
 0x35e   : > { %1543 = vst.msk [vmem:[%s582_s28] sm:$0x3] %vm1542_vm9, %v1534_v4  ;;  %1545 = vst.msk [vmem:[%s582_s28 + $0x4] sm:$0x3] %vm1542_vm9, %v1536_v5 }
 0x35f   : > { %1547 = vst.msk [vmem:[%s582_s28 + $0x8] sm:$0x3] %vm1542_vm9, %v1538_v7  ;;  %1549 = vst.msk [vmem:[%s582_s28 + $0xc] sm:$0x3] %vm1542_vm9, %v1540_v8 }
 0x360   : > { %1544 = vst.msk [vmem:[%s582_s28 + $0x2] sm:$0x3] %vm1542_vm9, %v1535_v9  ;;  %1546 = vst.msk [vmem:[%s582_s28 + $0x6] sm:$0x3] %vm1542_vm9, %v1537_v10 }
 0x361   : > { %1548 = vst.msk [vmem:[%s582_s28 + $0xa] sm:$0x3] %vm1542_vm9, %v1539_v33  ;;  %1550 = vst.msk [vmem:[%s582_s28 + $0xe] sm:$0x3] %vm1542_vm9, %v1541_v11 }
 0x362 PF: > { %s15_s22 = sadd.s32 1, %s1958_s22   ;;  %s2308_s18 = smov %s1946_s19 }
 0x363   : > { %p12_p10 = scmp.ge.s32.totalorder %s15_s22, 4   ;;  %s2309_s19 = smov %s2035_s27 }
 0x364   : > { %s2310_s20 = smov %s1954_s21  ;;  %s2311_s21 = smov %s2313_s23 }
 0x365   :  { %14 = sbr.rel (!%p12_p10) target bundleno = 3 (0x3), region = 228 }

// kernel: transformer_forward.49
= control target key start
LH: loop header
LB: loop body
LE: loop exit
PB: predicated region body
PF: predicated region fallthrough
CT: control target
= control target key end

     0   :  { %v176_v1 = vmov 0.0   ;;  %vm177_vm0 = vmmov 0   ;;  %vm20_vm1 = vcmask 334848   ;;  %s222_s0 = inlined_call_operand.vmem [shape: bf16[16,32], index: 0, kind: input, shape index: {}]   ;;  %s223_s1 = inlined_call_operand.vmem [shape: bf16[32,41], index: 1, kind: input, shape index: {}]   ;;  %s224_s2 = inlined_call_operand.vmem [shape: f32[1,41], index: 2, kind: input, shape index: {}]   ;;  %s225_s3 = inlined_call_operand.hbm [shape: f32[16,41], index: 3, kind: output, shape index: {}]  }
   0x1   :  { %v151_v0 = vld [vmem:[%s223_s1 + $0x8] sm:$0xff]   ;;  %138 = vmatprep.subr.bf16.mxu0 %v176_v1  ;;  %v152_v2 = vld [vmem:[%s223_s1] sm:$0xff]   ;;  %142 = vmatprep.mubr.msk.bf16.mxu0 %vm177_vm0, %v176_v1 }
   0x2   :  { %139 = vmatpush3.bf16.msra.mxu0 %v151_v0 }
   0x3   :  { %140 = vmatprep.subr.bf16.mxu0 %v176_v1 }
   0x4   :  { %8 = vsyncpa [#allocation4], 0  ;;  %21 = vst.msk [vmem:[#allocation2] sm:$0xff] %vm20_vm1, %v176_v1  ;;  %v153_v3 = vld [vmem:[%s222_s0] sm:$0xff]   ;;  %vm48_vm2 = vcmask 261120   ;;  %s178_s0 = smov [#allocation3]  }
   0x5   :  { %22 = vst.msk [vmem:[#allocation2 + $0x8] sm:$0xff] %vm20_vm1, %v176_v1  ;;  %v134_v12 = vld [vmem:[%s224_s2] ss:$0 sm:$0xff]  ;;  %s119_s19 = sshll.u32 %s178_s0, 4  ;;  %s120_s19 = int_to_ptr.vmem [resolvable:$true] %s119_s19 }
   0x6   :  { %141 = vmatpush3.bf16.msra.mxu0 %v152_v2  ;;  %s154_s20 = scalar_lea.vmem %s120_s19, 256  ;;  %p159_p1 = scmp.lt.s32.totalorder %s120_s19, %s120_s19 }
   0x7   :  { %p155_p0 = scmp.ne.s32.totalorder %s120_s19, %s154_s20  ;;  %p160_p2 = scmp.lt.s32.totalorder %s154_s20, %s154_s20 }
   0x9   :  { %143 = vmatmul.mubr.msk.bf16.vlgmr.msra.gmra.mxu0 %vm48_vm2, %v153_v3  ;;  %p161_p3 = por %p160_p2, %p159_p1 }
   0xb   :  { %v23_v4 = vld [vmem:[#allocation2] sm:$0xff]  ;;  %p162_p4 = pnand %p161_p3, %p155_p0 }
   0xc   :  { %v24_v8 = vld [vmem:[#allocation2 + $0x8] sm:$0xff] }
  0xc9   :  { %v86_v5 = vpop.f32.mrf.mxu0 }
  0xca   :  { %v93_v6 = vadd.f32 %v86_v5, %v23_v4 }
  0xcb   :  { %v144_v7 = vpop.f32.mrf.mxu0 }
  0xcc   :  { %96 = vst.msk [vmem:[#allocation2] sm:$0xff] %vm20_vm1, %v93_v6 }
  0xcd   :  { %v89_v9 = vpop.f32.mrf.mxu0 }
  0xce   :  { %v94_v10 = vadd.f32 %v89_v9, %v24_v8 }
  0xcf   :  { %v145_v11 = vpop.f32.mrf.mxu0 }
  0xd0   :  { %97 = vst.msk [vmem:[#allocation2 + $0x8] sm:$0xff] %vm20_vm1, %v94_v10 }
  0xd3   :  { %v101_v13 = vld [vmem:[#allocation2] sm:$0xff] }
  0xd4   :  { %v110_v14 = vadd.f32 %v134_v12, %v101_v13 }
  0xd6   :  { %112 = vst.msk [vmem:[#allocation3] sm:$0xff] %vm20_vm1, %v110_v14 }
  0xd7   :  { %v102_v15 = vld [vmem:[#allocation2 + $0x8] sm:$0xff] }
  0xd8   :  { %v111_v16 = vadd.f32 %v134_v12, %v102_v15 }
  0xda   :  { %113 = vst.msk [vmem:[#allocation3 + $0x8] sm:$0xff] %vm20_vm1, %v111_v16 }
  0xdb   :  { %165 = shalt.err (!%p162_p4)
}
  0xdc   :  { %s179_s21 = smov 128   ;;  %s180_s2 = smov 8  }
  0xdd   :  { %125 = dma.vmem_to_hbm [thread:$0]  %s120_s19, 256, %s225_s3, [#allocation4], %s179_s21, %s179_s21, %s180_s2  }
  0xde   :  { %174 = dma.done.wait [#allocation4], 256  }
  0xdf   :  { %175 = vsyncadd [#allocation4], 4294967040 }
  0xe0   :  { %129 = vsyncpa [#allocation4], 1 }

// kernel: transformer_forward.38
= control target key start
LH: loop header
LB: loop body
LE: loop exit
PB: predicated region body
PF: predicated region fallthrough
CT: control target
= control target key end

     0   :  { %s1924_s18 = smov 0   ;;  %s1926_s19 = smov 0   ;;  %s2232_s0 = inlined_call_operand.vmem [shape: bf16[2,8,1,4,8], index: 0, kind: input, shape index: {}]   ;;  %s2233_s1 = inlined_call_operand.vmem [shape: bf16[2,8,2,4,8], index: 1, kind: input, shape index: {}, may-alias: {1,2}]   ;;  %s2234_s2 = inlined_call_operand.vmem [shape: bf16[2,8,2,4,8], index: 2, kind: input, shape index: {}, may-alias: {1,2}]   ;;  %s2235_s3 = inlined_call_operand.vmem [shape: f32[2,8,1], index: 3, kind: input, shape index: {}]   ;;  %s2236_s4 = inlined_call_operand.vmem [shape: f32[2,1,8], index: 4, kind: input, shape index: {}]   ;;  %s2237_s5 = inlined_call_operand.vmem [shape: bf16[2,8,4,8], index: 5, kind: output, shape index: {}]  }
   0x1   :  { %s1928_s20 = smov 0   ;;  %s1930_s21 = smov 0  }
   0x2   :  { %s1932_s22 = smov 0  }
   0x3 LB: > { %s34_s23 = sadd.s32 1, %s1882_s21  ;;  %p78_p1 = scmp.ne.s32.totalorder %s1874_s19, %s1870_s18  ;;  %s1886_s22 = sphi %s1932_s22, %s15_s22   ;;  %s1882_s21 = sphi %s1930_s21, %s2242_s21   ;;  %s1878_s20 = sphi %s1928_s20, %s2241_s20   ;;  %s1874_s19 = sphi %s1926_s19, %s2240_s19   ;;  %s1870_s18 = sphi %s1924_s18, %s2239_s18  }
   0x4   : > { %p36_p0 = scmp.ge.s32.totalorder %s34_s23, 2  ;;  %p79_p2 = scmp.eq.s32.totalorder %s1886_s22, 0 }
   0x5   : > { %s71_s26 = sadd.s32 1, %s1874_s19  ;;  %p1651_p5 = scmp.ge.s32.totalorder %s1886_s22, 2 }
   0x6   : > { %s2244_s23 = smov (%p36_p0, %s34_s23), 0  ;;  %p1955_p3 = por %p79_p2, %p78_p1 }
   0x7   : > { %s66_s25 = ssub.s32 %s1882_s21, %s2244_s23  ;;  %216 = sbr.rel (%p1651_p5) target bundleno = 30 (0x1e), region = 16 }
   0x8   : > { %p69_p4 = scmp.eq.s32.totalorder %s66_s25, 0 }
   0xa   : > { %s1963_s27 = scalar_select %p69_p4, %s1874_s19, %s71_s26  }
   0xc   : > { %232 = sbr.rel (!%p1955_p3) target bundleno = 21 (0x15), region = 24  ;;  %s234_s28 = sand.u32 (%p1955_p3), 1, %s1874_s19  }
   0xd   : > { %s1684_s29 = sshll.u32 (%p1955_p3), %s1882_s21, 5  ;;  %s1652_s30 = sshll.u32 (%p1955_p3), %s234_s28, 4 }
   0xe   : > { %s242_s8 = scalar_lea.vmem (%p1955_p3), %s2233_s1, %s1684_s29  ;;  %s236_s9 = scalar_lea.vmem (%p1955_p3), [#allocation5], %s1652_s30 }
   0xf   : > { %v259_v0 = vld [vmem:[%s242_s8] sm:$0x3] (%p1955_p3)  ;;  %v261_v1 = vld [vmem:[%s242_s8 + $0x4] sm:$0x3] (%p1955_p3)  ;;  %v263_v2 = vld [vmem:[%s242_s8 + $0x8] sm:$0x3] (%p1955_p3) }
  0x10   : > { %260 = vst [vmem:[%s236_s9] sm:$0x3] (%p1955_p3), %v259_v0  ;;  %262 = vst [vmem:[%s236_s9 + $0x2] sm:$0x3] (%p1955_p3), %v261_v1  ;;  %v265_v3 = vld [vmem:[%s242_s8 + $0xc] sm:$0x3] (%p1955_p3) }
  0x11   : > { %v267_v4 = vld [vmem:[%s242_s8 + $0x10] sm:$0x3]  ;;  %264 = vst [vmem:[%s236_s9 + $0x4] sm:$0x3] %v263_v2  ;;  %266 = vst [vmem:[%s236_s9 + $0x6] sm:$0x3] %v265_v3 }
  0x12   : > { %268 = vst [vmem:[%s236_s9 + $0x8] sm:$0x3] %v267_v4  ;;  %v269_v5 = vld [vmem:[%s242_s8 + $0x14] sm:$0x3]  ;;  %v271_v6 = vld [vmem:[%s242_s8 + $0x18] sm:$0x3] }
  0x13   : > { %v273_v7 = vld [vmem:[%s242_s8 + $0x1c] sm:$0x3]  ;;  %270 = vst [vmem:[%s236_s9 + $0xa] sm:$0x3] %v269_v5  ;;  %272 = vst [vmem:[%s236_s9 + $0xc] sm:$0x3] %v271_v6 }
  0x14   : > { %274 = vst [vmem:[%s236_s9 + $0xe] sm:$0x3] %v273_v7 }
  0x15 PF: > { %314 = sbr.rel (!%p1955_p3) target bundleno = 30 (0x1e), region = 65  ;;  %s316_s10 = sand.u32 (%p1955_p3), 1, %s1874_s19  }
  0x16   : > { %s1685_s11 = sshll.u32 (%p1955_p3), %s1882_s21, 5  ;;  %s1655_s12 = sshll.u32 (%p1955_p3), %s316_s10, 4 }
  0x17   : > { %s1535_s15 = scalar_lea.vmem (%p1955_p3), %s2234_s2, %s1685_s11  ;;  %s318_s16 = scalar_lea.vmem (%p1955_p3), [#allocation6], %s1655_s12 }
  0x18   : > { %v1658_v8 = vld [vmem:[%s1535_s15 + $0x2] sm:$0x3] (%p1955_p3)  ;;  %v1659_v9 = vld [vmem:[%s1535_s15 + $0x6] sm:$0x3] (%p1955_p3)  ;;  %v1660_v10 = vld [vmem:[%s1535_s15 + $0xa] sm:$0x3] (%p1955_p3) }
  0x19   : > { %343 = vst [vmem:[%s318_s16] sm:$0x3] (%p1955_p3), %v1658_v8  ;;  %345 = vst [vmem:[%s318_s16 + $0x2] sm:$0x3] (%p1955_p3), %v1659_v9  ;;  %v1661_v11 = vld [vmem:[%s1535_s15 + $0xe] sm:$0x3] (%p1955_p3) }
  0x1a   : > { %v1662_v12 = vld [vmem:[%s1535_s15 + $0x12] sm:$0x3]  ;;  %347 = vst [vmem:[%s318_s16 + $0x4] sm:$0x3] %v1660_v10  ;;  %349 = vst [vmem:[%s318_s16 + $0x6] sm:$0x3] %v1661_v11 }
  0x1b   : > { %351 = vst [vmem:[%s318_s16 + $0x8] sm:$0x3] %v1662_v12  ;;  %v1663_v13 = vld [vmem:[%s1535_s15 + $0x16] sm:$0x3]  ;;  %v1664_v14 = vld [vmem:[%s1535_s15 + $0x1a] sm:$0x3] }
  0x1c   : > { %v1665_v15 = vld [vmem:[%s1535_s15 + $0x1e] sm:$0x3]  ;;  %353 = vst [vmem:[%s318_s16 + $0xa] sm:$0x3] %v1663_v13  ;;  %355 = vst [vmem:[%s318_s16 + $0xc] sm:$0x3] %v1664_v14 }
  0x1d   : > { %357 = vst [vmem:[%s318_s16 + $0xe] sm:$0x3] %v1665_v15 }
  0x1e PF: > { %p1666_p6 = scmp.ge.s32.totalorder %s1886_s22, 1  ;;  %p415_p7 = scmp.lt.s32.totalorder %s1886_s22, 3 }
  0x20   : > { %p416_p8 = pnand %p1666_p6, %p415_p7 }
  0x21   : > { %s422_s17 = sand.u32 (!%p416_p8), 1, %s1870_s18   ;;  %p487_p9 = scmp.lt.s32.totalorder (!%p416_p8), %s1878_s20, 1 }
  0x22   : > { %419 = sbr.rel (%p416_p8) target bundleno = 854 (0x356), region = 114  ;;  %s1667_s24 = sshll.u32 (!%p416_p8), %s422_s17, 4 }
  0x23   : > { %s424_s18 = scalar_lea.vmem (!%p416_p8), [#allocation5], %s1667_s24  ;;  %s2010_s25 = scalar_lea.vmem (!%p416_p8), [#allocation6], %s1667_s24 }
  0x27   : > { %vm535_vm0 = vcmask 64512   ;;  %v552_v16 = vlaneseq  ;;  %v1888_v17 = vmov 0.0   ;;  %v1889_v18 = vmov 1934713408   ;;  %s2246_s20 = smov (!%p487_p9, %s1878_s20), 1 }
  0x28   : > { %1704 = vmatprep.subr.bf16.mxu0 %v1888_v17  ;;  %v550_v19 = vunpack.c.l.s4 %v1889_v18  ;;  %536 = vst.msk [vmem:[#allocation4] sm:$0xff] %vm535_vm0, %v1888_v17  ;;  %537 = vst.msk [vmem:[#allocation4 + $0x8] sm:$0xff] %vm535_vm0, %v1888_v17  ;;  %1710 = vmatprep.subr.bf16.mxu1 %v1888_v17  ;;  %v1890_v21 = vmov 1983009808   ;;  %vm1891_vm1 = vmmov 0   ;;  %v1892_v24 = vmov 0   ;;  %s510_s12 = scalar_lea.vmem %s2236_s4, %s2246_s20 }
  0x29   : > { %538 = vst.msk [vmem:[#allocation4 + $0x10] sm:$0xff] %vm535_vm0, %v1888_v17  ;;  %539 = vst.msk [vmem:[#allocation4 + $0x18] sm:$0xff] %vm535_vm0, %v1888_v17  ;;  %v1994_v20 = vshrl.u32 %v552_v16, 7  ;;  %v763_v22 = vunpack.c.l.s4 %v1890_v21  ;;  %1706 = vmatprep.mubr.msk.bf16.mxu0 %vm1891_vm1, %v1888_v17  ;;  %1712 = vmatprep.mubr.msk.bf16.mxu1 %vm1891_vm1, %v1888_v17  ;;  %s1686_s26 = sshll.u32 %s2246_s20, 4  ;;  %s1671_s6 = sshll.u32 %s2246_s20, 3  ;;  %vm526_vm4 = vcmask 7168  }
  0x2a   : > { %v551_v23 = vunpack.c.0.s8 %v550_v19  ;;  %1798 = vset.pattern.permute.xlu0 %v1892_v24  ;;  %1799 = vset.pattern.permute.xlu1 %v1892_v24  ;;  %v1836_v26 = vld.sshfl [vmem:[%s424_s18] sm:$0x33 pattern:$0x73516240]  ;;  %s494_s30 = scalar_lea.vmem %s2232_s0, %s1686_s26  ;;  %s504_s9 = scalar_lea.vmem %s2235_s3, %s1671_s6  ;;  %531 = vst.msk [vmem:[#allocation3] sm:$0xff] %vm526_vm4, %v1888_v17  ;;  %532 = vst.msk [vmem:[#allocation3 + $0x8] sm:$0xff] %vm526_vm4, %v1888_v17 }
  0x2b   : > { %v764_v27 = vunpack.c.0.s8 %v763_v22  ;;  %v1837_v28 = vld.sshfl [vmem:[%s424_s18 + $0x2] sm:$0x33 pattern:$0x73516240]  ;;  %v655_v32 = vshrl.u32 %v1836_v26, 16  ;;  %v624_v33 = vcombine.high %v1836_v26, %v1892_v24  ;;  %v756_v34 = vsub.s32 0, %v1994_v20  ;;  %s519_s15 = scalar_lea.vmem %s2237_s5, %s1686_s26 }
  0x2c   : > { %v2003_v25 = vsub.s32 %v551_v23, %v1994_v20  ;;  %v1838_v29 = vld.sshfl [vmem:[%s424_s18 + $0x8] sm:$0x33 pattern:$0x73516240]  ;;  %v654_v35 = vpack.i.b16 %v1837_v28, %v1836_v26  ;;  %v656_v37 = vshrl.u32 %v1837_v28, 16  ;;  %v633_v40 = vcombine.high %v1837_v28, %v1892_v24  ;;  %v744_v5 = vld [vmem:[%s504_s9] sm:$0xff] }
  0x2d   : > { %v1839_v30 = vld.sshfl [vmem:[%s424_s18 + $0xa] sm:$0x33 pattern:$0x73516240]  ;;  %v2013_v31 = vsub.s32 %v764_v27, %v1994_v20  ;;  %v667_v38 = vshrl.u32 %v1838_v29, 16  ;;  %v642_v41 = vcombine.high %v1838_v29, %v1892_v24  ;;  %v661_v55 = vshrl.u32 %v624_v33, 16 }
  0x2e   : > { %v666_v36 = vpack.i.b16 %v1839_v30, %v1838_v29  ;;  %v668_v39 = vshrl.u32 %v1839_v30, 16  ;;  %v651_v42 = vcombine.high %v1839_v30, %v1892_v24  ;;  %v657_v44 = vpack.i.b16 %v656_v37, %v655_v32  ;;  %v1840_v49 = vld.sshfl [vmem:[%s494_s30] sm:$0x33 pattern:$0x73516240]  ;;  %533 = vst.msk [vmem:[#allocation3 + $0x10] sm:$0xff] %vm526_vm4, %v1888_v17 }
  0x2f   : > { %v660_v46 = vpack.i.b16 %v633_v40, %v624_v33  ;;  %v1841_v50 = vld.sshfl [vmem:[%s494_s30 + $0x2] sm:$0x33 pattern:$0x73516240]  ;;  %v662_v56 = vshrl.u32 %v633_v40, 16  ;;  %v587_v62 = vshrl.u32 %v1840_v49, 16  ;;  %v556_v9 = vcombine.high %v1840_v49, %v1892_v24 }
  0x30   : > { %v769_v43 = vcombine.low %v654_v35, %v666_v36  ;;  %v669_v45 = vpack.i.b16 %v668_v39, %v667_v38  ;;  %v672_v47 = vpack.i.b16 %v651_v42, %v642_v41  ;;  %v1842_v51 = vld.sshfl [vmem:[%s494_s30 + $0x8] sm:$0x33 pattern:$0x73516240]  ;;  %v586_v61 = vpack.i.b16 %v1841_v50, %v1840_v49  ;;  %v746_v18 = vld [vmem:[%s510_s12] sm:$0x1] }
  0x31   : > { %v1843_v53 = vld.sshfl [vmem:[%s494_s30 + $0xa] sm:$0x33 pattern:$0x73516240]  ;;  %v663_v60 = vpack.i.b16 %v662_v56, %v661_v55  ;;  %v588_v63 = vshrl.u32 %v1841_v50, 16  ;;  %v599_v0 = vshrl.u32 %v1842_v51, 16  ;;  %v565_v12 = vcombine.high %v1841_v50, %v1892_v24 }
  0x32   : > { %v776_v48 = vrot.slane %v769_v43, %v2013_v31  ;;  %v832_v52 = vcombine.low %v657_v44, %v669_v45  ;;  %v894_v54 = vcombine.low %v660_v46, %v672_v47  ;;  %v598_v2 = vpack.i.b16 %v1843_v53, %v1842_v51  ;;  %534 = vst.msk [vmem:[#allocation3 + $0x18] sm:$0xff] %vm526_vm4, %v1888_v17 }
  0x33   : > { %v600_v4 = vshrl.u32 %v1843_v53, 16  ;;  %v589_v6 = vpack.i.b16 %v588_v63, %v587_v62  ;;  %v673_v7 = vshrl.u32 %v642_v41, 16  ;;  %v674_v8 = vshrl.u32 %v651_v42, 16 }
  0x34   : > { %v782_v57 = vsel %vm535_vm0, %v776_v48, 0  ;;  %v839_v58 = vrot.slane %v832_v52, %v2013_v31  ;;  %v901_v59 = vrot.slane %v894_v54, %v2013_v31  ;;  %v761_v10 = vcombine.low %v586_v61, %v598_v2 }
  0x35   : > { %1705 = vmatpush3.bf16.xpose.msra.mxu0 %v782_v57  ;;  %v601_v11 = vpack.i.b16 %v600_v4, %v599_v0  ;;  %v574_v13 = vcombine.high %v1842_v51, %v1892_v24  ;;  %v675_v14 = vpack.i.b16 %v674_v8, %v673_v7  ;;  %v583_v15 = vcombine.high %v1843_v53, %v1892_v24 }
  0x36   : > { %1716 = vmatprep.subr.bf16.mxu0 %v1888_v17  ;;  %v844_v1 = vsel %vm535_vm0, %v839_v58, 0  ;;  %v906_v3 = vsel %vm535_vm0, %v901_v59, 0  ;;  %v593_v16 = vshrl.u32 %v556_v9, 16  ;;  %vm745_vm2 = vcmp.gt.f32.partialorder %v744_v5, 0.0 }
  0x37   : > { %1711 = vmatpush3.bf16.xpose.msra.mxu1 %v844_v1  ;;  %v768_v19 = vrot.slane %v761_v10, %v2013_v31  ;;  %v824_v21 = vcombine.low %v589_v6, %v601_v11  ;;  %v592_v22 = vpack.i.b16 %v565_v12, %v556_v9  ;;  %v594_v23 = vshrl.u32 %v565_v12, 16 }
  0x38   : > { %1722 = vmatprep.subr.bf16.mxu1 %v1888_v17  ;;  %v956_v26 = vcombine.low %v663_v60, %v675_v14  ;;  %v604_v27 = vpack.i.b16 %v583_v15, %v574_v13  ;;  %v605_v28 = vshrl.u32 %v574_v13, 16  ;;  %v606_v29 = vshrl.u32 %v583_v15, 16  ;;  %v1844_v14 = vld.sshfl [vmem:[%s2010_s25] sm:$0x33 pattern:$0x73516240] }
  0x39   : > { %v831_v30 = vrot.slane %v824_v21, %v2013_v31  ;;  %v595_v32 = vpack.i.b16 %v594_v23, %v593_v16  ;;  %v748_v33 = vsel %vm745_vm2, 1, %v1892_v24  ;;  %vm747_vm3 = vcmp.gt.f32.partialorder %v746_v18, 0.0  ;;  %v1845_v15 = vld.sshfl [vmem:[%s2010_s25 + $0x2] sm:$0x33 pattern:$0x73516240] }
  0x3a   : > { %v963_v35 = vrot.slane %v956_v26, %v2013_v31  ;;  %v886_v36 = vcombine.low %v592_v22, %v604_v27  ;;  %v607_v37 = vpack.i.b16 %v606_v29, %v605_v28  ;;  %v753_v38 = vsel %vm747_vm3, 1, %v1892_v24  ;;  %750 = vperm.xlu0 %1798, %v748_v33   ;;  %v1846_v16 = vld.sshfl [vmem:[%s2010_s25 + $0x8] sm:$0x33 pattern:$0x73516240] }
  0x3b   : > { %v757_v39 = vrot.slane %v753_v38, %v756_v34  ;;  %v1893_v20 = vmov -1e+30   ;;  %v1847_v18 = vld.sshfl [vmem:[%s2010_s25 + $0xa] sm:$0x33 pattern:$0x73516240]  ;;  %v722_v23 = vpack.i.b16 %v1845_v15, %v1844_v14 }
  0x3c   : > { %1707 = vmatmul.mubr.msk.bf16.vlgmr.msra.gmra.mxu0 %vm535_vm0, %v768_v19  ;;  %v968_v40 = vsel %vm535_vm0, %v963_v35, 0  ;;  %v948_v41 = vcombine.low %v595_v32, %v607_v37  ;;  %v893_v42 = vrot.slane %v886_v36, %v2013_v31  ;;  %527 = vst.msk [vmem:[#allocation2] sm:$0xff] %vm526_vm4, %v1893_v20  ;;  %528 = vst.msk [vmem:[#allocation2 + $0x8] sm:$0xff] %vm526_vm4, %v1893_v20  ;;  %v723_v29 = vshrl.u32 %v1844_v14, 16 }
  0x3d   : > { %1717 = vmatpush3.bf16.xpose.msra.mxu0 %v906_v3  ;;  %1718 = vmatprep.mubr.msk.bf16.mxu0 %vm1891_vm1, %v1888_v17  ;;  %529 = vst.msk [vmem:[#allocation2 + $0x10] sm:$0xff] %vm526_vm4, %v1893_v20  ;;  %530 = vst.msk [vmem:[#allocation2 + $0x18] sm:$0xff] %vm526_vm4, %v1893_v20  ;;  %vm758_vm5 = vcmp.eq.s32.totalorder %v757_v39, 1  ;;  %v734_v27 = vpack.i.b16 %v1847_v18, %v1846_v16  ;;  %v735_v32 = vshrl.u32 %v1846_v16, 16  ;;  %v736_v33 = vshrl.u32 %v1847_v18, 16 }
  0x3e   : > { %1713 = vmatmul.mubr.msk.bf16.vlgmr.msra.gmra.mxu1 %vm535_vm0, %v831_v30  ;;  %1728 = vmatprep.subr.bf16.mxu0 %v1888_v17  ;;  %v955_v43 = vrot.slane %v948_v41, %v2013_v31  ;;  %v724_v30 = vshrl.u32 %v1845_v15, 16  ;;  %vm1146_vm8 = vcmask 1043456   ;;  %vm1479_vm9 = vcmask 58368  }
  0x3f   : > { %1724 = vmatprep.mubr.msk.bf16.mxu1 %vm1891_vm1, %v1888_v17  ;;  %1723 = vmatpush3.bf16.xpose.msra.mxu1 %v968_v40  ;;  %v1135_v36 = vcombine.low %v722_v23, %v734_v27  ;;  %v737_v38 = vpack.i.b16 %v736_v33, %v735_v32 }
  0x40   : > { %1734 = vmatprep.subr.bf16.mxu1 %v1888_v17  ;;  %v725_v37 = vpack.i.b16 %v724_v30, %v723_v29 }
  0x41   : > { %v1142_v40 = vrot.slane %v1135_v36, %v2013_v31 }
  0x42   : > { %v1190_v41 = vcombine.low %v725_v37, %v737_v38 }
  0x43   : > { %v2098_v5 = vld [vmem:[#allocation2] sm:$0xff]  ;;  %v2100_v7 = vld [vmem:[#allocation2 + $0x8] sm:$0xff] }
  0x44   : > { %1719 = vmatmul.mubr.msk.bf16.vlgmr.msra.gmra.mxu0 %vm535_vm0, %v893_v42  ;;  %v2117_v13 = vld [vmem:[#allocation2 + $0x10] sm:$0xff]  ;;  %v2127_v22 = vld [vmem:[#allocation2 + $0x18] sm:$0xff]  ;;  %v692_v42 = vcombine.high %v1844_v14, %v1892_v24 }
  0x45   : > { %1730 = vmatprep.mubr.msk.bf16.mxu0 %vm1891_vm1, %v1888_v17 }
  0x46   : > { %1725 = vmatmul.mubr.msk.bf16.vlgmr.msra.gmra.mxu1 %vm535_vm0, %v955_v43  ;;  %v701_v43 = vcombine.high %v1845_v15, %v1892_v24 }
  0x47   : > { %1736 = vmatprep.mubr.msk.bf16.mxu1 %vm1891_vm1, %v1888_v17 }
  0xb5   : > { %v751_v34 = vpop.permute.xlu0 %750 }
  0xb6   : > { %vm752_vm6 = vcmp.eq.s32.totalorder %v751_v34, 1  ;;  %v1148_v34 = vsel %vm1146_vm8, %v1142_v40, 0  ;;  %v1074_v40 = vld [vmem:[#allocation3] sm:$0xff] }
  0xb7   : > { %vm759_vm7 = vmand %vm752_vm6, %vm758_vm5  ;;  %1729 = vmatpush3.bf16.msra.mxu0 %v1148_v34  ;;  %v1077_v34 = vld [vmem:[#allocation3 + $0x18] sm:$0xff] }
  0xb8   : > { %v760_v44 = vsel %vm759_vm7, 0.0, %v1893_v20  ;;  %v710_v20 = vcombine.high %v1846_v16, %v1892_v24  ;;  %1740 = vmatprep.subr.bf16.mxu0 %v1888_v17 }
  0xfc   : > { %v818_v45 = vpop.f32.mrf.mxu0 }
  0xfd   : > { %v2082_v46 = vadd.f32 %v818_v45, %v760_v44  ;;  %v1197_v45 = vrot.slane %v1190_v41, %v2013_v31 }
  0xfe   : > { %v1708_v47 = vpop.f32.mrf.mxu0  ;;  %v880_v48 = vpop.f32.mrf.mxu1 }
  0xff   : > { %v2084_v49 = vadd.f32 %v880_v48, %v760_v44  ;;  %v1014_v50 = vsel %vm535_vm0, %v2082_v46, -inf  ;;  %v728_v47 = vpack.i.b16 %v701_v43, %v692_v42 }
 0x100   : > { %v1714_v51 = vpop.f32.mrf.mxu1  ;;  %1015 = vmax.xlane.f32.xlu0 %v1014_v50  ;;  %v821_v52 = vpop.f32.mrf.mxu0  ;;  %v1202_v50 = vsel %vm1146_vm8, %v1197_v45, 0 }
 0x101   : > { %v1017_v53 = vsel %vm535_vm0, %v2084_v49, -inf  ;;  %v729_v51 = vshrl.u32 %v692_v42, 16  ;;  %v730_v52 = vshrl.u32 %v701_v43, 16  ;;  %1735 = vmatpush3.bf16.msra.mxu1 %v1202_v50  ;;  %v1075_v43 = vld [vmem:[#allocation3 + $0x8] sm:$0xff] }
 0x102   : > { %1018 = vmax.xlane.f32.xlu1 %v1017_v53  ;;  %v1709_v54 = vpop.f32.mrf.mxu0  ;;  %v883_v55 = vpop.f32.mrf.mxu1  ;;  %v741_v53 = vshrl.u32 %v710_v20, 16  ;;  %1746 = vmatprep.subr.bf16.mxu1 %v1888_v17 }
 0x104   : > { %v1715_v56 = vpop.f32.mrf.mxu1  ;;  %v942_v57 = vpop.f32.mrf.mxu0 }
 0x105   : > { %v2090_v58 = vadd.f32 %v942_v57, %v760_v44  ;;  %v731_v56 = vpack.i.b16 %v730_v52, %v729_v51 }
 0x106   : > { %v1720_v59 = vpop.f32.mrf.mxu0  ;;  %v1004_v60 = vpop.f32.mrf.mxu1 }
 0x107   : > { %v1020_v61 = vsel %vm535_vm0, %v2090_v58, -inf  ;;  %v2094_v62 = vadd.f32 %v1004_v60, %v760_v44  ;;  %v719_v44 = vcombine.high %v1847_v18, %v1892_v24 }
 0x108   : > { %1021 = vmax.xlane.f32.xlu1 %v1020_v61  ;;  %v945_v63 = vpop.f32.mrf.mxu0  ;;  %v1726_v0 = vpop.f32.mrf.mxu1 }
 0x109   : > { %v1023_v3 = vsel %vm535_vm0, %v2094_v62, -inf  ;;  %v740_v48 = vpack.i.b16 %v719_v44, %v710_v20  ;;  %v742_v55 = vshrl.u32 %v719_v44, 16 }
 0x10a   : > { %v1721_v1 = vpop.f32.mrf.mxu0  ;;  %v1007_v2 = vpop.f32.mrf.mxu1 }
 0x10b   : > { %v1244_v54 = vcombine.low %v728_v47, %v740_v48  ;;  %v743_v57 = vpack.i.b16 %v742_v55, %v741_v53 }
 0x10c   : > { %1024 = vmax.xlane.f32.xlu1 %v1023_v3  ;;  %v1727_v4 = vpop.f32.mrf.mxu1 }
 0x10d   : > { %v1251_v24 = vrot.slane %v1244_v54, %v2013_v31  ;;  %v1298_v60 = vcombine.low %v731_v56, %v743_v57 }
 0x10f   : > { %v1256_v59 = vsel %vm1146_vm8, %v1251_v24, 0  ;;  %v1305_v61 = vrot.slane %v1298_v60, %v2013_v31 }
 0x111   : > { %v1310_v63 = vsel %vm1146_vm8, %v1305_v61, 0  ;;  %v1104_v61 = vld [vmem:[#allocation4 + $0x8] sm:$0xff] }
 0x189   : > { %v1016_v6 = vpop.xlane.xlu0 %1015 }
 0x18a   : > { %v2103_v8 = vmax.f32 %v2098_v5, %v1016_v6 }
 0x18b   : > { %v1019_v9 = vpop.xlane.xlu1 %1018 }
 0x18c   : > { %v1030_v10 = vsub.f32 %v2098_v5, %v2103_v8  ;;  %1360 = vst.msk [vmem:[#allocation2] sm:$0xff] %vm526_vm4, %v2103_v8  ;;  %v2110_v11 = vmax.f32 %v2100_v7, %v1019_v9  ;;  %1044 = vperm.xlu1 %1799, %v2103_v8  }
 0x18e   : > { %v1031_v12 = vsub.f32 %v2100_v7, %v2110_v11  ;;  %1361 = vst.msk [vmem:[#allocation2 + $0x8] sm:$0xff] %vm526_vm4, %v2110_v11  ;;  %v1034_v36 = vmul.f32 1.442695, %v1030_v10 }
 0x190   : > { %1049 = vperm.xlu1 %1799, %v2110_v11   ;;  %v1036_v32 = vmul.f32 1.442695, %v1031_v12 }
 0x191   : > { %v1022_v19 = vpop.xlane.xlu1 %1021 }
 0x192   : > { %v2125_v21 = vmax.f32 %v2117_v13, %v1022_v19 }
 0x194   : > { %v1032_v26 = vsub.f32 %v2117_v13, %v2125_v21  ;;  %1362 = vst.msk [vmem:[#allocation2 + $0x10] sm:$0xff] %vm526_vm4, %v2125_v21  ;;  %1054 = vperm.xlu1 %1799, %v2125_v21  }
 0x195   : > { %v1025_v28 = vpop.xlane.xlu1 %1024 }
 0x196   : > { %v2135_v35 = vmax.f32 %v2127_v22, %v1025_v28  ;;  %v1038_v7 = vmul.f32 1.442695, %v1032_v26 }
 0x198   : > { %v1033_v39 = vsub.f32 %v2127_v22, %v2135_v35  ;;  %1363 = vst.msk [vmem:[#allocation2 + $0x18] sm:$0xff] %vm526_vm4, %v2135_v35  ;;  %1059 = vperm.xlu0 %1798, %v2135_v35   ;;  %v1076_v22 = vld [vmem:[#allocation3 + $0x10] sm:$0xff] }
 0x19a   : > { %v1040_v11 = vmul.f32 1.442695, %v1033_v39 }
 0x207   : > { %v1045_v0 = vpop.permute.xlu1 %1044 }
 0x208   : > { %v1062_v1 = vsub.f32 %v2082_v46, %v1045_v0 }
 0x20a   : > { %v1066_v2 = vmul.f32 1.442695, %v1062_v1 }
 0x20b   : > { %v1050_v3 = vpop.permute.xlu1 %1049 }
 0x20c   : > { %1812 = vpow2.f32 %v1066_v2  ;;  %v1063_v4 = vsub.f32 %v2084_v49, %v1050_v3 }
 0x20e   : > { %v1068_v6 = vmul.f32 1.442695, %v1063_v4 }
 0x20f   : > { %v1055_v9 = vpop.permute.xlu1 %1054 }
 0x210   : > { %1814 = vpow2.f32 %v1068_v6  ;;  %v1064_v14 = vsub.f32 %v2090_v58, %v1055_v9  ;;  %v1105_v6 = vld [vmem:[#allocation4 + $0x10] sm:$0xff] }
 0x212   : > { %v1070_v15 = vmul.f32 1.442695, %v1064_v14 }
 0x213   : > { %v1060_v16 = vpop.permute.xlu0 %1059 }
 0x214   : > { %1816 = vpow2.f32 %v1070_v15  ;;  %v1065_v18 = vsub.f32 %v2094_v62, %v1060_v16 }
 0x216   : > { %v1072_v19 = vmul.f32 1.442695, %v1065_v18 }
 0x218   : > { %1818 = vpow2.f32 %v1072_v19 }
 0x219   : > { %v1813_v23 = vpop.eup %1812  ;;  %1820 = vpow2.f32 %v1036_v32 }
 0x21a   : > { %v1082_v46 = vsel %vm535_vm0, %v1813_v23, 0.0  ;;  %v1131_v27 = vpack.c.bf16 %v1813_v23, %v1813_v23  ;;  %1822 = vpow2.f32 %v1034_v36 }
 0x21b   : > { %1083 = vadd.xlane.f32.xlu1 %v1082_v46  ;;  %1824 = vpow2.f32 %v1038_v7  ;;  %v1106_v46 = vld [vmem:[#allocation4 + $0x18] sm:$0xff] }
 0x21c   : > { %1731 = vmatmul.mubr.msk.bf16.vlgmr.msra.gmra.mxu0 %vm535_vm0, %v1131_v27  ;;  %1826 = vpow2.f32 %v1040_v11 }
 0x21d   : > { %v1815_v49 = vpop.eup %1814  ;;  %1741 = vmatpush3.bf16.msra.mxu0 %v1256_v59  ;;  %1742 = vmatprep.mubr.msk.bf16.mxu0 %vm1891_vm1, %v1888_v17  ;;  %v1103_v59 = vld [vmem:[#allocation4] sm:$0xff] }
 0x21e   : > { %v1085_v58 = vsel %vm535_vm0, %v1815_v49, 0.0  ;;  %v1132_v28 = vpack.c.bf16 %v1815_v49, %v1815_v49 }
 0x21f   : > { %1086 = vadd.xlane.f32.xlu0 %v1085_v58 }
 0x220   : > { %1737 = vmatmul.mubr.msk.bf16.vlgmr.msra.gmra.mxu1 %vm535_vm0, %v1132_v28 }
 0x221   : > { %v1817_v62 = vpop.eup %1816  ;;  %1747 = vmatpush3.bf16.msra.mxu1 %v1310_v63  ;;  %1748 = vmatprep.mubr.msk.bf16.mxu1 %vm1891_vm1, %v1888_v17 }
 0x222   : > { %v1088_v29 = vsel %vm535_vm0, %v1817_v62, 0.0  ;;  %v1133_v30 = vpack.c.bf16 %v1817_v62, %v1817_v62 }
 0x223   : > { %1089 = vadd.xlane.f32.xlu1 %v1088_v29 }
 0x224   : > { %1743 = vmatmul.mubr.msk.bf16.vlgmr.msra.gmra.mxu0 %vm535_vm0, %v1133_v30 }
 0x225   : > { %v1819_v33 = vpop.eup %1818 }
 0x226   : > { %v1091_v37 = vsel %vm535_vm0, %v1819_v33, 0.0  ;;  %v1134_v38 = vpack.c.bf16 %v1819_v33, %v1819_v33  ;;  %v1821_v5 = vpop.eup %1820 }
 0x227   : > { %1092 = vadd.xlane.f32.xlu1 %v1091_v37  ;;  %v1823_v8 = vpop.eup %1822  ;;  %v1079_v21 = vmul.f32 %v1821_v5, %v1075_v43 }
 0x228   : > { %1749 = vmatmul.mubr.msk.bf16.vlgmr.msra.gmra.mxu1 %vm535_vm0, %v1134_v38  ;;  %v1825_v10 = vpop.eup %1824  ;;  %v1078_v41 = vmul.f32 %v1823_v8, %v1074_v40 }
 0x229   : > { %v1827_v12 = vpop.eup %1826  ;;  %v1080_v39 = vmul.f32 %v1825_v10, %v1076_v22 }
 0x22a   : > { %v1081_v47 = vmul.f32 %v1827_v12, %v1077_v34 }
 0x235   : > { %1114 = vperm.xlu0 %1798, %v1821_v5  }
 0x238   : > { %1109 = vperm.xlu1 %1799, %v1823_v8  }
 0x23c   : > { %1119 = vperm.xlu1 %1799, %v1825_v10  }
 0x240   : > { %1124 = vperm.xlu1 %1799, %v1827_v12  }
 0x2a4   : > { %v1084_v42 = vpop.xlane.xlu1 %1083 }
 0x2a5   : > { %v1094_v13 = vadd.f32 %v1084_v42, %v1078_v41 }
 0x2a7   : > { %1099 = vst.msk [vmem:[#allocation3] sm:$0xff] %vm526_vm4, %v1094_v13 }
 0x2a8   : > { %v1087_v26 = vpop.xlane.xlu0 %1086 }
 0x2a9   : > { %v1095_v35 = vadd.f32 %v1087_v26, %v1079_v21 }
 0x2ab   : > { %1100 = vst.msk [vmem:[#allocation3 + $0x8] sm:$0xff] %vm526_vm4, %v1095_v35 }
 0x2ac   : > { %v1090_v20 = vpop.xlane.xlu1 %1089 }
 0x2ad   : > { %v1096_v44 = vadd.f32 %v1090_v20, %v1080_v39 }
 0x2ae   : > { %v1371_v45 = vld [vmem:[#allocation3] sm:$0xff] }
 0x2af   : > { %1101 = vst.msk [vmem:[#allocation3 + $0x10] sm:$0xff] %vm526_vm4, %v1096_v44  ;;  %1828 = vrcp.f32 %v1371_v45 }
 0x2b0   : > { %v1093_v48 = vpop.xlane.xlu1 %1092  ;;  %v1115_v63 = vpop.permute.xlu0 %1114 }
 0x2b1   : > { %v1097_v50 = vadd.f32 %v1093_v48, %v1081_v47  ;;  %v1128_v4 = vmul.f32 %v1115_v63, %v1104_v61 }
 0x2b2   : > { %v1372_v51 = vld [vmem:[#allocation3 + $0x8] sm:$0xff] }
 0x2b3   : > { %1102 = vst.msk [vmem:[#allocation3 + $0x18] sm:$0xff] %vm526_vm4, %v1097_v50  ;;  %1830 = vrcp.f32 %v1372_v51 }
 0x2b4   : > { %v1110_v57 = vpop.permute.xlu1 %1109 }
 0x2b5   : > { %v1127_v60 = vmul.f32 %v1110_v57, %v1103_v59 }
 0x2b6   : > { %v1373_v52 = vld [vmem:[#allocation3 + $0x10] sm:$0xff] }
 0x2b7   : > { %1832 = vrcp.f32 %v1373_v52 }
 0x2b8   : > { %v1120_v1 = vpop.permute.xlu1 %1119 }
 0x2b9   : > { %v1129_v19 = vmul.f32 %v1120_v1, %v1105_v6 }
 0x2ba   : > { %v1374_v53 = vld [vmem:[#allocation3 + $0x18] sm:$0xff] }
 0x2bb   : > { %1834 = vrcp.f32 %v1374_v53 }
 0x2bc   : > { %v1829_v54 = vpop.eup %1828  ;;  %v1125_v23 = vpop.permute.xlu1 %1124 }
 0x2bd   : > { %1381 = vperm.xlu1 %1799, %v1829_v54   ;;  %v1130_v29 = vmul.f32 %v1125_v23, %v1106_v46 }
 0x2c0   : > { %v1831_v55 = vpop.eup %1830 }
 0x2c1   : > { %1386 = vperm.xlu0 %1798, %v1831_v55  }
 0x2c4   : > { %v1833_v56 = vpop.eup %1832 }
 0x2c5   : > { %1391 = vperm.xlu1 %1799, %v1833_v56  }
 0x2c8   : > { %v1835_v24 = vpop.eup %1834 }
 0x2c9   : > { %1396 = vperm.xlu0 %1798, %v1835_v24  }
 0x2dc   : > { %v1184_v0 = vpop.f32.mrf.mxu0 }
 0x2dd   : > { %v1352_v2 = vadd.f32 %v1184_v0, %v1127_v60 }
 0x2de   : > { %v1732_v3 = vpop.f32.mrf.mxu0 }
 0x2df   : > { %1356 = vst.msk [vmem:[#allocation4] sm:$0xff] %vm535_vm0, %v1352_v2 }
 0x2e0   : > { %v1187_v9 = vpop.f32.mrf.mxu0  ;;  %v1238_v14 = vpop.f32.mrf.mxu1 }
 0x2e1   : > { %v1353_v15 = vadd.f32 %v1238_v14, %v1128_v4 }
 0x2e2   : > { %v1733_v16 = vpop.f32.mrf.mxu0  ;;  %v1738_v18 = vpop.f32.mrf.mxu1 }
 0x2e3   : > { %1357 = vst.msk [vmem:[#allocation4 + $0x8] sm:$0xff] %vm535_vm0, %v1353_v15 }
 0x2e4   : > { %v1241_v27 = vpop.f32.mrf.mxu1  ;;  %v1292_v49 = vpop.f32.mrf.mxu0 }
 0x2e5   : > { %v1354_v58 = vadd.f32 %v1292_v49, %v1129_v19 }
 0x2e6   : > { %v1739_v28 = vpop.f32.mrf.mxu1  ;;  %v1744_v62 = vpop.f32.mrf.mxu0  ;;  %v1367_v40 = vld [vmem:[#allocation4] sm:$0xff] }
 0x2e7   : > { %1358 = vst.msk [vmem:[#allocation4 + $0x10] sm:$0xff] %vm535_vm0, %v1354_v58 }
 0x2e8   : > { %v1295_v30 = vpop.f32.mrf.mxu0  ;;  %v1346_v32 = vpop.f32.mrf.mxu1 }
 0x2e9   : > { %v1355_v33 = vadd.f32 %v1346_v32, %v1130_v29 }
 0x2ea   : > { %v1745_v36 = vpop.f32.mrf.mxu0  ;;  %v1750_v37 = vpop.f32.mrf.mxu1  ;;  %v1368_v42 = vld [vmem:[#allocation4 + $0x8] sm:$0xff] }
 0x2eb   : > { %1359 = vst.msk [vmem:[#allocation4 + $0x18] sm:$0xff] %vm535_vm0, %v1355_v33 }
 0x2ec   : > { %v1349_v38 = vpop.f32.mrf.mxu1 }
 0x2ee   : > { %v1751_v7 = vpop.f32.mrf.mxu1  ;;  %v1369_v10 = vld [vmem:[#allocation4 + $0x10] sm:$0xff] }
 0x2f2   : > { %v1370_v13 = vld [vmem:[#allocation4 + $0x18] sm:$0xff] }
 0x338   : > { %v1382_v11 = vpop.permute.xlu1 %1381 }
 0x339   : > { %v1399_v41 = vmul.f32 %v1382_v11, %v1367_v40 }
 0x33c   : > { %v1387_v5 = vpop.permute.xlu0 %1386 }
 0x33d   : > { %v1400_v21 = vmul.f32 %v1387_v5, %v1368_v42 }
 0x340   : > { %v1392_v8 = vpop.permute.xlu1 %1391 }
 0x341   : > { %v1401_v12 = vmul.f32 %v1392_v8, %v1369_v10 }
 0x343   : > { %v1403_v26 = vcombine.low %v1399_v41, %v1401_v12  ;;  %v1404_v22 = vcombine.high %v1399_v41, %v1401_v12 }
 0x344   : > { %v1397_v43 = vpop.permute.xlu0 %1396 }
 0x345   : > { %v1402_v35 = vmul.f32 %v1397_v43, %v1370_v13  ;;  %v1411_v34 = vrot.slane %v1403_v26, %v2013_v31  ;;  %v1418_v44 = vrot.slane %v1404_v22, %v2013_v31 }
 0x347   : > { %v1419_v39 = vcombine.low %v1400_v21, %v1402_v35  ;;  %v1420_v20 = vcombine.high %v1400_v21, %v1402_v35 }
 0x349   : > { %v1427_v45 = vrot.slane %v1419_v39, %v2013_v31  ;;  %v1434_v47 = vrot.slane %v1420_v20, %v2013_v31 }
 0x34b   : > { %v1435_v48 = vcombine.low %v1411_v34, %v1427_v45  ;;  %v1436_v50 = vcombine.high %v1411_v34, %v1427_v45  ;;  %v1451_v51 = vcombine.low %v1418_v44, %v1434_v47  ;;  %v1452_v52 = vcombine.high %v1418_v44, %v1434_v47 }
 0x34d   : > { %v1443_v53 = vrot.slane %v1435_v48, %v2003_v25  ;;  %v1450_v54 = vrot.slane %v1436_v50, %v2003_v25  ;;  %v1459_v55 = vrot.slane %v1451_v51, %v2003_v25  ;;  %v1466_v56 = vrot.slane %v1452_v52, %v2003_v25 }
 0x34f   : > { %v1467_v31 = vcombine.high %v1443_v53, %v1888_v17  ;;  %v1468_v24 = vcombine.high %v1450_v54, %v1888_v17  ;;  %v1469_v57 = vcombine.high %v1459_v55, %v1888_v17  ;;  %v1470_v59 = vcombine.high %v1466_v56, %v1888_v17 }
 0x350   : > { %v1471_v60 = vpack.c.bf16 %v1443_v53, %v1443_v53  ;;  %v1473_v61 = vpack.c.bf16 %v1450_v54, %v1450_v54  ;;  %v1475_v63 = vpack.c.bf16 %v1459_v55, %v1459_v55  ;;  %v1477_v0 = vpack.c.bf16 %v1466_v56, %v1466_v56 }
 0x351   : > { %v1472_v1 = vpack.c.bf16 %v1467_v31, %v1467_v31  ;;  %v1474_v25 = vpack.c.bf16 %v1468_v24, %v1468_v24  ;;  %v1476_v2 = vpack.c.bf16 %v1469_v57, %v1469_v57  ;;  %v1478_v3 = vpack.c.bf16 %v1470_v59, %v1470_v59 }
 0x352   : > { %1480 = vst.msk [vmem:[%s519_s15] sm:$0x3] %vm1479_vm9, %v1471_v60  ;;  %1482 = vst.msk [vmem:[%s519_s15 + $0x4] sm:$0x3] %vm1479_vm9, %v1473_v61 }
 0x353   : > { %1484 = vst.msk [vmem:[%s519_s15 + $0x8] sm:$0x3] %vm1479_vm9, %v1475_v63  ;;  %1486 = vst.msk [vmem:[%s519_s15 + $0xc] sm:$0x3] %vm1479_vm9, %v1477_v0 }
 0x354   : > { %1481 = vst.msk [vmem:[%s519_s15 + $0x2] sm:$0x3] %vm1479_vm9, %v1472_v1  ;;  %1483 = vst.msk [vmem:[%s519_s15 + $0x6] sm:$0x3] %vm1479_vm9, %v1474_v25 }
 0x355   : > { %1485 = vst.msk [vmem:[%s519_s15 + $0xa] sm:$0x3] %vm1479_vm9, %v1476_v2  ;;  %1487 = vst.msk [vmem:[%s519_s15 + $0xe] sm:$0x3] %vm1479_vm9, %v1478_v3 }
 0x356 PF: > { %s15_s22 = sadd.s32 1, %s1886_s22   ;;  %s2239_s18 = smov %s1874_s19 }
 0x357   : > { %p12_p10 = scmp.ge.s32.totalorder %s15_s22, 4   ;;  %s2240_s19 = smov %s1963_s27 }
 0x358   : > { %s2241_s20 = smov %s1882_s21  ;;  %s2242_s21 = smov %s2244_s23 }
 0x359   :  { %14 = sbr.rel (!%p12_p10) target bundleno = 3 (0x3), region = 182 }

</bundles_post_ra>
